<compile_context>
chip_gen: v5e
topology: v5e:2x2
jax: 0.10.0
libtpu: 0.0.40
codegen_flags: <defaults>
</compile_context>

<pallas_src>
import functools

import jax
import jax.numpy as jnp
from jax.experimental import pallas as pl
from jax.experimental.pallas import tpu as pltpu

EPS = 1e-8


def _round_up(x, m):
    return -(-x // m) * m


@functools.lru_cache(maxsize=None)
def _vmem_limit():
    """Generation-aware scoped-VMEM budget (~3/4 of physical, capped)."""
    cap = 128 * 1024 * 1024
    try:
        info = pltpu.get_tpu_info()
        cap = int(getattr(info, "vmem_capacity_bytes", cap) or cap)
    except Exception:
        pass
    # v5e/v6e (128 MiB) -> 96 MiB ; v7x (64 MiB) -> 48 MiB
    return int(min(cap * 3 // 4, 96 * 1024 * 1024))


def _pick_block_rows(rows, max_block=512):
    """Large row tiles, rounded to 16 (bf16 sublanes), even grid steps."""
    rows = max(int(rows), 1)
    if rows <= 32:
        return _round_up(rows, 16)
    steps = -(-rows // max_block)
    if steps < 2:
        steps = 2            # >=2 steps so v7x's two TCs both get work
    elif steps % 2:
        steps += 1           # even step count -> balanced TC sharding
    return _round_up(-(-rows // steps), 16)


# ----------------------------------------------------------------------------
# Fused two-layer MLP kernel:  out = relu(x @ w1) @ w2   (hidden stays on-chip)
# ----------------------------------------------------------------------------
def _mlp2_kernel(x_ref, w1_ref, w2_ref, o_ref):
    h = jnp.dot(x_ref[...], w1_ref[...], preferred_element_type=jnp.float32)
    h = jnp.maximum(h, 0.0).astype(jnp.bfloat16)      # bf16 MXU operand again
    o_ref[...] = jnp.dot(h, w2_ref[...], preferred_element_type=jnp.float32)


def fused_mlp2(x, w1, w2, *, max_block_rows=512):
    """x: [R, K], w1: [K, H], w2: [H, N] -> [R, N] (f32).

    Rows tiled on a "parallel" grid; operands cast to bf16 (f32 accumulate);
    K left unpadded (full-dim block) so no zero-pad is streamed through HBM.
    """
    rows, kin = x.shape
    k1, hdim = w1.shape
    k2, dout = w2.shape
    assert kin == k1 and hdim == k2
    br = _pick_block_rows(rows, max_block_rows)
    padded = _round_up(rows, br)
    x = x.astype(jnp.bfloat16)
    if padded != rows:
        x = jnp.pad(x, ((0, padded - rows), (0, 0)))
    out = pl.pallas_call(
        _mlp2_kernel,
        out_shape=jax.ShapeDtypeStruct((padded, dout), jnp.float32),
        grid=(padded // br,),
        in_specs=[pl.BlockSpec((br, kin), lambda i: (i, 0)),
                  pl.BlockSpec((k1, hdim), lambda i: (0, 0)),
                  pl.BlockSpec((k2, dout), lambda i: (0, 0))],
        out_specs=pl.BlockSpec((br, dout), lambda i: (i, 0)),
        compiler_params=pltpu.CompilerParams(
            dimension_semantics=("parallel",),
            vmem_limit_bytes=_vmem_limit()),
    )(x, w1.astype(jnp.bfloat16), w2.astype(jnp.bfloat16))
    return out[:rows]


# ----------------------------------------------------------------------------
# Per-task LDA statistics kernel (grid over tasks, MXU class means,
# lane-dense outputs).  Features arrive transposed: [G, D, F].
# ----------------------------------------------------------------------------
def _lda_kernel(x_ref, lab_ref, scores_ref, stats_ref, *, n_way):
    x_t = x_ref[0]                                    # [D, F]  (F on lanes)
    lab = lab_ref[0]                                  # [1, F]  int32
    f = x_t.shape[1]
    f_pad = scores_ref.shape[2]

    # One-hot built in-kernel (no HBM one-hot stream): oh_t[k, f] = (label_f == k)
    oh_t = (jax.lax.broadcasted_iota(jnp.int32, (n_way, f), 0)
            == lab).astype(jnp.float32)               # [K, F]

    overall_mean = jnp.mean(x_t, axis=1, keepdims=True)              # [D, 1]

    # Class sums / counts / means via MXU contractions (O(1) in K, no XLU loop).
    class_sums = jnp.einsum('df,kf->dk', x_t, oh_t,
                            preferred_element_type=jnp.float32)      # [D, K]
    counts = jnp.einsum('of,kf->ok', jnp.ones((1, f), jnp.float32), oh_t,
                        preferred_element_type=jnp.float32)          # [1, K]
    cmeans = class_sums / jnp.maximum(counts, 1.0)                   # [D, K]
    frame_mean = jnp.dot(cmeans, oh_t,
                         preferred_element_type=jnp.float32)         # [D, F]

    diff = x_t - frame_mean
    intra = jnp.sum(diff * diff, axis=0, keepdims=True)              # [1, F]
    dmean = frame_mean - overall_mean
    frame_inter = jnp.sum(dmean * dmean, axis=0, keepdims=True)      # [1, F]

    # Exact division (top_k frame selection is sensitive to near-ties).
    scores = frame_inter / (intra + EPS)                             # [1, F]
    if f_pad > f:
        scores = jnp.concatenate(
            [scores, jnp.zeros((1, f_pad - f), jnp.float32)], axis=1)
    scores_ref[...] = scores.reshape(1, 1, f_pad)                    # lane-dense

    sw = jnp.sum(intra, axis=1, keepdims=True)                       # [1, 1]
    sb = jnp.sum(frame_inter, axis=1, keepdims=True)                 # [1, 1]
    lane = jax.lax.broadcasted_iota(jnp.int32, (1, stats_ref.shape[2]), 1)
    stats = jnp.where(lane == 0, sw, 0.0) + jnp.where(lane == 1, sb, 0.0)
    stats_ref[...] = stats.reshape(1, 1, stats_ref.shape[2])


def pallas_lda(feat_t, labels, n_way):
    """feat_t: [G, D, F] f32, labels: [G, 1, F] int32 -> (scores [G,F], stats [G,2])."""
    g, d, f = feat_t.shape
    f_pad = _round_up(f, 128)
    kernel = functools.partial(_lda_kernel, n_way=n_way)
    scores, stats = pl.pallas_call(
        kernel,
        out_shape=(jax.ShapeDtypeStruct((g, 1, f_pad), jnp.float32),
                   jax.ShapeDtypeStruct((g, 1, 128), jnp.float32)),
        grid=(g,),
        in_specs=[pl.BlockSpec((1, d, f), lambda i: (i, 0, 0)),
                  pl.BlockSpec((1, 1, f), lambda i: (i, 0, 0))],
        out_specs=(pl.BlockSpec((1, 1, f_pad), lambda i: (i, 0, 0)),
                   pl.BlockSpec((1, 1, 128), lambda i: (i, 0, 0))),
        compiler_params=pltpu.CompilerParams(
            dimension_semantics=("parallel",),
            vmem_limit_bytes=_vmem_limit()),
    )(feat_t.astype(jnp.float32), labels.astype(jnp.int32))
    return scores[:, 0, :f], stats[:, 0, :2]


# ----------------------------------------------------------------------------
# Model glue (plain JAX where the hardware wants it)
# ----------------------------------------------------------------------------
def extract_frames(x):
    """[B, S, C, T, V, M] -> [B*S*M*T, C*V] with frame order (sample, M, T)."""
    b, s, c, t, v, m = x.shape
    return jnp.transpose(x, (0, 1, 5, 3, 2, 4)).reshape(b * s * m * t, c * v)


def lda_batched(x, feats, y, topk, n_way):
    """x: [B,S,C,T,V,M]; feats: [B,S,M,T,D]; y: [B,S] -> (loss [B], x_sel)."""
    b, s, c, t, v, m = x.shape
    d = feats.shape[-1]
    f = s * m * t
    feat_t = jnp.transpose(feats.reshape(b, f, d), (0, 2, 1))        # [B, D, F]
    labels = jnp.broadcast_to(y[:, :, None, None],
                              (b, s, m, t)).reshape(b, 1, f).astype(jnp.int32)

    scores, stats = pallas_lda(feat_t, labels, n_way)                # [B,F],[B,2]
    lda_loss = stats[:, 0] / (stats[:, 1] + EPS)                     # Sw/(Sb+eps)

    frame_scores = scores.reshape(b, s, m, t)
    vf_scores = jnp.mean(frame_scores, axis=2)                       # [B, S, T]
    _, topk_idx = jax.lax.top_k(vf_scores, topk)                     # [B, S, topk]
    topk_idx = jnp.sort(topk_idx, axis=-1)
    idx = jnp.broadcast_to(topk_idx[:, :, None, :, None, None],
                           (b, s, c, topk, v, m))
    x_sel = jnp.take_along_axis(x, idx, axis=3)                      # [B,S,C,topk,V,M]
    return lda_loss, x_sel


def gcn_pool(x_sel, adj):
    """Graph conv over joints + relu + mean pool over (frames, persons)."""
    # [., 8]@[8, 8] contraction: intentionally left to XLA (too small for MXU).
    agg = jnp.einsum('bsctvm,vu->bsctum', x_sel, adj)
    agg = jax.nn.relu(agg)
    pooled = jnp.mean(agg, axis=(3, 5))                              # [B, S, C, V]
    b, s, c, v = pooled.shape
    return pooled.reshape(b, s, c * v)


def cross_entropy(logits, labels):
    """logits [B, S, K], labels [B, S] -> per-task mean CE [B]."""
    logp = jax.nn.log_softmax(logits, axis=-1)
    nll = -jnp.take_along_axis(logp, labels[..., None], axis=-1)[..., 0]
    return jnp.mean(nll, axis=-1)


# ----------------------------------------------------------------------------
# Meta forward (evaluation of the outer loop; inner adaptation is TODO)
# ----------------------------------------------------------------------------
def meta_forward(params, x_spt, y_spt, x_qry, y_qry, *, topk, n_way,
                 update_step):
    task_num, setsz, c, t, v, m = x_spt.shape
    querysz = x_qry.shape[1]
    cv = c * v
    d_out = params["w2"].shape[1]

    # ---- feature extractor on ALL frames (all tasks, support + query) ----
    xf_s = extract_frames(x_spt)
    xf_q = extract_frames(x_qry)
    xf = jnp.concatenate([xf_s, xf_q], axis=0)                       # [F_all, CV]
    feats = fused_mlp2(xf, params["w1"], params["w2"])               # [F_all, D]
    n_s = xf_s.shape[0]
    feats_s = feats[:n_s].reshape(task_num, setsz, m, t, d_out)
    feats_q = feats[n_s:].reshape(task_num, querysz, m, t, d_out)
    adj = jax.nn.softmax(params["adj"], axis=-1)                     # [V, V]

    # ---- LDA frame selection (per-task grid, batched across sets) ----
    lda_loss_s, xsel_s = lda_batched(x_spt, feats_s, y_spt, topk, n_way)
    _lda_loss_q, xsel_q = lda_batched(x_qry, feats_q, y_qry, topk, n_way)
    # (reference step-0 discards the query LDA loss; loss_q adds the support one)

    # ---- GCN classifier head: one fused call over all tasks + both sets ----
    pooled = jnp.concatenate([gcn_pool(xsel_s, adj).reshape(-1, cv),
                              gcn_pool(xsel_q, adj).reshape(-1, cv)], axis=0)
    logits_pad = fused_mlp2(pooled, params["gcn_w1"], params["gcn_w2"])
    logits = logits_pad[:, :n_way]
    n_rows_s = task_num * setsz
    logits_s = logits[:n_rows_s].reshape(task_num, setsz, n_way)     # noqa: F841
    logits_q = logits[n_rows_s:].reshape(task_num, querysz, n_way)

    # ---- losses / accuracy ----
    # TODO(synk): MAML inner-loop fast-weight adaptation (grad + SGD) is not
    # implemented; logits_s would feed the inner-loop support loss, and every
    # reported step uses the un-adapted parameters.
    loss_q = jnp.mean(cross_entropy(logits_q, y_qry) + lda_loss_s)
    pred_q = jnp.argmax(logits_q, axis=-1)
    acc0 = jnp.mean((pred_q == y_qry).astype(jnp.float32))
    accs = jnp.full((update_step + 1,), acc0, dtype=jnp.float32)
    return accs, loss_q


# ----------------------------------------------------------------------------
# Deterministic parameter construction and driver
# ----------------------------------------------------------------------------
def init_params(key, c, v, n_way, mlp_hidden=128, mlp_out=256, gcn_hidden=128):
    cv = c * v
    nway_pad = _round_up(n_way, 128)
    k1, k2, k3, k4, k5 = jax.random.split(key, 5)
    scale = 0.1
    w1 = scale * jax.random.normal(k1, (cv, mlp_hidden), jnp.float32)
    w2 = scale * jax.random.normal(k2, (mlp_hidden, mlp_out), jnp.float32)
    adj = (scale * jax.random.normal(k3, (v, v), jnp.float32)
           + jnp.eye(v, dtype=jnp.float32))
    gw1 = scale * jax.random.normal(k4, (cv, gcn_hidden), jnp.float32)
    gw2 = scale * jax.random.normal(k5, (gcn_hidden, n_way), jnp.float32)
    return {
        "w1": w1,                                                    # K unpadded
        "w2": w2,
        "adj": adj,
        "gcn_w1": gw1,
        "gcn_w2": jnp.pad(gw2, ((0, 0), (0, nway_pad - n_way))),     # lane-padded
    }


if __name__ == "__main__":
    # small shapes consistent with the module's [b, setsz, C, T, V, M] inputs
    n_way, k_shot, k_query = 3, 1, 1
    task_num, update_step = 2, 5
    C, T, V, M = 3, 16, 8, 2
    topk = 8
    setsz = n_way * k_shot
    querysz = n_way * k_query

    key = jax.random.PRNGKey(0)
    kp, kxs, kys, kxq, kyq = jax.random.split(key, 5)

    params = init_params(kp, C, V, n_way)
    x_spt = jax.random.normal(kxs, (task_num, setsz, C, T, V, M), jnp.float32)
    y_spt = jax.random.randint(kys, (task_num, setsz), 0, n_way, jnp.int32)
    x_qry = jax.random.normal(kxq, (task_num, querysz, C, T, V, M), jnp.float32)
    y_qry = jax.random.randint(kyq, (task_num, querysz), 0, n_way, jnp.int32)

    fwd = jax.jit(functools.partial(meta_forward, topk=topk, n_way=n_way,
                                    update_step=update_step))
    accs, loss_q = fwd(params, x_spt, y_spt, x_qry, y_qry)
    jax.block_until_ready((accs, loss_q))
    assert accs.shape == (update_step + 1,)
    assert bool(jnp.isfinite(loss_q))
    print("KERNEL_OK")
</pallas_src>

<mosaic_0001>
module attributes {stable_mosaic.version = 11 : i64} {
  func.func @_mlp2_kernel(%arg0: i32, %arg1: memref<192x24xbf16, #tpu.memory_space<vmem>>, %arg2: memref<24x128xbf16, #tpu.memory_space<vmem>>, %arg3: memref<128x256xbf16, #tpu.memory_space<vmem>>, %arg4: memref<192x256xf32, #tpu.memory_space<vmem>>) attributes {dimension_semantics = [#tpu.dimension_semantics<parallel>], iteration_bounds = array<i64: 2>, scalar_prefetch = 0 : i64, scratch_operands = 0 : i64, tpu.core_type = #tpu.core_type<tc>, window_params = [{transform_indices = @transform_0, window_bounds = array<i64: 192, 24>}, {pipeline_mode = #tpu.pipeline_mode<synchronous>, transform_indices = @transform_1, window_bounds = array<i64: 24, 128>}, {pipeline_mode = #tpu.pipeline_mode<synchronous>, transform_indices = @transform_2, window_bounds = array<i64: 128, 256>}, {transform_indices = @transform_3, window_bounds = array<i64: 192, 256>}]} {
    %c0 = arith.constant 0 : index
    %c0_0 = arith.constant 0 : index
    %0 = vector.load %arg1[%c0, %c0_0] : memref<192x24xbf16, #tpu.memory_space<vmem>>, vector<192x24xbf16>
    %c0_1 = arith.constant 0 : index
    %c0_2 = arith.constant 0 : index
    %1 = vector.load %arg2[%c0_1, %c0_2] : memref<24x128xbf16, #tpu.memory_space<vmem>>, vector<24x128xbf16>
    %cst = arith.constant dense<0.000000e+00> : vector<192x128xf32>
    %2 = tpu.matmul %0, %1, %cst {dimension_numbers = #tpu.dot_dimension_numbers<[1], [0], [0], [1], [0, 0, 1, 1], [], []>} : vector<192x24xbf16>, vector<24x128xbf16>, vector<192x128xf32> -> vector<192x128xf32>
    %cst_3 = arith.constant 0.000000e+00 : f32
    %3 = vector.broadcast %cst_3 : f32 to vector<192x128xf32>
    %4 = arith.maximumf %2, %3 : vector<192x128xf32>
    %5 = arith.truncf %4 : vector<192x128xf32> to vector<192x128xbf16>
    %c0_4 = arith.constant 0 : index
    %c0_5 = arith.constant 0 : index
    %6 = vector.load %arg3[%c0_4, %c0_5] : memref<128x256xbf16, #tpu.memory_space<vmem>>, vector<128x256xbf16>
    %cst_6 = arith.constant dense<0.000000e+00> : vector<192x256xf32>
    %7 = tpu.matmul %5, %6, %cst_6 {dimension_numbers = #tpu.dot_dimension_numbers<[1], [0], [0], [1], [0, 0, 1, 1], [], []>} : vector<192x128xbf16>, vector<128x256xbf16>, vector<192x256xf32> -> vector<192x256xf32>
    %c0_7 = arith.constant 0 : index
    %c0_8 = arith.constant 0 : index
    %8 = vector.load %arg4[%c0_7, %c0_8] : memref<192x256xf32, #tpu.memory_space<vmem>>, vector<192x256xf32>
    tpu.vector_store %arg4[%c0_7, %c0_8], %7 {strides = array<i32>} : memref<192x256xf32, #tpu.memory_space<vmem>>, vector<192x256xf32>,
    return
  }
  func.func @transform_0(%arg0: i32) -> (i32, i32) {
    %c0_i32 = arith.constant 0 : i32
    %c0_i32_0 = arith.constant 0 : i32
    return %arg0, %c0_i32 : i32, i32
  }
  func.func @transform_1(%arg0: i32) -> (i32, i32) {
    %c0_i32 = arith.constant 0 : i32
    %c0_i32_0 = arith.constant 0 : i32
    %c0_i32_1 = arith.constant 0 : i32
    return %c0_i32, %c0_i32_0 : i32, i32
  }
  func.func @transform_2(%arg0: i32) -> (i32, i32) {
    %c0_i32 = arith.constant 0 : i32
    %c0_i32_0 = arith.constant 0 : i32
    %c0_i32_1 = arith.constant 0 : i32
    return %c0_i32, %c0_i32_0 : i32, i32
  }
  func.func @transform_3(%arg0: i32) -> (i32, i32) {
    %c0_i32 = arith.constant 0 : i32
    %c0_i32_0 = arith.constant 0 : i32
    return %arg0, %c0_i32 : i32, i32
  }
}

module attributes {stable_mosaic.version = 11 : i64} {
  func.func @_lda_kernel(%arg0: i32, %arg1: memref<1x256x96xf32, #tpu.memory_space<vmem>>, %arg2: memref<1x1x96xi32, #tpu.memory_space<vmem>>, %arg3: memref<1x1x128xf32, #tpu.memory_space<vmem>>, %arg4: memref<1x1x128xf32, #tpu.memory_space<vmem>>) attributes {dimension_semantics = [#tpu.dimension_semantics<parallel>], iteration_bounds = array<i64: 2>, scalar_prefetch = 0 : i64, scratch_operands = 0 : i64, tpu.core_type = #tpu.core_type<tc>, window_params = [{transform_indices = @transform_0, window_bounds = array<i64: 1, 256, 96>}, {transform_indices = @transform_1, window_bounds = array<i64: 1, 1, 96>}, {transform_indices = @transform_2, window_bounds = array<i64: 1, 1, 128>}, {transform_indices = @transform_3, window_bounds = array<i64: 1, 1, 128>}]} {
    %c0 = arith.constant 0 : index
    %c0_0 = arith.constant 0 : index
    %c0_1 = arith.constant 0 : index
    %0 = vector.load %arg1[%c0, %c0_0, %c0_1] : memref<1x256x96xf32, #tpu.memory_space<vmem>>, vector<1x256x96xf32>
    %1 = vector.shape_cast %0 : vector<1x256x96xf32> to vector<256x96xf32>
    %c0_2 = arith.constant 0 : index
    %c0_3 = arith.constant 0 : index
    %c0_4 = arith.constant 0 : index
    %2 = vector.load %arg2[%c0_2, %c0_3, %c0_4] : memref<1x1x96xi32, #tpu.memory_space<vmem>>, vector<1x1x96xi32>
    %3 = vector.shape_cast %2 : vector<1x1x96xi32> to vector<1x96xi32>
    %4 = tpu.iota {dimensions = array<i32: 0>} : vector<3x96xi32>
    %5 = vector.broadcast %3 : vector<1x96xi32> to vector<3x96xi32>
    %6 = arith.cmpi eq, %4, %5 : vector<3x96xi32>
    %7 = arith.extui %6 : vector<3x96xi1> to vector<3x96xi32>
    %8 = arith.sitofp %7 : vector<3x96xi32> to vector<3x96xf32>
    %cst = arith.constant dense<0.000000e+00> : vector<256xf32>
    %9 = vector.multi_reduction <add>, %1, %cst [1] : vector<256x96xf32> to vector<256xf32>
    %10 = vector.shape_cast %9 : vector<256xf32> to vector<256x1xf32>
    %cst_5 = arith.constant 9.600000e+01 : f32
    %11 = vector.broadcast %cst_5 : f32 to vector<256x1xf32>
    %12 = arith.divf %10, %11 : vector<256x1xf32>
    "tpu.trace_start"() <{level = 10 : i32, message = "df,kf->dk"}> : () -> ()
    %cst_6 = arith.constant dense<0.000000e+00> : vector<256x3xf32>
    %13 = tpu.matmul %1, %8, %cst_6 {dimension_numbers = #tpu.dot_dimension_numbers<[1], [1], [0], [0], [0, 0, 1, 0], [], []>} : vector<256x96xf32>, vector<3x96xf32>, vector<256x3xf32> -> vector<256x3xf32>
    %cst_7 = arith.constant 1.000000e+00 : f32
    "tpu.trace_stop"() : () -> ()
    %14 = vector.broadcast %cst_7 : f32 to vector<1x96xf32>
    "tpu.trace_start"() <{level = 10 : i32, message = "of,kf->ok"}> : () -> ()
    %cst_8 = arith.constant dense<0.000000e+00> : vector<1x3xf32>
    %15 = tpu.matmul %14, %8, %cst_8 {dimension_numbers = #tpu.dot_dimension_numbers<[1], [1], [0], [0], [0, 0, 1, 0], [], []>} : vector<1x96xf32>, vector<3x96xf32>, vector<1x3xf32> -> vector<1x3xf32>
    "tpu.trace_stop"() : () -> ()
    %cst_9 = arith.constant 1.000000e+00 : f32
    %16 = vector.broadcast %cst_9 : f32 to vector<1x3xf32>
    %17 = arith.maximumf %15, %16 : vector<1x3xf32>
    %18 = vector.broadcast %17 : vector<1x3xf32> to vector<256x3xf32>
    %19 = arith.divf %13, %18 : vector<256x3xf32>
    %cst_10 = arith.constant dense<0.000000e+00> : vector<256x96xf32>
    %20 = tpu.matmul %19, %8, %cst_10 {dimension_numbers = #tpu.dot_dimension_numbers<[1], [0], [0], [1], [0, 0, 1, 1], [], []>} : vector<256x3xf32>, vector<3x96xf32>, vector<256x96xf32> -> vector<256x96xf32>
    %21 = arith.subf %1, %20 : vector<256x96xf32>
    %22 = arith.mulf %21, %21 : vector<256x96xf32>
    %cst_11 = arith.constant dense<0.000000e+00> : vector<96xf32>
    %23 = vector.multi_reduction <add>, %22, %cst_11 [0] : vector<256x96xf32> to vector<96xf32>
    %24 = vector.shape_cast %23 : vector<96xf32> to vector<1x96xf32>
    %25 = vector.broadcast %12 : vector<256x1xf32> to vector<256x96xf32>
    %26 = arith.subf %20, %25 : vector<256x96xf32>
    %27 = arith.mulf %26, %26 : vector<256x96xf32>
    %cst_12 = arith.constant dense<0.000000e+00> : vector<96xf32>
    %28 = vector.multi_reduction <add>, %27, %cst_12 [0] : vector<256x96xf32> to vector<96xf32>
    %29 = vector.shape_cast %28 : vector<96xf32> to vector<1x96xf32>
    %cst_13 = arith.constant 9.99999993E-9 : f32
    %30 = vector.broadcast %cst_13 : f32 to vector<1x96xf32>
    %31 = arith.addf %24, %30 : vector<1x96xf32>
    %32 = arith.divf %29, %31 : vector<1x96xf32>
    %cst_14 = arith.constant 0.000000e+00 : f32
    %33 = vector.broadcast %cst_14 : f32 to vector<1x32xf32>
    %34 = tpu.concatenate %32, %33 in 1 : vector<1x96xf32>, vector<1x32xf32> -> vector<1x128xf32>
    %35 = vector.shape_cast %34 : vector<1x128xf32> to vector<1x1x128xf32>
    %c0_15 = arith.constant 0 : index
    %c0_16 = arith.constant 0 : index
    %c0_17 = arith.constant 0 : index
    %36 = vector.load %arg3[%c0_15, %c0_16, %c0_17] : memref<1x1x128xf32, #tpu.memory_space<vmem>>, vector<1x1x128xf32>
    tpu.vector_store %arg3[%c0_15, %c0_16, %c0_17], %35 {strides = array<i32>} : memref<1x1x128xf32, #tpu.memory_space<vmem>>, vector<1x1x128xf32>,
    %cst_18 = arith.constant dense<0.000000e+00> : vector<1xf32>
    %37 = vector.multi_reduction <add>, %24, %cst_18 [1] : vector<1x96xf32> to vector<1xf32>
    %38 = vector.shape_cast %37 : vector<1xf32> to vector<1x1xf32>
    %cst_19 = arith.constant dense<0.000000e+00> : vector<1xf32>
    %39 = vector.multi_reduction <add>, %29, %cst_19 [1] : vector<1x96xf32> to vector<1xf32>
    %40 = vector.shape_cast %39 : vector<1xf32> to vector<1x1xf32>
    %41 = tpu.iota {dimensions = array<i32: 1>} : vector<1x128xi32>
    %c0_i32 = arith.constant 0 : i32
    %42 = vector.broadcast %c0_i32 : i32 to vector<1x128xi32>
    %43 = arith.cmpi eq, %41, %42 : vector<1x128xi32>
    %cst_20 = arith.constant 0.000000e+00 : f32
    %44 = vector.shape_cast %38 : vector<1x1xf32> to vector<1x1xf32>
    %45 = vector.broadcast %44 : vector<1x1xf32> to vector<1x128xf32>
    %46 = vector.broadcast %cst_20 : f32 to vector<1x128xf32>
    %47 = arith.select %43, %45, %46 : vector<1x128xi1>, vector<1x128xf32>
    %c1_i32 = arith.constant 1 : i32
    %48 = vector.broadcast %c1_i32 : i32 to vector<1x128xi32>
    %49 = arith.cmpi eq, %41, %48 : vector<1x128xi32>
    %cst_21 = arith.constant 0.000000e+00 : f32
    %50 = vector.shape_cast %40 : vector<1x1xf32> to vector<1x1xf32>
    %51 = vector.broadcast %50 : vector<1x1xf32> to vector<1x128xf32>
    %52 = vector.broadcast %cst_21 : f32 to vector<1x128xf32>
    %53 = arith.select %49, %51, %52 : vector<1x128xi1>, vector<1x128xf32>
    %54 = arith.addf %47, %53 : vector<1x128xf32>
    %55 = vector.shape_cast %54 : vector<1x128xf32> to vector<1x1x128xf32>
    %c0_22 = arith.constant 0 : index
    %c0_23 = arith.constant 0 : index
    %c0_24 = arith.constant 0 : index
    %56 = vector.load %arg4[%c0_22, %c0_23, %c0_24] : memref<1x1x128xf32, #tpu.memory_space<vmem>>, vector<1x1x128xf32>
    tpu.vector_store %arg4[%c0_22, %c0_23, %c0_24], %55 {strides = array<i32>} : memref<1x1x128xf32, #tpu.memory_space<vmem>>, vector<1x1x128xf32>,
    return
  }
  func.func @transform_0(%arg0: i32) -> (i32, i32, i32) {
    %c0_i32 = arith.constant 0 : i32
    %c0_i32_0 = arith.constant 0 : i32
    %c0_i32_1 = arith.constant 0 : i32
    return %arg0, %c0_i32, %c0_i32_0 : i32, i32, i32
  }
  func.func @transform_1(%arg0: i32) -> (i32, i32, i32) {
    %c0_i32 = arith.constant 0 : i32
    %c0_i32_0 = arith.constant 0 : i32
    %c0_i32_1 = arith.constant 0 : i32
    return %arg0, %c0_i32, %c0_i32_0 : i32, i32, i32
  }
  func.func @transform_2(%arg0: i32) -> (i32, i32, i32) {
    %c0_i32 = arith.constant 0 : i32
    %c0_i32_0 = arith.constant 0 : i32
    %c0_i32_1 = arith.constant 0 : i32
    return %arg0, %c0_i32, %c0_i32_0 : i32, i32, i32
  }
  func.func @transform_3(%arg0: i32) -> (i32, i32, i32) {
    %c0_i32 = arith.constant 0 : i32
    %c0_i32_0 = arith.constant 0 : i32
    %c0_i32_1 = arith.constant 0 : i32
    return %arg0, %c0_i32, %c0_i32_0 : i32, i32, i32
  }
}

module attributes {stable_mosaic.version = 11 : i64} {
  func.func @_lda_kernel(%arg0: i32, %arg1: memref<1x256x96xf32, #tpu.memory_space<vmem>>, %arg2: memref<1x1x96xi32, #tpu.memory_space<vmem>>, %arg3: memref<1x1x128xf32, #tpu.memory_space<vmem>>, %arg4: memref<1x1x128xf32, #tpu.memory_space<vmem>>) attributes {dimension_semantics = [#tpu.dimension_semantics<parallel>], iteration_bounds = array<i64: 2>, scalar_prefetch = 0 : i64, scratch_operands = 0 : i64, tpu.core_type = #tpu.core_type<tc>, window_params = [{transform_indices = @transform_0, window_bounds = array<i64: 1, 256, 96>}, {transform_indices = @transform_1, window_bounds = array<i64: 1, 1, 96>}, {transform_indices = @transform_2, window_bounds = array<i64: 1, 1, 128>}, {transform_indices = @transform_3, window_bounds = array<i64: 1, 1, 128>}]} {
    %c0 = arith.constant 0 : index
    %c0_0 = arith.constant 0 : index
    %c0_1 = arith.constant 0 : index
    %0 = vector.load %arg1[%c0, %c0_0, %c0_1] : memref<1x256x96xf32, #tpu.memory_space<vmem>>, vector<1x256x96xf32>
    %1 = vector.shape_cast %0 : vector<1x256x96xf32> to vector<256x96xf32>
    %c0_2 = arith.constant 0 : index
    %c0_3 = arith.constant 0 : index
    %c0_4 = arith.constant 0 : index
    %2 = vector.load %arg2[%c0_2, %c0_3, %c0_4] : memref<1x1x96xi32, #tpu.memory_space<vmem>>, vector<1x1x96xi32>
    %3 = vector.shape_cast %2 : vector<1x1x96xi32> to vector<1x96xi32>
    %4 = tpu.iota {dimensions = array<i32: 0>} : vector<3x96xi32>
    %5 = vector.broadcast %3 : vector<1x96xi32> to vector<3x96xi32>
    %6 = arith.cmpi eq, %4, %5 : vector<3x96xi32>
    %7 = arith.extui %6 : vector<3x96xi1> to vector<3x96xi32>
    %8 = arith.sitofp %7 : vector<3x96xi32> to vector<3x96xf32>
    %cst = arith.constant dense<0.000000e+00> : vector<256xf32>
    %9 = vector.multi_reduction <add>, %1, %cst [1] : vector<256x96xf32> to vector<256xf32>
    %10 = vector.shape_cast %9 : vector<256xf32> to vector<256x1xf32>
    %cst_5 = arith.constant 9.600000e+01 : f32
    %11 = vector.broadcast %cst_5 : f32 to vector<256x1xf32>
    %12 = arith.divf %10, %11 : vector<256x1xf32>
    "tpu.trace_start"() <{level = 10 : i32, message = "df,kf->dk"}> : () -> ()
    %cst_6 = arith.constant dense<0.000000e+00> : vector<256x3xf32>
    %13 = tpu.matmul %1, %8, %cst_6 {dimension_numbers = #tpu.dot_dimension_numbers<[1], [1], [0], [0], [0, 0, 1, 0], [], []>} : vector<256x96xf32>, vector<3x96xf32>, vector<256x3xf32> -> vector<256x3xf32>
    %cst_7 = arith.constant 1.000000e+00 : f32
    "tpu.trace_stop"() : () -> ()
    %14 = vector.broadcast %cst_7 : f32 to vector<1x96xf32>
    "tpu.trace_start"() <{level = 10 : i32, message = "of,kf->ok"}> : () -> ()
    %cst_8 = arith.constant dense<0.000000e+00> : vector<1x3xf32>
    %15 = tpu.matmul %14, %8, %cst_8 {dimension_numbers = #tpu.dot_dimension_numbers<[1], [1], [0], [0], [0, 0, 1, 0], [], []>} : vector<1x96xf32>, vector<3x96xf32>, vector<1x3xf32> -> vector<1x3xf32>
    "tpu.trace_stop"() : () -> ()
    %cst_9 = arith.constant 1.000000e+00 : f32
    %16 = vector.broadcast %cst_9 : f32 to vector<1x3xf32>
    %17 = arith.maximumf %15, %16 : vector<1x3xf32>
    %18 = vector.broadcast %17 : vector<1x3xf32> to vector<256x3xf32>
    %19 = arith.divf %13, %18 : vector<256x3xf32>
    %cst_10 = arith.constant dense<0.000000e+00> : vector<256x96xf32>
    %20 = tpu.matmul %19, %8, %cst_10 {dimension_numbers = #tpu.dot_dimension_numbers<[1], [0], [0], [1], [0, 0, 1, 1], [], []>} : vector<256x3xf32>, vector<3x96xf32>, vector<256x96xf32> -> vector<256x96xf32>
    %21 = arith.subf %1, %20 : vector<256x96xf32>
    %22 = arith.mulf %21, %21 : vector<256x96xf32>
    %cst_11 = arith.constant dense<0.000000e+00> : vector<96xf32>
    %23 = vector.multi_reduction <add>, %22, %cst_11 [0] : vector<256x96xf32> to vector<96xf32>
    %24 = vector.shape_cast %23 : vector<96xf32> to vector<1x96xf32>
    %25 = vector.broadcast %12 : vector<256x1xf32> to vector<256x96xf32>
    %26 = arith.subf %20, %25 : vector<256x96xf32>
    %27 = arith.mulf %26, %26 : vector<256x96xf32>
    %cst_12 = arith.constant dense<0.000000e+00> : vector<96xf32>
    %28 = vector.multi_reduction <add>, %27, %cst_12 [0] : vector<256x96xf32> to vector<96xf32>
    %29 = vector.shape_cast %28 : vector<96xf32> to vector<1x96xf32>
    %cst_13 = arith.constant 9.99999993E-9 : f32
    %30 = vector.broadcast %cst_13 : f32 to vector<1x96xf32>
    %31 = arith.addf %24, %30 : vector<1x96xf32>
    %32 = arith.divf %29, %31 : vector<1x96xf32>
    %cst_14 = arith.constant 0.000000e+00 : f32
    %33 = vector.broadcast %cst_14 : f32 to vector<1x32xf32>
    %34 = tpu.concatenate %32, %33 in 1 : vector<1x96xf32>, vector<1x32xf32> -> vector<1x128xf32>
    %35 = vector.shape_cast %34 : vector<1x128xf32> to vector<1x1x128xf32>
    %c0_15 = arith.constant 0 : index
    %c0_16 = arith.constant 0 : index
    %c0_17 = arith.constant 0 : index
    %36 = vector.load %arg3[%c0_15, %c0_16, %c0_17] : memref<1x1x128xf32, #tpu.memory_space<vmem>>, vector<1x1x128xf32>
    tpu.vector_store %arg3[%c0_15, %c0_16, %c0_17], %35 {strides = array<i32>} : memref<1x1x128xf32, #tpu.memory_space<vmem>>, vector<1x1x128xf32>,
    %cst_18 = arith.constant dense<0.000000e+00> : vector<1xf32>
    %37 = vector.multi_reduction <add>, %24, %cst_18 [1] : vector<1x96xf32> to vector<1xf32>
    %38 = vector.shape_cast %37 : vector<1xf32> to vector<1x1xf32>
    %cst_19 = arith.constant dense<0.000000e+00> : vector<1xf32>
    %39 = vector.multi_reduction <add>, %29, %cst_19 [1] : vector<1x96xf32> to vector<1xf32>
    %40 = vector.shape_cast %39 : vector<1xf32> to vector<1x1xf32>
    %41 = tpu.iota {dimensions = array<i32: 1>} : vector<1x128xi32>
    %c0_i32 = arith.constant 0 : i32
    %42 = vector.broadcast %c0_i32 : i32 to vector<1x128xi32>
    %43 = arith.cmpi eq, %41, %42 : vector<1x128xi32>
    %cst_20 = arith.constant 0.000000e+00 : f32
    %44 = vector.shape_cast %38 : vector<1x1xf32> to vector<1x1xf32>
    %45 = vector.broadcast %44 : vector<1x1xf32> to vector<1x128xf32>
    %46 = vector.broadcast %cst_20 : f32 to vector<1x128xf32>
    %47 = arith.select %43, %45, %46 : vector<1x128xi1>, vector<1x128xf32>
    %c1_i32 = arith.constant 1 : i32
    %48 = vector.broadcast %c1_i32 : i32 to vector<1x128xi32>
    %49 = arith.cmpi eq, %41, %48 : vector<1x128xi32>
    %cst_21 = arith.constant 0.000000e+00 : f32
    %50 = vector.shape_cast %40 : vector<1x1xf32> to vector<1x1xf32>
    %51 = vector.broadcast %50 : vector<1x1xf32> to vector<1x128xf32>
    %52 = vector.broadcast %cst_21 : f32 to vector<1x128xf32>
    %53 = arith.select %49, %51, %52 : vector<1x128xi1>, vector<1x128xf32>
    %54 = arith.addf %47, %53 : vector<1x128xf32>
    %55 = vector.shape_cast %54 : vector<1x128xf32> to vector<1x1x128xf32>
    %c0_22 = arith.constant 0 : index
    %c0_23 = arith.constant 0 : index
    %c0_24 = arith.constant 0 : index
    %56 = vector.load %arg4[%c0_22, %c0_23, %c0_24] : memref<1x1x128xf32, #tpu.memory_space<vmem>>, vector<1x1x128xf32>
    tpu.vector_store %arg4[%c0_22, %c0_23, %c0_24], %55 {strides = array<i32>} : memref<1x1x128xf32, #tpu.memory_space<vmem>>, vector<1x1x128xf32>,
    return
  }
  func.func @transform_0(%arg0: i32) -> (i32, i32, i32) {
    %c0_i32 = arith.constant 0 : i32
    %c0_i32_0 = arith.constant 0 : i32
    %c0_i32_1 = arith.constant 0 : i32
    return %arg0, %c0_i32, %c0_i32_0 : i32, i32, i32
  }
  func.func @transform_1(%arg0: i32) -> (i32, i32, i32) {
    %c0_i32 = arith.constant 0 : i32
    %c0_i32_0 = arith.constant 0 : i32
    %c0_i32_1 = arith.constant 0 : i32
    return %arg0, %c0_i32, %c0_i32_0 : i32, i32, i32
  }
  func.func @transform_2(%arg0: i32) -> (i32, i32, i32) {
    %c0_i32 = arith.constant 0 : i32
    %c0_i32_0 = arith.constant 0 : i32
    %c0_i32_1 = arith.constant 0 : i32
    return %arg0, %c0_i32, %c0_i32_0 : i32, i32, i32
  }
  func.func @transform_3(%arg0: i32) -> (i32, i32, i32) {
    %c0_i32 = arith.constant 0 : i32
    %c0_i32_0 = arith.constant 0 : i32
    %c0_i32_1 = arith.constant 0 : i32
    return %arg0, %c0_i32, %c0_i32_0 : i32, i32, i32
  }
}

module attributes {stable_mosaic.version = 11 : i64} {
  func.func @_mlp2_kernel(%arg0: i32, %arg1: memref<16x24xbf16, #tpu.memory_space<vmem>>, %arg2: memref<24x128xbf16, #tpu.memory_space<vmem>>, %arg3: memref<128x128xbf16, #tpu.memory_space<vmem>>, %arg4: memref<16x128xf32, #tpu.memory_space<vmem>>) attributes {dimension_semantics = [#tpu.dimension_semantics<parallel>], iteration_bounds = array<i64: 1>, scalar_prefetch = 0 : i64, scratch_operands = 0 : i64, tpu.core_type = #tpu.core_type<tc>, window_params = [{transform_indices = @transform_0, window_bounds = array<i64: 16, 24>}, {pipeline_mode = #tpu.pipeline_mode<synchronous>, transform_indices = @transform_1, window_bounds = array<i64: 24, 128>}, {pipeline_mode = #tpu.pipeline_mode<synchronous>, transform_indices = @transform_2, window_bounds = array<i64: 128, 128>}, {transform_indices = @transform_3, window_bounds = array<i64: 16, 128>}]} {
    %c0 = arith.constant 0 : index
    %c0_0 = arith.constant 0 : index
    %0 = vector.load %arg1[%c0, %c0_0] : memref<16x24xbf16, #tpu.memory_space<vmem>>, vector<16x24xbf16>
    %c0_1 = arith.constant 0 : index
    %c0_2 = arith.constant 0 : index
    %1 = vector.load %arg2[%c0_1, %c0_2] : memref<24x128xbf16, #tpu.memory_space<vmem>>, vector<24x128xbf16>
    %cst = arith.constant dense<0.000000e+00> : vector<16x128xf32>
    %2 = tpu.matmul %0, %1, %cst {dimension_numbers = #tpu.dot_dimension_numbers<[1], [0], [0], [1], [0, 0, 1, 1], [], []>} : vector<16x24xbf16>, vector<24x128xbf16>, vector<16x128xf32> -> vector<16x128xf32>
    %cst_3 = arith.constant 0.000000e+00 : f32
    %3 = vector.broadcast %cst_3 : f32 to vector<16x128xf32>
    %4 = arith.maximumf %2, %3 : vector<16x128xf32>
    %5 = arith.truncf %4 : vector<16x128xf32> to vector<16x128xbf16>
    %c0_4 = arith.constant 0 : index
    %c0_5 = arith.constant 0 : index
    %6 = vector.load %arg3[%c0_4, %c0_5] : memref<128x128xbf16, #tpu.memory_space<vmem>>, vector<128x128xbf16>
    %cst_6 = arith.constant dense<0.000000e+00> : vector<16x128xf32>
    %7 = tpu.matmul %5, %6, %cst_6 {dimension_numbers = #tpu.dot_dimension_numbers<[1], [0], [0], [1], [0, 0, 1, 1], [], []>} : vector<16x128xbf16>, vector<128x128xbf16>, vector<16x128xf32> -> vector<16x128xf32>
    %c0_7 = arith.constant 0 : index
    %c0_8 = arith.constant 0 : index
    %8 = vector.load %arg4[%c0_7, %c0_8] : memref<16x128xf32, #tpu.memory_space<vmem>>, vector<16x128xf32>
    tpu.vector_store %arg4[%c0_7, %c0_8], %7 {strides = array<i32>} : memref<16x128xf32, #tpu.memory_space<vmem>>, vector<16x128xf32>,
    return
  }
  func.func @transform_0(%arg0: i32) -> (i32, i32) {
    %c0_i32 = arith.constant 0 : i32
    %c0_i32_0 = arith.constant 0 : i32
    return %arg0, %c0_i32 : i32, i32
  }
  func.func @transform_1(%arg0: i32) -> (i32, i32) {
    %c0_i32 = arith.constant 0 : i32
    %c0_i32_0 = arith.constant 0 : i32
    %c0_i32_1 = arith.constant 0 : i32
    return %c0_i32, %c0_i32_0 : i32, i32
  }
  func.func @transform_2(%arg0: i32) -> (i32, i32) {
    %c0_i32 = arith.constant 0 : i32
    %c0_i32_0 = arith.constant 0 : i32
    %c0_i32_1 = arith.constant 0 : i32
    return %c0_i32, %c0_i32_0 : i32, i32
  }
  func.func @transform_3(%arg0: i32) -> (i32, i32) {
    %c0_i32 = arith.constant 0 : i32
    %c0_i32_0 = arith.constant 0 : i32
    return %arg0, %c0_i32 : i32, i32
  }
}

</mosaic_0001>

<bundles_post_ra>
// kernel: squeeze.10
= control target key start
LH: loop header
LB: loop body
LE: loop exit
PB: predicated region body
PF: predicated region fallthrough
CT: control target
= control target key end

     0   :  { %s40_s8 = smov 3  ;;  %s93_s9 = smov 80   ;;  %vm7_vm0 = vcmask 130048   ;;  %s135_s0 = inlined_call_operand.vmem [shape: f32[2,96], index: 0, kind: input, shape index: {}]   ;;  %s136_s1 = inlined_call_operand.vmem [shape: f32[2,3,2,16], index: 1, kind: output, shape index: {}]  }
   0x1   :  { %v4_v0 = vld [vmem:[%s135_s0] sm:$0x3]  ;;  %s24_s0 = smov 3  ;;  %s94_s10 = smov 112  }
   0x2   :  { %5 = vst [vmem:[#allocation1] sm:$0x3] %v4_v0  ;;  %s95_s11 = smov 48   ;;  %s32_s12 = smov 3 }
   0x3   :  { %s16_s13 = smov 3  ;;  %s96_s14 = smov 64  }
   0x4   :  { %s97_s15 = smov 96  }
   0x9   :  { %v25_v1 = vld [vmem:[#allocation1 + $0x1] ss:$-1 sm:%s24_s0]  }
   0xa   :  { %v9_v2 = vld [vmem:[#allocation1] sm:$0x3]   ;;  %26 = vrot.lane.b32.xlu1 %v25_v1, %s93_s9 }
   0xb   :  { %10 = vrot.lane.b32.xlu0 %v9_v2, %s94_s10  ;;  %v41_v3 = vld [vmem:[#allocation1 + $0x1] ss:$-1 sm:%s40_s8]  }
   0xc   :  { %42 = vrot.lane.b32.xlu2 %v41_v3, %s95_s11  ;;  %v33_v4 = vld [vmem:[#allocation1 + $0x1] ss:$-1 sm:%s32_s12]  }
   0xd   :  { %v17_v5 = vld [vmem:[#allocation1 + $0x1] ss:$-1 sm:%s16_s13]  }
   0xe   :  { %v6_v6 = vld [vmem:[#allocation1] sm:$0x3]  }
   0xf   :  { %8 = vst.msk [vmem:[#allocation0] ss:$24 sm:$0x3] %vm7_vm0, %v6_v6  }
  0x12   :  { %34 = vrot.lane.b32.xlu1 %v33_v4, %s96_s14 }
  0x13   :  { %18 = vrot.lane.b32.xlu0 %v17_v5, %s97_s15 }
  0x66   :  { %v43_v7 = vpop.permute.xlu2 %42  }
  0x67   :  { %46 = vst.msk [vmem:[#allocation0 + $0x29] ss:$-24 sm:$0x3] %vm7_vm0, %v43_v7  }
  0x7c   :  { %v27_v8 = vpop.permute.xlu1 %26  }
  0x7d   :  { %v11_v9 = vpop.permute.xlu0 %10   ;;  %30 = vst.msk [vmem:[#allocation0 + $0x21] ss:$-24 sm:$0x3] %vm7_vm0, %v27_v8  }
  0x7e   :  { %14 = vst.msk [vmem:[#allocation0 + $0x1] ss:$24 sm:$0x3] %vm7_vm0, %v11_v9  }
  0x84   :  { %v35_v10 = vpop.permute.xlu1 %34  }
  0x85   :  { %v19_v11 = vpop.permute.xlu0 %18   ;;  %v49_v12 = vld [vmem:[#allocation0] sm:$0x3]  ;;  %v66_v13 = vld [vmem:[#allocation0 + $0x18] sm:$0x3] }
  0x86   :  { %52 = vst [vmem:[%s136_s1] sm:$0x3] %v49_v12 }
  0x87   :  { %85 = vst [vmem:[%s136_s1 + $0x6] sm:$0x3] %v66_v13 }
  0x88   :  { %38 = vst.msk [vmem:[#allocation0 + $0x28] ss:$-24 sm:$0x3] %vm7_vm0, %v35_v10  }
  0x89   :  { %22 = vst.msk [vmem:[#allocation0 + $0x20] ss:$-24 sm:$0x3] %vm7_vm0, %v19_v11  }
  0x8f   :  { %v60_v14 = vld [vmem:[#allocation0 + $0x10] sm:$0x3]  ;;  %v78_v15 = vld [vmem:[#allocation0 + $0x28] sm:$0x3] }
  0x90   :  { %v54_v16 = vld [vmem:[#allocation0 + $0x8] sm:$0x3]  ;;  %84 = vst [vmem:[%s136_s1 + $0x4] sm:$0x3] %v60_v14  ;;  %v72_v17 = vld [vmem:[#allocation0 + $0x20] sm:$0x3] }
  0x91   :  { %83 = vst [vmem:[%s136_s1 + $0x2] sm:$0x3] %v54_v16 }
  0x92   :  { %86 = vst [vmem:[%s136_s1 + $0x8] sm:$0x3] %v72_v17 }
  0x93   :  { %87 = vst [vmem:[%s136_s1 + $0xa] sm:$0x3] %v78_v15 }

// kernel: meta_forward.4
= control target key start
LH: loop header
LB: loop body
LE: loop exit
PB: predicated region body
PF: predicated region fallthrough
CT: control target
= control target key end

     0   :  { %s981_s12 = smov 0   ;;  %s1188_s0 = inlined_call_operand.vmem [shape: bf16[384,24], index: 0, kind: input, shape index: {}]   ;;  %s1189_s1 = inlined_call_operand.vmem [shape: bf16[24,128], index: 1, kind: input, shape index: {}]   ;;  %s1190_s2 = inlined_call_operand.vmem [shape: bf16[128,256], index: 2, kind: input, shape index: {}]   ;;  %s1191_s3 = inlined_call_operand.vmem [shape: f32[384,256], index: 3, kind: output, shape index: {}]  }
   0x1 LB: > { %s759_s13 = sadd.s32 4294967295, %s959_s12   ;;  %p763_p0 = scmp.ge.s32.totalorder %s959_s12, 1  ;;  %s959_s12 = sphi %s981_s12, %s13_s12  }
   0x2   : > { %p138_p1 = scmp.lt.s32.totalorder %s959_s12, 3 }
   0x4   : > { %p139_p2 = pnand %p763_p0, %p138_p1 }
   0x5   : > { %s163_s16 = smul.u32 (!%p139_p2), 24, %s759_s13 }
   0x6   : > { %142 = sbr.rel (%p139_p2) target bundleno = 527 (0x20f), region = 32 }
   0x7   : > { %p164_p3 = scmp.lt.s32.totalorder (!%p139_p2), %s163_s16, 47 }
   0xb   : > { %v203_v0 = vld [vmem:[%s1189_s1 + $0x8] sm:$0xf]  ;;  %vm310_vm0 = vcmask 1043456   ;;  %s1193_s16 = smov (!%p164_p3, %s163_s16), 47  ;;  %v910_v4 = vld [vmem:[%s1189_s1] sm:$0xff]  ;;  %vm273_vm1 = vcmask 195584  }
   0xc   : > { %v269_v1 = vunpack.c.l.b16 %v203_v0  ;;  %s764_s19 = sshll.u32 %s1193_s16, 2  ;;  %v889_v10 = vld [vmem:[%s1190_s2 + $0x70] sm:$0xf]  ;;  %v926_v11 = vld [vmem:[%s1190_s2 + $0x74] sm:$0xf0] }
   0xd   : > { %s1001_s22 = scalar_lea.vmem %s1188_s0, %s764_s19  ;;  %v925_v12 = vld [vmem:[%s1190_s2 + $0x74] sm:$0xf]  ;;  %v890_v13 = vor.u32 %v926_v11, %v889_v10  ;;  %v891_v14 = vld [vmem:[%s1190_s2 + $0x78] sm:$0xf0]  ;;  %v881_v15 = vld [vmem:[%s1190_s2 + $0x60] sm:$0xf] }
   0xe   : > { %v271_v2 = vpack.c.b16 %v269_v1, %v269_v1  ;;  %v898_v5 = vld [vmem:[%s1001_s22] sm:$0xff]  ;;  %v899_v6 = vld [vmem:[%s1001_s22 + $0x8] sm:$0xff]  ;;  %v900_v7 = vld [vmem:[%s1001_s22 + $0x10] sm:$0xff]  ;;  %v1031_v17 = vor.u32 %v925_v12, %v891_v14 }
   0xf   : > { %v901_v8 = vld [vmem:[%s1001_s22 + $0x18] sm:$0xff]  ;;  %v902_v9 = vld [vmem:[%s1001_s22 + $0x20] sm:$0xff]  ;;  %v924_v16 = vld [vmem:[%s1190_s2 + $0x64] sm:$0xf0]  ;;  %515 = vmatpush.bf16.msra.mxu1 %v890_v13 }
  0x10   : > { %v312_v3 = vsel %vm310_vm0, %v271_v2, 0  ;;  %v923_v18 = vld [vmem:[%s1190_s2 + $0x64] sm:$0xf]  ;;  %v883_v19 = vld [vmem:[%s1190_s2 + $0x68] sm:$0xf0]  ;;  %v882_v20 = vor.u32 %v924_v16, %v881_v15  ;;  %584 = vmatpush.bf16.msra.mxu2 %v1031_v17  ;;  %v904_v41 = vld [vmem:[%s1001_s22 + $0x30] sm:$0xff] }
  0x11   : > { %320 = vmatpush.bf16.msra.mxu0 %v312_v3  ;;  %927 = vmatpush.bf16.msra.mxu3 %v312_v3  ;;  %v1040_v21 = vor.u32 %v923_v18, %v883_v19  ;;  %v903_v22 = vld [vmem:[%s1001_s22 + $0x28] sm:$0xff]  ;;  %v873_v23 = vld [vmem:[%s1190_s2 + $0x50] sm:$0xf]  ;;  %v922_v24 = vld [vmem:[%s1190_s2 + $0x54] sm:$0xf0] }
  0x12   : > { %v921_v25 = vld [vmem:[%s1190_s2 + $0x54] sm:$0xf]  ;;  %v874_v26 = vor.u32 %v922_v24, %v873_v23  ;;  %v875_v27 = vld [vmem:[%s1190_s2 + $0x58] sm:$0xf0]  ;;  %v865_v28 = vld [vmem:[%s1190_s2 + $0x40] sm:$0xf] }
  0x13   : > { %516 = vmatpush.bf16.msra.mxu1 %v882_v20  ;;  %v920_v29 = vld [vmem:[%s1190_s2 + $0x44] sm:$0xf0]  ;;  %v878_v30 = vor.u32 %v921_v25, %v875_v27  ;;  %v919_v31 = vld [vmem:[%s1190_s2 + $0x44] sm:$0xf]  ;;  %v867_v32 = vld [vmem:[%s1190_s2 + $0x48] sm:$0xf0] }
  0x14   : > { %585 = vmatpush.bf16.msra.mxu2 %v1040_v21  ;;  %v866_v33 = vor.u32 %v920_v29, %v865_v28  ;;  %v870_v34 = vor.u32 %v919_v31, %v867_v32  ;;  %v857_v35 = vld [vmem:[%s1190_s2 + $0x30] sm:$0xf]  ;;  %v918_v36 = vld [vmem:[%s1190_s2 + $0x34] sm:$0xf0]  ;;  %v917_v37 = vld [vmem:[%s1190_s2 + $0x34] sm:$0xf] }
  0x15   : > { %321 = vmatpush.bf16.msra.mxu0 %v910_v4  ;;  %928 = vmatpush.bf16.msra.mxu3 %v910_v4  ;;  %v859_v38 = vld [vmem:[%s1190_s2 + $0x38] sm:$0xf0]  ;;  %v858_v39 = vor.u32 %v918_v36, %v857_v35  ;;  %v849_v42 = vld [vmem:[%s1190_s2 + $0x20] sm:$0xf]  ;;  %v916_v43 = vld [vmem:[%s1190_s2 + $0x24] sm:$0xf0] }
  0x16   : > { %v862_v40 = vor.u32 %v917_v37, %v859_v38  ;;  %v915_v44 = vld [vmem:[%s1190_s2 + $0x24] sm:$0xf]  ;;  %v850_v45 = vor.u32 %v916_v43, %v849_v42  ;;  %v851_v46 = vld [vmem:[%s1190_s2 + $0x28] sm:$0xf0]  ;;  %v841_v48 = vld [vmem:[%s1190_s2 + $0x10] sm:$0xf] }
  0x17   : > { %517 = vmatpush.bf16.msra.mxu1 %v874_v26  ;;  %v854_v47 = vor.u32 %v915_v44, %v851_v46  ;;  %v914_v49 = vld [vmem:[%s1190_s2 + $0x14] sm:$0xf0]  ;;  %v913_v50 = vld [vmem:[%s1190_s2 + $0x14] sm:$0xf]  ;;  %v843_v52 = vld [vmem:[%s1190_s2 + $0x18] sm:$0xf0] }
  0x18   : > { %819 = vmatmul.msk.bf16.vlgmr.msra.gmra.mxu0 %vm273_vm1, %v898_v5  ;;  %586 = vmatpush.bf16.msra.mxu2 %v878_v30  ;;  %v842_v51 = vor.u32 %v914_v49, %v841_v48  ;;  %v846_v53 = vor.u32 %v913_v50, %v843_v52  ;;  %v833_v54 = vld [vmem:[%s1190_s2] sm:$0xf]  ;;  %v912_v55 = vld [vmem:[%s1190_s2 + $0x4] sm:$0xf0]  ;;  %v911_v56 = vld [vmem:[%s1190_s2 + $0x4] sm:$0xf] }
  0x19   : > { %929 = vmatpush.bf16.msrb.mxu3 %v890_v13  ;;  %v834_v57 = vor.u32 %v912_v55, %v833_v54  ;;  %v835_v58 = vld [vmem:[%s1190_s2 + $0x8] sm:$0xf0]  ;;  %v905_v60 = vld [vmem:[%s1001_s22 + $0x38] sm:$0xff]  ;;  %v908_v61 = vld [vmem:[%s1001_s22 + $0x50] sm:$0xff] }
  0x1a   : > { %v838_v59 = vor.u32 %v911_v56, %v835_v58  ;;  %829 = vmatmul.msk.bf16.vlgmr.msra.gmra.mxu3 %vm273_vm1, %v908_v61  ;;  %v906_v62 = vld [vmem:[%s1001_s22 + $0x40] sm:$0xff]  ;;  %v909_v0 = vld [vmem:[%s1001_s22 + $0x58] sm:$0xff]  ;;  %v907_v5 = vld [vmem:[%s1001_s22 + $0x48] sm:$0xff]  ;;  %s897_s22 = sshll.u32 %s1193_s16, 4 }
  0x1b   : > { %518 = vmatpush.bf16.msra.mxu1 %v866_v33  ;;  %s1135_s15 = scalar_lea.vmem %s1191_s3, %s897_s22 }
  0x1c   : > { %587 = vmatpush.bf16.msra.mxu2 %v870_v34 }
  0x1d   : > { %930 = vmatpush.bf16.msrb.mxu3 %v882_v20 }
  0x1f   : > { %519 = vmatpush.bf16.msra.mxu1 %v858_v39 }
  0x20   : > { %588 = vmatpush.bf16.msra.mxu2 %v862_v40 }
  0x21   : > { %931 = vmatpush.bf16.msrb.mxu3 %v874_v26 }
  0x23   : > { %520 = vmatpush.bf16.msra.mxu1 %v850_v45 }
  0x24   : > { %589 = vmatpush.bf16.msra.mxu2 %v854_v47 }
  0x25   : > { %932 = vmatpush.bf16.msrb.mxu3 %v866_v33 }
  0x27   : > { %521 = vmatpush.bf16.msra.mxu1 %v842_v51 }
  0x28   : > { %820 = vmatmul.msk.bf16.gmra.mxu0 %vm273_vm1, %v899_v6  ;;  %590 = vmatpush.bf16.msra.mxu2 %v846_v53 }
  0x29   : > { %933 = vmatpush.bf16.msrb.mxu3 %v858_v39 }
  0x2a   : > { %830 = vmatmul.msk.bf16.gmra.mxu3 %vm273_vm1, %v909_v0 }
  0x2b   : > { %522 = vmatpush.bf16.msra.mxu1 %v834_v57 }
  0x2c   : > { %591 = vmatpush.bf16.msra.mxu2 %v838_v59 }
  0x2d   : > { %934 = vmatpush.bf16.msrb.mxu3 %v850_v45 }
  0x31   : > { %935 = vmatpush.bf16.msrb.mxu3 %v842_v51 }
  0x35   : > { %936 = vmatpush.bf16.msrb.mxu3 %v834_v57 }
  0x38   : > { %821 = vmatmul.msk.bf16.gmra.mxu0 %vm273_vm1, %v900_v7 }
  0x39   : > { %937 = vmatpush.bf16.msra.mxu3 %v1031_v17 }
  0x3d   : > { %938 = vmatpush.bf16.msra.mxu3 %v1040_v21 }
  0x41   : > { %939 = vmatpush.bf16.msra.mxu3 %v878_v30 }
  0x45   : > { %940 = vmatpush.bf16.msra.mxu3 %v870_v34 }
  0x48   : > { %822 = vmatmul.msk.bf16.gmra.mxu0 %vm273_vm1, %v901_v8 }
  0x49   : > { %941 = vmatpush.bf16.msra.mxu3 %v862_v40 }
  0x4d   : > { %942 = vmatpush.bf16.msra.mxu3 %v854_v47 }
  0x51   : > { %943 = vmatpush.bf16.msra.mxu3 %v846_v53 }
  0x55   : > { %944 = vmatpush.bf16.msra.mxu3 %v838_v59 }
  0x58   : > { %823 = vmatmul.msk.bf16.gmra.mxu0 %vm273_vm1, %v902_v9 }
  0x68   : > { %824 = vmatmul.msk.bf16.gmra.mxu0 %vm273_vm1, %v903_v22 }
  0x78   : > { %825 = vmatmul.msk.bf16.gmra.mxu0 %vm273_vm1, %v904_v41 }
  0x88   : > { %826 = vmatmul.msk.bf16.gmra.mxu0 %vm273_vm1, %v905_v60 }
  0x95   : > { %v323_v63 = vpop.f32.mrf.mxu0 }
  0x96   : > { %v383_v2 = vmax.f32 %v323_v63, 0.0 }
  0x98   : > { %827 = vmatmul.msk.bf16.gmra.mxu0 %vm273_vm1, %v906_v62 }
  0x9d   : > { %v325_v1 = vpop.f32.mrf.mxu0  ;;  %v373_v50 = vpop.f32.mrf.mxu3 }
  0x9e   : > { %v384_v3 = vmax.f32 %v325_v1, 0.0  ;;  %v403_v60 = vmax.f32 %v373_v50, 0.0 }
  0xa0   : > { %v407_v4 = vpack.c.bf16 %v384_v3, %v383_v2 }
  0xa2   : > { %523 = vmatmul.bf16.vlgmr.msra.gmra.mxu1 %v407_v4  ;;  %592 = vmatmul.bf16.vlgmr.msra.gmra.mxu2 %v407_v4 }
  0xa5   : > { %v328_v6 = vpop.f32.mrf.mxu0  ;;  %v375_v57 = vpop.f32.mrf.mxu3 }
  0xa6   : > { %v385_v8 = vmax.f32 %v328_v6, 0.0  ;;  %v404_v61 = vmax.f32 %v375_v57, 0.0 }
  0xa8   : > { %828 = vmatmul.msk.bf16.gmra.mxu0 %vm273_vm1, %v907_v5  ;;  %v417_v1 = vpack.c.bf16 %v404_v61, %v403_v60 }
  0xad   : > { %v330_v7 = vpop.f32.mrf.mxu0  ;;  %v378_v63 = vpop.f32.mrf.mxu3 }
  0xae   : > { %v386_v9 = vmax.f32 %v330_v7, 0.0  ;;  %v405_v5 = vmax.f32 %v378_v63, 0.0 }
  0xb0   : > { %v408_v10 = vpack.c.bf16 %v386_v9, %v385_v8 }
  0xb2   : > { %528 = vmatmul.bf16.gmra.mxu1 %v408_v10  ;;  %597 = vmatmul.bf16.gmra.mxu2 %v408_v10 }
  0xb5   : > { %v333_v11 = vpop.f32.mrf.mxu0  ;;  %v380_v4 = vpop.f32.mrf.mxu3 }
  0xb6   : > { %v387_v13 = vmax.f32 %v333_v11, 0.0  ;;  %v406_v6 = vmax.f32 %v380_v4, 0.0 }
  0xb8   : > { %v418_v9 = vpack.c.bf16 %v406_v6, %v405_v5 }
  0xbd   : > { %v335_v12 = vpop.f32.mrf.mxu0 }
  0xbe   : > { %v388_v14 = vmax.f32 %v335_v12, 0.0 }
  0xc0   : > { %v409_v15 = vpack.c.bf16 %v388_v14, %v387_v13 }
  0xc2   : > { %533 = vmatmul.bf16.gmra.mxu1 %v409_v15  ;;  %602 = vmatmul.bf16.gmra.mxu2 %v409_v15 }
  0xc5   : > { %v338_v16 = vpop.f32.mrf.mxu0 }
  0xc6   : > { %v389_v18 = vmax.f32 %v338_v16, 0.0 }
  0xcd   : > { %v340_v17 = vpop.f32.mrf.mxu0 }
  0xce   : > { %v390_v19 = vmax.f32 %v340_v17, 0.0 }
  0xd0   : > { %v410_v20 = vpack.c.bf16 %v390_v19, %v389_v18 }
  0xd2   : > { %538 = vmatmul.bf16.gmra.mxu1 %v410_v20  ;;  %607 = vmatmul.bf16.gmra.mxu2 %v410_v20 }
  0xd5   : > { %v343_v21 = vpop.f32.mrf.mxu0 }
  0xd6   : > { %v391_v23 = vmax.f32 %v343_v21, 0.0 }
  0xdd   : > { %v345_v22 = vpop.f32.mrf.mxu0 }
  0xde   : > { %v392_v24 = vmax.f32 %v345_v22, 0.0 }
  0xe0   : > { %v411_v25 = vpack.c.bf16 %v392_v24, %v391_v23 }
  0xe2   : > { %543 = vmatmul.bf16.gmra.mxu1 %v411_v25  ;;  %612 = vmatmul.bf16.gmra.mxu2 %v411_v25 }
  0xe5   : > { %v348_v26 = vpop.f32.mrf.mxu0 }
  0xe6   : > { %v393_v28 = vmax.f32 %v348_v26, 0.0 }
  0xed   : > { %v350_v27 = vpop.f32.mrf.mxu0 }
  0xee   : > { %v394_v29 = vmax.f32 %v350_v27, 0.0 }
  0xf0   : > { %v412_v30 = vpack.c.bf16 %v394_v29, %v393_v28 }
  0xf2   : > { %548 = vmatmul.bf16.gmra.mxu1 %v412_v30  ;;  %617 = vmatmul.bf16.gmra.mxu2 %v412_v30 }
  0xf5   : > { %v353_v31 = vpop.f32.mrf.mxu0 }
  0xf6   : > { %v395_v33 = vmax.f32 %v353_v31, 0.0 }
  0xfd   : > { %v355_v32 = vpop.f32.mrf.mxu0 }
  0xfe   : > { %v396_v34 = vmax.f32 %v355_v32, 0.0 }
 0x100   : > { %v413_v35 = vpack.c.bf16 %v396_v34, %v395_v33 }
 0x102   : > { %553 = vmatmul.bf16.gmra.mxu1 %v413_v35  ;;  %622 = vmatmul.bf16.gmra.mxu2 %v413_v35 }
 0x105   : > { %v358_v36 = vpop.f32.mrf.mxu0 }
 0x106   : > { %v397_v38 = vmax.f32 %v358_v36, 0.0 }
 0x10d   : > { %v360_v37 = vpop.f32.mrf.mxu0 }
 0x10e   : > { %v398_v39 = vmax.f32 %v360_v37, 0.0 }
 0x110   : > { %v414_v40 = vpack.c.bf16 %v398_v39, %v397_v38 }
 0x112   : > { %558 = vmatmul.bf16.gmra.mxu1 %v414_v40  ;;  %627 = vmatmul.bf16.gmra.mxu2 %v414_v40 }
 0x115   : > { %v363_v41 = vpop.f32.mrf.mxu0 }
 0x116   : > { %v399_v43 = vmax.f32 %v363_v41, 0.0 }
 0x11d   : > { %v365_v42 = vpop.f32.mrf.mxu0 }
 0x11e   : > { %v400_v44 = vmax.f32 %v365_v42, 0.0 }
 0x11f   : > { %v524_v45 = vpop.f32.mrf.mxu1 }
 0x120   : > { %653 = vst [vmem:[%s1135_s15] sm:$0xff] %v524_v45  ;;  %v415_v46 = vpack.c.bf16 %v400_v44, %v399_v43 }
 0x122   : > { %563 = vmatmul.bf16.gmra.mxu1 %v415_v46  ;;  %632 = vmatmul.bf16.gmra.mxu2 %v415_v46 }
 0x125   : > { %v368_v47 = vpop.f32.mrf.mxu0  ;;  %v593_v48 = vpop.f32.mrf.mxu2 }
 0x126   : > { %654 = vst [vmem:[%s1135_s15 + $0x8] sm:$0xff] %v593_v48  ;;  %v401_v53 = vmax.f32 %v368_v47, 0.0 }
 0x127   : > { %v526_v49 = vpop.f32.mrf.mxu1 }
 0x128   : > { %655 = vst [vmem:[%s1135_s15 + $0x10] sm:$0xff] %v526_v49 }
 0x12d   : > { %v370_v51 = vpop.f32.mrf.mxu0  ;;  %v595_v52 = vpop.f32.mrf.mxu2 }
 0x12e   : > { %v402_v54 = vmax.f32 %v370_v51, 0.0  ;;  %656 = vst [vmem:[%s1135_s15 + $0x18] sm:$0xff] %v595_v52 }
 0x12f   : > { %v529_v55 = vpop.f32.mrf.mxu1 }
 0x130   : > { %v416_v56 = vpack.c.bf16 %v402_v54, %v401_v53  ;;  %657 = vst [vmem:[%s1135_s15 + $0x20] sm:$0xff] %v529_v55 }
 0x132   : > { %568 = vmatmul.bf16.vlgmr.msrb.gmra.mxu3 %v416_v56 }
 0x135   : > { %v598_v58 = vpop.f32.mrf.mxu2 }
 0x136   : > { %658 = vst [vmem:[%s1135_s15 + $0x28] sm:$0xff] %v598_v58 }
 0x137   : > { %v531_v59 = vpop.f32.mrf.mxu1 }
 0x138   : > { %659 = vst [vmem:[%s1135_s15 + $0x30] sm:$0xff] %v531_v59 }
 0x13d   : > { %v600_v62 = vpop.f32.mrf.mxu2 }
 0x13e   : > { %660 = vst [vmem:[%s1135_s15 + $0x38] sm:$0xff] %v600_v62 }
 0x13f   : > { %v534_v0 = vpop.f32.mrf.mxu1 }
 0x140   : > { %661 = vst [vmem:[%s1135_s15 + $0x40] sm:$0xff] %v534_v0 }
 0x142   : > { %573 = vmatmul.bf16.gmra.mxu3 %v417_v1 }
 0x145   : > { %v603_v2 = vpop.f32.mrf.mxu2 }
 0x146   : > { %662 = vst [vmem:[%s1135_s15 + $0x48] sm:$0xff] %v603_v2 }
 0x147   : > { %v536_v3 = vpop.f32.mrf.mxu1 }
 0x148   : > { %663 = vst [vmem:[%s1135_s15 + $0x50] sm:$0xff] %v536_v3 }
 0x14d   : > { %v605_v7 = vpop.f32.mrf.mxu2 }
 0x14e   : > { %664 = vst [vmem:[%s1135_s15 + $0x58] sm:$0xff] %v605_v7 }
 0x14f   : > { %v539_v8 = vpop.f32.mrf.mxu1 }
 0x150   : > { %665 = vst [vmem:[%s1135_s15 + $0x60] sm:$0xff] %v539_v8 }
 0x152   : > { %578 = vmatmul.bf16.gmra.mxu3 %v418_v9 }
 0x155   : > { %v608_v10 = vpop.f32.mrf.mxu2 }
 0x156   : > { %666 = vst [vmem:[%s1135_s15 + $0x68] sm:$0xff] %v608_v10 }
 0x157   : > { %v541_v11 = vpop.f32.mrf.mxu1 }
 0x158   : > { %667 = vst [vmem:[%s1135_s15 + $0x70] sm:$0xff] %v541_v11 }
 0x15d   : > { %v610_v12 = vpop.f32.mrf.mxu2 }
 0x15e   : > { %668 = vst [vmem:[%s1135_s15 + $0x78] sm:$0xff] %v610_v12 }
 0x15f   : > { %v544_v13 = vpop.f32.mrf.mxu1 }
 0x160   : > { %669 = vst [vmem:[%s1135_s15 + $0x80] sm:$0xff] %v544_v13 }
 0x162   : > { %637 = vmatmul.bf16.vlgmr.msra.gmra.mxu3 %v416_v56 }
 0x165   : > { %v613_v14 = vpop.f32.mrf.mxu2 }
 0x166   : > { %670 = vst [vmem:[%s1135_s15 + $0x88] sm:$0xff] %v613_v14 }
 0x167   : > { %v546_v15 = vpop.f32.mrf.mxu1 }
 0x168   : > { %671 = vst [vmem:[%s1135_s15 + $0x90] sm:$0xff] %v546_v15 }
 0x16d   : > { %v615_v16 = vpop.f32.mrf.mxu2 }
 0x16e   : > { %672 = vst [vmem:[%s1135_s15 + $0x98] sm:$0xff] %v615_v16 }
 0x16f   : > { %v549_v17 = vpop.f32.mrf.mxu1 }
 0x170   : > { %673 = vst [vmem:[%s1135_s15 + $0xa0] sm:$0xff] %v549_v17 }
 0x172   : > { %642 = vmatmul.bf16.gmra.mxu3 %v417_v1 }
 0x175   : > { %v618_v18 = vpop.f32.mrf.mxu2 }
 0x176   : > { %674 = vst [vmem:[%s1135_s15 + $0xa8] sm:$0xff] %v618_v18 }
 0x177   : > { %v551_v19 = vpop.f32.mrf.mxu1 }
 0x178   : > { %675 = vst [vmem:[%s1135_s15 + $0xb0] sm:$0xff] %v551_v19 }
 0x17d   : > { %v620_v20 = vpop.f32.mrf.mxu2 }
 0x17e   : > { %676 = vst [vmem:[%s1135_s15 + $0xb8] sm:$0xff] %v620_v20 }
 0x17f   : > { %v554_v21 = vpop.f32.mrf.mxu1 }
 0x180   : > { %677 = vst [vmem:[%s1135_s15 + $0xc0] sm:$0xff] %v554_v21 }
 0x182   : > { %647 = vmatmul.bf16.gmra.mxu3 %v418_v9 }
 0x185   : > { %v623_v22 = vpop.f32.mrf.mxu2 }
 0x186   : > { %678 = vst [vmem:[%s1135_s15 + $0xc8] sm:$0xff] %v623_v22 }
 0x187   : > { %v556_v23 = vpop.f32.mrf.mxu1 }
 0x188   : > { %679 = vst [vmem:[%s1135_s15 + $0xd0] sm:$0xff] %v556_v23 }
 0x18d   : > { %v625_v24 = vpop.f32.mrf.mxu2 }
 0x18e   : > { %680 = vst [vmem:[%s1135_s15 + $0xd8] sm:$0xff] %v625_v24 }
 0x18f   : > { %v559_v25 = vpop.f32.mrf.mxu1 }
 0x190   : > { %681 = vst [vmem:[%s1135_s15 + $0xe0] sm:$0xff] %v559_v25 }
 0x195   : > { %v628_v26 = vpop.f32.mrf.mxu2 }
 0x196   : > { %682 = vst [vmem:[%s1135_s15 + $0xe8] sm:$0xff] %v628_v26 }
 0x197   : > { %v561_v27 = vpop.f32.mrf.mxu1 }
 0x198   : > { %683 = vst [vmem:[%s1135_s15 + $0xf0] sm:$0xff] %v561_v27 }
 0x19d   : > { %v630_v28 = vpop.f32.mrf.mxu2 }
 0x19e   : > { %684 = vst [vmem:[%s1135_s15 + $0xf8] sm:$0xff] %v630_v28 }
 0x19f   : > { %v564_v29 = vpop.f32.mrf.mxu1 }
 0x1a0   : > { %685 = vst [vmem:[%s1135_s15 + $0x100] sm:$0xff] %v564_v29 }
 0x1a5   : > { %v633_v30 = vpop.f32.mrf.mxu2 }
 0x1a6   : > { %686 = vst [vmem:[%s1135_s15 + $0x108] sm:$0xff] %v633_v30 }
 0x1a7   : > { %v566_v31 = vpop.f32.mrf.mxu1 }
 0x1a8   : > { %687 = vst [vmem:[%s1135_s15 + $0x110] sm:$0xff] %v566_v31 }
 0x1ad   : > { %v635_v32 = vpop.f32.mrf.mxu2 }
 0x1ae   : > { %688 = vst [vmem:[%s1135_s15 + $0x118] sm:$0xff] %v635_v32 }
 0x1b5   : > { %v569_v33 = vpop.f32.mrf.mxu3 }
 0x1b6   : > { %689 = vst [vmem:[%s1135_s15 + $0x120] sm:$0xff] %v569_v33 }
 0x1bd   : > { %v571_v34 = vpop.f32.mrf.mxu3 }
 0x1be   : > { %691 = vst [vmem:[%s1135_s15 + $0x130] sm:$0xff] %v571_v34 }
 0x1c5   : > { %v574_v35 = vpop.f32.mrf.mxu3 }
 0x1c6   : > { %693 = vst [vmem:[%s1135_s15 + $0x140] sm:$0xff] %v574_v35 }
 0x1cd   : > { %v576_v36 = vpop.f32.mrf.mxu3 }
 0x1ce   : > { %695 = vst [vmem:[%s1135_s15 + $0x150] sm:$0xff] %v576_v36 }
 0x1d5   : > { %v579_v37 = vpop.f32.mrf.mxu3 }
 0x1d6   : > { %697 = vst [vmem:[%s1135_s15 + $0x160] sm:$0xff] %v579_v37 }
 0x1dd   : > { %v581_v38 = vpop.f32.mrf.mxu3 }
 0x1de   : > { %699 = vst [vmem:[%s1135_s15 + $0x170] sm:$0xff] %v581_v38 }
 0x1e5   : > { %v638_v39 = vpop.f32.mrf.mxu3 }
 0x1e6   : > { %690 = vst [vmem:[%s1135_s15 + $0x128] sm:$0xff] %v638_v39 }
 0x1ed   : > { %v640_v40 = vpop.f32.mrf.mxu3 }
 0x1ee   : > { %692 = vst [vmem:[%s1135_s15 + $0x138] sm:$0xff] %v640_v40 }
 0x1f5   : > { %v643_v41 = vpop.f32.mrf.mxu3 }
 0x1f6   : > { %694 = vst [vmem:[%s1135_s15 + $0x148] sm:$0xff] %v643_v41 }
 0x1fd   : > { %v645_v42 = vpop.f32.mrf.mxu3 }
 0x1fe   : > { %696 = vst [vmem:[%s1135_s15 + $0x158] sm:$0xff] %v645_v42 }
 0x205   : > { %v648_v43 = vpop.f32.mrf.mxu3 }
 0x206   : > { %698 = vst [vmem:[%s1135_s15 + $0x168] sm:$0xff] %v648_v43 }
 0x20d   : > { %v650_v44 = vpop.f32.mrf.mxu3 }
 0x20e   : > { %700 = vst [vmem:[%s1135_s15 + $0x178] sm:$0xff] %v650_v44 }
 0x20f PF: > { %s13_s12 = sadd.s32 1, %s959_s12  }
 0x210   : > { %p10_p4 = scmp.ge.s32.totalorder %s13_s12, 4  }
 0x212   :  { %12 = sbr.rel (!%p10_p4) target bundleno = 1 (0x1), region = 62 }

// kernel: meta_forward.6
= control target key start
LH: loop header
LB: loop body
LE: loop exit
PB: predicated region body
PF: predicated region fallthrough
CT: control target
= control target key end

     0   :  { %9 = vsyncpa [#allocation3], 0  ;;  %s2020_s0 = inlined_call_operand.vmem [shape: f32[2,256,96], index: 0, kind: input, shape index: {}]   ;;  %s2021_s1 = inlined_call_operand.vmem [shape: s32[2,1,96], index: 1, kind: input, shape index: {}]   ;;  %s2022_s2 = inlined_call_operand.vmem [shape: f32[2,1,128], index: 2, kind: output, shape index: {0}]   ;;  %s2023_s3 = inlined_call_operand.hbm [shape: f32[2,1,128], index: 3, kind: output, shape index: {1}]  }
   0x1   :  { %11 = vsyncpa [#allocation3 + $0x1], 0  ;;  %s1480_s12 = smov 0   ;;  %s1482_s13 = smov 0  }
   0x2   :  { %s1484_s14 = smov 0   ;;  %s1486_s15 = smov 0  }
   0x3 LB: > { %s1501_s16 = sadd.s32 4294967295, %s1455_s15   ;;  %s1262_s17 = sadd.s32 4294967294, %s1455_s15   ;;  %s1455_s15 = sphi %s1486_s15, %s2029_s15   ;;  %s1451_s14 = sphi %s1484_s14, %s2028_s14   ;;  %s1447_s13 = sphi %s1482_s13, %s2027_s13   ;;  %s1443_s12 = sphi %s1480_s12, %s2026_s12  }
   0x4   : > { %s1505_s18 = sadd.s32 1, %s1455_s15   ;;  %s102_s19 = sadd.s32 1, %s1451_s14 }
   0x5   : > { %s99_s20 = ssub.s32 %s1455_s15, %s1505_s18  ;;  %p112_p0 = scmp.ne.s32.totalorder %s1451_s14, %s1447_s13 }
   0x6   : > { %p100_p1 = scmp.eq.s32.totalorder %s99_s20, 0  ;;  %p113_p2 = scmp.eq.s32.totalorder %s1501_s16, 1 }
   0x7   : > { %p118_p3 = scmp.ne.s32.totalorder %s1447_s13, %s1443_s12  ;;  %p119_p4 = scmp.eq.s32.totalorder %s1262_s17, 1 }
   0x8   : > { %s1516_s21 = scalar_select %p100_p1, %s1451_s14, %s102_s19  }
   0x9   : > { %p1518_p5 = por %p113_p2, %p112_p0  ;;  %p1522_p6 = por %p119_p4, %p118_p3 }
   0xa   : > { %p1265_p7 = scmp.ge.s32.totalorder %s1455_s15, 1  ;;  %p151_p8 = scmp.lt.s32.totalorder %s1455_s15, 3 }
   0xc   : > { %p152_p9 = pnand %p1265_p7, %p151_p8 }
   0xd   : > { %p180_p10 = scmp.lt.s32.totalorder (!%p152_p9), %s1501_s16, 1  ;;  %s178_s8 = sand.u32 (!%p152_p9), 1, %s1447_s13  }
   0xe   : > { %155 = sbr.rel (%p152_p9) target bundleno = 678 (0x2a6), region = 28  ;;  %s1175_s11 = scalar_lea.hbm (!%p152_p9), %s2023_s3, %s1501_s16 }
   0xf   : > { %s179_s17 = scalar_lea.vmem (!%p152_p9), [#allocation2], %s178_s8  ;;  %s1179_s20 = sshll.u32 (!%p152_p9), %s1175_s11, 4  ;;  %s1180_s20 = int_to_ptr.hbm [resolvable:$true] %s1179_s20 }
  0x10   : > { %s1177_s19 = sshll.u32 (!%p152_p9), %s179_s17, 4  ;;  %s1178_s19 = int_to_ptr.vmem [resolvable:$true] %s1177_s19 }
  0x13   : > { %v224_v0 = vlaneseq  ;;  %s1530_s24 = scalar_select %p180_p10, %s1501_s16, 1  ;;  %vm230_vm0 = vcmask 785408   ;;  %v1457_v3 = vmov 0.0   ;;  %v1458_v7 = vmov 1.0  }
  0x14   : > { %vm746_vm2 = vcmask 1042432   ;;  %vm649_vm7 = vcmask 23552  }
  0x15   : > { %v225_v1 = vshrl.u32 %v224_v0, 7  ;;  %s1339_s25 = sshll.u32 %s1530_s24, 8  ;;  %s187_s28 = scalar_lea.vmem %s2021_s1, %s1530_s24 }
  0x16   : > { %v1384_v2 = vld [vmem:[%s187_s28] ss:$0 sm:$0xff]  ;;  %s1541_s4 = scalar_lea.vmem %s2020_s0, %s1339_s25  ;;  %s190_s7 = scalar_lea.vmem %s2022_s2, %s1530_s24 }
  0x17   : > { %vm227_vm1 = vcmp.eq.s32.totalorder %v225_v1, %v1384_v2  ;;  %v1550_v5 = vld [vmem:[%s1541_s4] sm:$0xff]  ;;  %v1553_v6 = vld [vmem:[%s1541_s4 + $0x88] sm:$0xff]  ;;  %v1566_v9 = vld [vmem:[%s1541_s4 + $0x90] sm:$0xff]  ;;  %s1164_s24 = scalar_lea.sflag [#allocation3], %s178_s8  ;;  %s1407_s25 = sshra.s32 %s1180_s20, 4  ;;  %s1408_s25 = int_to_ptr.hbm [resolvable:$true] %s1407_s25 }
  0x18   : > { %v1543_v4 = vsel %vm227_vm1, 1.0, %v1457_v3  ;;  %v1563_v8 = vld [vmem:[%s1541_s4 + $0x8] sm:$0xff]  ;;  %v1573_v10 = vld [vmem:[%s1541_s4 + $0x10] sm:$0xff]  ;;  %v1576_v11 = vld [vmem:[%s1541_s4 + $0x98] sm:$0xff]  ;;  %v231_v40 = vsel %vm230_vm0, %v1550_v5, 0.0  ;;  %s1409_s26 = scalar_lea.hbm %s1408_s25, 1  ;;  %p1414_p0 = scmp.lt.s32.totalorder %s1408_s25, %s2023_s3 }
  0x19   : > { %1269 = vmatpush.xpose.msk.msra.mxu0 %vm230_vm0, %v1543_v4  ;;  %1340 = vmatpush.xpose.msk.msra.mxu3 %vm230_vm0, %v1543_v4  ;;  %v1583_v12 = vld [vmem:[%s1541_s4 + $0x18] sm:$0xff]  ;;  %v1586_v13 = vld [vmem:[%s1541_s4 + $0xa0] sm:$0xff]  ;;  %v1596_v15 = vld [vmem:[%s1541_s4 + $0xa8] sm:$0xff]  ;;  %v234_v44 = vsel %vm230_vm0, %v1563_v8, 0.0  ;;  %v237_v50 = vsel %vm230_vm0, %v1573_v10, 0.0  ;;  %p1410_p11 = scmp.ne.s32.totalorder %s1408_s25, %s1409_s26  ;;  %s1413_s28 = scalar_lea.hbm %s2023_s3, 2 }
  0x1a   : > { %1302 = vmatpush.xpose.msk.msra.mxu1 %vm230_vm0, %v1543_v4  ;;  %v1593_v14 = vld [vmem:[%s1541_s4 + $0x20] sm:$0xff]  ;;  %v1603_v16 = vld [vmem:[%s1541_s4 + $0x28] sm:$0xff]  ;;  %v1606_v17 = vld [vmem:[%s1541_s4 + $0xb0] sm:$0xff]  ;;  %1341 = vmatpush.msk.msra.mxu2 %vm746_vm2, %v1543_v4  ;;  %v240_v59 = vsel %vm230_vm0, %v1583_v12, 0.0  ;;  %p1415_p1 = scmp.lt.s32.totalorder %s1413_s28, %s1409_s26 }
  0x1b   : > { %v1613_v18 = vld [vmem:[%s1541_s4 + $0x30] sm:$0xff]  ;;  %v1616_v19 = vld [vmem:[%s1541_s4 + $0xb8] sm:$0xff]  ;;  %v1626_v21 = vld [vmem:[%s1541_s4 + $0xc0] sm:$0xff]  ;;  %232 = vadd.xlane.f32.xlu0 %v231_v40  ;;  %238 = vadd.xlane.f32.xlu1 %v237_v50  ;;  %v243_v61 = vsel %vm230_vm0, %v1593_v14, 0.0  ;;  %v246_v1 = vsel %vm230_vm0, %v1603_v16, 0.0  ;;  %p1411_p12 = pnand %p1410_p11, %p1518_p5 }
  0x1c   : > { %1270 = vmatmul.msk.f32.vlgmr.msra.gmra.mxu0 %vm230_vm0, %v1550_v5  ;;  %1287 = vmatmul.msk.f32.vlgmr.msra.gmra.mxu3 %vm230_vm0, %v1553_v6  ;;  %v1623_v20 = vld [vmem:[%s1541_s4 + $0x38] sm:$0xff]  ;;  %v1633_v22 = vld [vmem:[%s1541_s4 + $0x40] sm:$0xff]  ;;  %v1636_v23 = vld [vmem:[%s1541_s4 + $0xc8] sm:$0xff]  ;;  %p1416_p2 = por %p1415_p1, %p1414_p0 }
  0x1d   : > { %1303 = vmatmul.msk.f32.vlgmr.msra.gmra.mxu1 %vm230_vm0, %v1458_v7  ;;  %v1643_v24 = vld [vmem:[%s1541_s4 + $0x48] sm:$0xff]  ;;  %v1646_v25 = vld [vmem:[%s1541_s4 + $0xd0] sm:$0xff]  ;;  %v1656_v27 = vld [vmem:[%s1541_s4 + $0xd8] sm:$0xff]  ;;  %244 = vadd.xlane.f32.xlu2 %v243_v61  ;;  %v249_v7 = vsel %vm230_vm0, %v1613_v18, 0.0  ;;  %p1412_p13 = pneg %p1411_p12 }
  0x1e   : > { %v1653_v26 = vld [vmem:[%s1541_s4 + $0x50] sm:$0xff]  ;;  %v1663_v28 = vld [vmem:[%s1541_s4 + $0x58] sm:$0xff]  ;;  %v1666_v29 = vld [vmem:[%s1541_s4 + $0xe0] sm:$0xff]  ;;  %1304 = vmatpush.msk.msrb.mxu1 %vm746_vm2, %v1543_v4 }
  0x1f   : > { %v1673_v30 = vld [vmem:[%s1541_s4 + $0x60] sm:$0xff]  ;;  %v1676_v31 = vld [vmem:[%s1541_s4 + $0xe8] sm:$0xff]  ;;  %v1686_v33 = vld [vmem:[%s1541_s4 + $0xf0] sm:$0xff]  ;;  %p1417_p3 = pnand %p1416_p2, %p1412_p13 }
  0x20   : > { %v1683_v32 = vld [vmem:[%s1541_s4 + $0x68] sm:$0xff]  ;;  %v1693_v34 = vld [vmem:[%s1541_s4 + $0x70] sm:$0xff]  ;;  %v1696_v35 = vld [vmem:[%s1541_s4 + $0xf8] sm:$0xff] }
  0x21   : > { %v1703_v36 = vld [vmem:[%s1541_s4 + $0x78] sm:$0xff]  ;;  %v1710_v38 = vld [vmem:[%s1541_s4 + $0x80] sm:$0xff] }
  0x22   : > { %v276_v61 = vsel %vm230_vm0, %v1703_v36, 0.0 }
  0x23   : > { %235 = vadd.xlane.f32.xlu0 %v234_v44  ;;  %241 = vadd.xlane.f32.xlu1 %v240_v59 }
  0x24   : > { %1271 = vmatmul.msk.f32.gmra.mxu0 %vm230_vm0, %v1563_v8  ;;  %1288 = vmatmul.msk.f32.gmra.mxu3 %vm230_vm0, %v1566_v9 }
  0x25   : > { %247 = vadd.xlane.f32.xlu2 %v246_v1 }
  0x2b   : > { %250 = vadd.xlane.f32.xlu0 %v249_v7 }
  0x2c   : > { %1272 = vmatmul.msk.f32.gmra.mxu0 %vm230_vm0, %v1573_v10  ;;  %1289 = vmatmul.msk.f32.gmra.mxu3 %vm230_vm0, %v1576_v11 }
  0x34   : > { %1273 = vmatmul.msk.f32.gmra.mxu0 %vm230_vm0, %v1583_v12  ;;  %1290 = vmatmul.msk.f32.gmra.mxu3 %vm230_vm0, %v1586_v13 }
  0x3c   : > { %1274 = vmatmul.msk.f32.gmra.mxu0 %vm230_vm0, %v1593_v14  ;;  %1291 = vmatmul.msk.f32.gmra.mxu3 %vm230_vm0, %v1596_v15 }
  0x44   : > { %1275 = vmatmul.msk.f32.gmra.mxu0 %vm230_vm0, %v1603_v16  ;;  %1292 = vmatmul.msk.f32.gmra.mxu3 %vm230_vm0, %v1606_v17 }
  0x4c   : > { %1276 = vmatmul.msk.f32.gmra.mxu0 %vm230_vm0, %v1613_v18  ;;  %1293 = vmatmul.msk.f32.gmra.mxu3 %vm230_vm0, %v1616_v19 }
  0x54   : > { %1277 = vmatmul.msk.f32.gmra.mxu0 %vm230_vm0, %v1623_v20  ;;  %1294 = vmatmul.msk.f32.gmra.mxu3 %vm230_vm0, %v1626_v21 }
  0x5c   : > { %1278 = vmatmul.msk.f32.gmra.mxu0 %vm230_vm0, %v1633_v22  ;;  %1295 = vmatmul.msk.f32.gmra.mxu3 %vm230_vm0, %v1636_v23 }
  0x64   : > { %1279 = vmatmul.msk.f32.gmra.mxu0 %vm230_vm0, %v1643_v24  ;;  %1296 = vmatmul.msk.f32.gmra.mxu3 %vm230_vm0, %v1646_v25 }
  0x6c   : > { %1280 = vmatmul.msk.f32.gmra.mxu0 %vm230_vm0, %v1653_v26  ;;  %1297 = vmatmul.msk.f32.gmra.mxu3 %vm230_vm0, %v1656_v27 }
  0x74   : > { %1281 = vmatmul.msk.f32.gmra.mxu0 %vm230_vm0, %v1663_v28  ;;  %1298 = vmatmul.msk.f32.gmra.mxu3 %vm230_vm0, %v1666_v29 }
  0x7c   : > { %1282 = vmatmul.msk.f32.gmra.mxu0 %vm230_vm0, %v1673_v30  ;;  %1299 = vmatmul.msk.f32.gmra.mxu3 %vm230_vm0, %v1676_v31 }
  0x84   : > { %1283 = vmatmul.msk.f32.gmra.mxu0 %vm230_vm0, %v1683_v32  ;;  %1300 = vmatmul.msk.f32.gmra.mxu3 %vm230_vm0, %v1686_v33 }
  0x8c   : > { %1284 = vmatmul.msk.f32.gmra.mxu0 %vm230_vm0, %v1693_v34  ;;  %1301 = vmatmul.msk.f32.gmra.mxu3 %vm230_vm0, %v1696_v35 }
  0x94   : > { %1285 = vmatmul.msk.f32.gmra.mxu0 %vm230_vm0, %v1703_v36 }
  0x99   : > { %v482_v37 = vpop.f32.mrf.mxu0 }
  0x9a   : > { %v598_v39 = vpop.f32.mrf.mxu1 }
  0x9b   : > { %v601_v41 = vmax.f32 %v598_v39, 1.0  ;;  %v252_v39 = vsel %vm230_vm0, %v1623_v20, 0.0 }
  0x9c   : > { %1286 = vmatmul.msk.f32.gmra.mxu0 %vm230_vm0, %v1710_v38  ;;  %253 = vadd.xlane.f32.xlu1 %v252_v39 }
  0x9d   : > { %v602_v42 = vperm.slane %v601_v41, 0 }
  0x9f   : > { %1385 = vrcp.f32 %v602_v42  ;;  %vm608_vm3 = vweird.f32 %v602_v42  ;;  %v614_v47 = vand.u32 2147483648, %v602_v42  ;;  %v612_v49 = vand.u32 2147483647, %v602_v42 }
  0xa1   : > { %v485_v43 = vpop.f32.mrf.mxu0  ;;  %v615_v53 = vor.u32 1.1754944e-38, %v614_v47  ;;  %vm613_vm6 = vcmp.eq.f32.partialorder %v612_v49, 8.507059e+37 }
  0xa5   : > { %v1386_v45 = vpop.eup %1385 }
  0xa6   : > { %v604_v46 = vmul.f32 %v1386_v45, %v602_v42  ;;  %vm609_vm4 = vweird.f32 %v1386_v45  ;;  %v255_v42 = vsel %vm230_vm0, %v1633_v22, 0.0 }
  0xa7   : > { %vm610_vm5 = vmor %vm608_vm3, %vm609_vm4  ;;  %256 = vadd.xlane.f32.xlu2 %v255_v42 }
  0xa8   : > { %v605_v48 = vsub.f32 1.0, %v604_v46  ;;  %v258_v46 = vsel %vm230_vm0, %v1643_v24, 0.0 }
  0xa9   : > { %v488_v51 = vpop.f32.mrf.mxu0  ;;  %259 = vadd.xlane.f32.xlu0 %v258_v46  ;;  %v285_v46 = vsel %vm230_vm0, %v1566_v9, 0.0 }
  0xaa   : > { %v606_v52 = vmul.f32 %v1386_v45, %v605_v48  ;;  %v261_v48 = vsel %vm230_vm0, %v1653_v26, 0.0 }
  0xab   : > { %262 = vadd.xlane.f32.xlu1 %v261_v48 }
  0xac   : > { %v607_v54 = vadd.f32 %v1386_v45, %v606_v52 }
  0xae   : > { %v611_v55 = vsel %vm610_vm5, %v1386_v45, %v607_v54 }
  0xaf   : > { %v1720_v56 = vsel %vm613_vm6, %v615_v53, %v611_v55  ;;  %v267_v55 = vsel %vm230_vm0, %v1673_v30, 0.0 }
  0xb0   : > { %v617_v57 = vmul.f32 %v1720_v56, %v482_v37  ;;  %v618_v60 = vmul.f32 %v1720_v56, %v485_v43  ;;  %v619_v63 = vmul.f32 %v1720_v56, %v488_v51  ;;  %v264_v51 = vsel %vm230_vm0, %v1663_v28, 0.0 }
  0xb1   : > { %v491_v58 = vpop.f32.mrf.mxu0  ;;  %265 = vadd.xlane.f32.xlu2 %v264_v51  ;;  %268 = vadd.xlane.f32.xlu0 %v267_v55  ;;  %v233_v55 = vpop.xlane.xlu0 %232 }
  0xb2   : > { %1305 = vmatmul.msk.f32.vlgmr.msrb.gmra.mxu1 %vm649_vm7, %v617_v57  ;;  %v620_v3 = vmul.f32 %v1720_v56, %v491_v58  ;;  %v270_v57 = vsel %vm230_vm0, %v1683_v32, 0.0  ;;  %v533_v58 = vpop.f32.mrf.mxu3 }
  0xb3   : > { %271 = vadd.xlane.f32.xlu1 %v270_v57  ;;  %v634_v51 = vmul.f32 %v1720_v56, %v533_v58 }
  0xb9   : > { %v494_v62 = vpop.f32.mrf.mxu0  ;;  %277 = vadd.xlane.f32.xlu0 %v276_v61 }
  0xba   : > { %1306 = vmatmul.msk.f32.gmra.mxu1 %vm649_vm7, %v618_v60  ;;  %v621_v37 = vmul.f32 %v1720_v56, %v494_v62  ;;  %v273_v62 = vsel %vm230_vm0, %v1693_v34, 0.0 }
  0xbb   : > { %274 = vadd.xlane.f32.xlu2 %v273_v62 }
  0xc1   : > { %v497_v2 = vpop.f32.mrf.mxu0  ;;  %286 = vadd.xlane.f32.xlu0 %v285_v46 }
  0xc2   : > { %1307 = vmatmul.msk.f32.gmra.mxu1 %vm649_vm7, %v619_v63  ;;  %v622_v41 = vmul.f32 %v1720_v56, %v497_v2  ;;  %v279_v63 = vsel %vm230_vm0, %v1710_v38, 0.0  ;;  %v536_v2 = vpop.f32.mrf.mxu3 }
  0xc3   : > { %280 = vadd.xlane.f32.xlu1 %v279_v63 }
  0xc9   : > { %v500_v4 = vpop.f32.mrf.mxu0 }
  0xca   : > { %1308 = vmatmul.msk.f32.gmra.mxu1 %vm649_vm7, %v620_v3  ;;  %v623_v44 = vmul.f32 %v1720_v56, %v500_v4  ;;  %v539_v39 = vpop.f32.mrf.mxu3 }
  0xd1   : > { %v503_v40 = vpop.f32.mrf.mxu0 }
  0xd2   : > { %1309 = vmatmul.msk.f32.gmra.mxu1 %vm649_vm7, %v621_v37  ;;  %v624_v47 = vmul.f32 %v1720_v56, %v503_v40  ;;  %v282_v40 = vsel %vm230_vm0, %v1553_v6, 0.0 }
  0xd3   : > { %283 = vadd.xlane.f32.xlu2 %v282_v40 }
  0xd9   : > { %v506_v43 = vpop.f32.mrf.mxu0 }
  0xda   : > { %1310 = vmatmul.msk.f32.gmra.mxu1 %vm649_vm7, %v622_v41  ;;  %v625_v50 = vmul.f32 %v1720_v56, %v506_v43  ;;  %v1459_v41 = vmov 96.0  }
  0xdb   : > { %1387 = vrcp.f32 %v1459_v41  ;;  %v239_v41 = vpop.xlane.xlu1 %238 }
  0xe1   : > { %v509_v45 = vpop.f32.mrf.mxu0 }
  0xe2   : > { %1311 = vmatmul.msk.f32.gmra.mxu1 %vm649_vm7, %v623_v44  ;;  %v626_v53 = vmul.f32 %v1720_v56, %v509_v45  ;;  %v1388_v44 = vpop.eup %1387 }
  0xe3   : > { %v328_v48 = vmul.f32 96.0, %v1388_v44  ;;  %vm332_vm8 = vweird.f32 %v1388_v44 }
  0xe9   : > { %v512_v49 = vpop.f32.mrf.mxu0 }
  0xea   : > { %1312 = vmatmul.msk.f32.gmra.mxu1 %vm649_vm7, %v624_v47  ;;  %v627_v59 = vmul.f32 %v1720_v56, %v512_v49  ;;  %v542_v47 = vpop.f32.mrf.mxu3 }
  0xf1   : > { %v515_v52 = vpop.f32.mrf.mxu0 }
  0xf2   : > { %1313 = vmatmul.msk.f32.gmra.mxu1 %vm649_vm7, %v625_v50  ;;  %v628_v1 = vmul.f32 %v1720_v56, %v515_v52  ;;  %v329_v50 = vsub.f32 1.0, %v328_v48  ;;  %v288_v52 = vsel %vm230_vm0, %v1576_v11, 0.0 }
  0xf3   : > { %289 = vadd.xlane.f32.xlu1 %v288_v52 }
  0xf9   : > { %v518_v54 = vpop.f32.mrf.mxu0 }
  0xfa   : > { %1314 = vmatmul.msk.f32.gmra.mxu1 %vm649_vm7, %v626_v53  ;;  %v629_v4 = vmul.f32 %v1720_v56, %v518_v54  ;;  %v330_v53 = vmul.f32 %v1388_v44, %v329_v50  ;;  %v545_v54 = vpop.f32.mrf.mxu3  ;;  %v297_v50 = vsel %vm230_vm0, %v1606_v17, 0.0 }
  0xfb   : > { %298 = vadd.xlane.f32.xlu1 %v297_v50 }
  0xfc   : > { %v331_v57 = vadd.f32 %v1388_v44, %v330_v53 }
  0xfe   : > { %v1796_v58 = vsel %vm332_vm8, %v1388_v44, %v331_v57 }
  0xff   : > { %v334_v62 = vmul.f32 %v1796_v58, %v233_v55 }
 0x101   : > { %v521_v60 = vpop.f32.mrf.mxu0 }
 0x102   : > { %1315 = vmatmul.msk.f32.gmra.mxu1 %vm649_vm7, %v627_v59  ;;  %v630_v42 = vmul.f32 %v1720_v56, %v521_v60  ;;  %v635_v59 = vmul.f32 %v1720_v56, %v536_v2  ;;  %v291_v60 = vsel %vm230_vm0, %v1586_v13, 0.0  ;;  %v548_v63 = vpop.f32.mrf.mxu3 }
 0x103   : > { %292 = vadd.xlane.f32.xlu2 %v291_v60 }
 0x109   : > { %v524_v3 = vpop.f32.mrf.mxu0 }
 0x10a   : > { %1316 = vmatmul.msk.f32.gmra.mxu1 %vm649_vm7, %v628_v1  ;;  %v631_v49 = vmul.f32 %v1720_v56, %v524_v3  ;;  %v236_v1 = vpop.xlane.xlu0 %235  ;;  %v636_v3 = vmul.f32 %v1720_v56, %v539_v39  ;;  %v637_v39 = vmul.f32 %v1720_v56, %v542_v47 }
 0x111   : > { %v527_v7 = vpop.f32.mrf.mxu0 }
 0x112   : > { %v632_v37 = vmul.f32 %v1720_v56, %v527_v7  ;;  %1317 = vmatmul.msk.f32.gmra.mxu1 %vm649_vm7, %v629_v4  ;;  %v294_v4 = vsel %vm230_vm0, %v1596_v15, 0.0 }
 0x113   : > { %295 = vadd.xlane.f32.xlu0 %v294_v4  ;;  %v300_v4 = vsel %vm230_vm0, %v1616_v19, 0.0 }
 0x114   : > { %1320 = vmatmul.msk.f32.vlgmr.msra.gmra.mxu2 %vm649_vm7, %v632_v37  ;;  %v335_v37 = vmul.f32 %v1796_v58, %v236_v1  ;;  %301 = vadd.xlane.f32.xlu2 %v300_v4 }
 0x119   : > { %v530_v43 = vpop.f32.mrf.mxu0 }
 0x11a   : > { %v633_v45 = vmul.f32 %v1720_v56, %v530_v43  ;;  %1318 = vmatmul.msk.f32.gmra.mxu1 %vm649_vm7, %v630_v42 }
 0x11c   : > { %1321 = vmatmul.msk.f32.gmra.mxu2 %vm649_vm7, %v633_v45 }
 0x122   : > { %1319 = vmatmul.msk.f32.gmra.mxu1 %vm649_vm7, %v631_v49  ;;  %v551_v49 = vpop.f32.mrf.mxu3 }
 0x124   : > { %1322 = vmatmul.msk.f32.gmra.mxu2 %vm649_vm7, %v634_v51 }
 0x12c   : > { %1323 = vmatmul.msk.f32.gmra.mxu2 %vm649_vm7, %v635_v59 }
 0x12f   : > { %v766_v61 = vpop.f32.mrf.mxu1 }
 0x130   : > { %v862_v2 = vsub.f32 %v1550_v5, %v766_v61  ;;  %v995_v7 = vsub.f32 %v766_v61, %v334_v62  ;;  %v336_v5 = vmul.f32 %v1796_v58, %v239_v41  ;;  %v242_v61 = vpop.xlane.xlu1 %241  ;;  %v638_v62 = vmul.f32 %v1720_v56, %v545_v54 }
 0x132   : > { %v894_v42 = vmul.f32 %v862_v2, %v862_v2  ;;  %v1027_v43 = vmul.f32 %v995_v7, %v995_v7 }
 0x134   : > { %1324 = vmatmul.msk.f32.gmra.mxu2 %vm649_vm7, %v636_v3  ;;  %v926_v51 = vsel %vm230_vm0, %v894_v42, 0.0  ;;  %v1059_v52 = vsel %vm230_vm0, %v1027_v43, 0.0 }
 0x137   : > { %v769_v40 = vpop.f32.mrf.mxu1 }
 0x138   : > { %v863_v44 = vsub.f32 %v1563_v8, %v769_v40  ;;  %v996_v45 = vsub.f32 %v769_v40, %v335_v37  ;;  %v337_v37 = vmul.f32 %v1796_v58, %v242_v61  ;;  %v554_v40 = vpop.f32.mrf.mxu3  ;;  %v312_v61 = vsel %vm230_vm0, %v1656_v27, 0.0 }
 0x13a   : > { %v895_v46 = vmul.f32 %v863_v44, %v863_v44  ;;  %v1028_v48 = vmul.f32 %v996_v45, %v996_v45  ;;  %v639_v44 = vmul.f32 %v1720_v56, %v548_v63  ;;  %v640_v63 = vmul.f32 %v1720_v56, %v551_v49 }
 0x13c   : > { %v927_v53 = vsel %vm230_vm0, %v895_v46, 0.0  ;;  %v1060_v55 = vsel %vm230_vm0, %v1028_v48, 0.0  ;;  %1325 = vmatmul.msk.f32.gmra.mxu2 %vm649_vm7, %v637_v39  ;;  %v303_v46 = vsel %vm230_vm0, %v1626_v21, 0.0 }
 0x13d   : > { %v928_v8 = vadd.f32 %v927_v53, %v926_v51  ;;  %v1061_v47 = vadd.f32 %v1060_v55, %v1059_v52  ;;  %304 = vadd.xlane.f32.xlu0 %v303_v46  ;;  %v306_v53 = vsel %vm230_vm0, %v1636_v23, 0.0 }
 0x13e   : > { %307 = vadd.xlane.f32.xlu1 %v306_v53 }
 0x13f   : > { %v772_v57 = vpop.f32.mrf.mxu1 }
 0x140   : > { %v864_v59 = vsub.f32 %v1573_v10, %v772_v57  ;;  %v997_v60 = vsub.f32 %v772_v57, %v336_v5  ;;  %v309_v57 = vsel %vm230_vm0, %v1646_v25, 0.0 }
 0x141   : > { %310 = vadd.xlane.f32.xlu2 %v309_v57 }
 0x142   : > { %v896_v1 = vmul.f32 %v864_v59, %v864_v59  ;;  %v1029_v3 = vmul.f32 %v997_v60, %v997_v60 }
 0x144   : > { %v929_v2 = vsel %vm230_vm0, %v896_v1, 0.0  ;;  %v1062_v7 = vsel %vm230_vm0, %v1029_v3, 0.0  ;;  %1326 = vmatmul.msk.f32.gmra.mxu2 %vm649_vm7, %v638_v62  ;;  %v315_v3 = vsel %vm230_vm0, %v1666_v29, 0.0 }
 0x145   : > { %v930_v10 = vadd.f32 %v929_v2, %v928_v8  ;;  %v1063_v41 = vadd.f32 %v1062_v7, %v1061_v47  ;;  %v641_v47 = vmul.f32 %v1720_v56, %v554_v40  ;;  %313 = vadd.xlane.f32.xlu0 %v312_v61  ;;  %v318_v40 = vsel %vm230_vm0, %v1676_v31, 0.0 }
 0x146   : > { %316 = vadd.xlane.f32.xlu1 %v315_v3 }
 0x147   : > { %v775_v42 = vpop.f32.mrf.mxu1 }
 0x148   : > { %v865_v54 = vsub.f32 %v1583_v12, %v775_v42  ;;  %v998_v43 = vsub.f32 %v775_v42, %v337_v37  ;;  %v557_v12 = vpop.f32.mrf.mxu3  ;;  %v245_v37 = vpop.xlane.xlu2 %244 }
 0x149   : > { %v642_v60 = vmul.f32 %v1720_v56, %v557_v12  ;;  %319 = vadd.xlane.f32.xlu2 %v318_v40  ;;  %v324_v12 = vsel %vm230_vm0, %v1696_v35, 0.0 }
 0x14a   : > { %v897_v45 = vmul.f32 %v865_v54, %v865_v54  ;;  %v1030_v39 = vmul.f32 %v998_v43, %v998_v43  ;;  %v321_v54 = vsel %vm230_vm0, %v1686_v33, 0.0  ;;  %v251_v43 = vpop.xlane.xlu0 %250 }
 0x14c   : > { %v931_v48 = vsel %vm230_vm0, %v897_v45, 0.0  ;;  %v1064_v5 = vsel %vm230_vm0, %v1030_v39, 0.0  ;;  %1327 = vmatmul.msk.f32.gmra.mxu2 %vm649_vm7, %v639_v44  ;;  %v254_v45 = vpop.xlane.xlu1 %253 }
 0x14d   : > { %v1830_v50 = vadd.f32 %v931_v48, %v930_v10  ;;  %v1832_v51 = vadd.f32 %v1064_v5, %v1063_v41  ;;  %322 = vadd.xlane.f32.xlu0 %v321_v54  ;;  %v338_v48 = vmul.f32 %v1796_v58, %v245_v37  ;;  %v341_v35 = vmul.f32 %v1796_v58, %v254_v45 }
 0x14e   : > { %325 = vadd.xlane.f32.xlu1 %v324_v12 }
 0x14f   : > { %v778_v52 = vpop.f32.mrf.mxu1 }
 0x150   : > { %v560_v8 = vpop.f32.mrf.mxu3  ;;  %v248_v44 = vpop.xlane.xlu2 %247 }
 0x151   : > { %v643_v1 = vmul.f32 %v1720_v56, %v560_v8  ;;  %v339_v53 = vmul.f32 %v1796_v58, %v248_v44  ;;  %v999_v8 = vsub.f32 %v778_v52, %v338_v48 }
 0x152   : > { %v260_v33 = vpop.xlane.xlu0 %259 }
 0x154   : > { %1328 = vmatmul.msk.f32.gmra.mxu2 %vm649_vm7, %v640_v63  ;;  %v866_v63 = vsub.f32 %v1593_v14, %v778_v52 }
 0x157   : > { %v781_v55 = vpop.f32.mrf.mxu1 }
 0x158   : > { %v563_v49 = vpop.f32.mrf.mxu3  ;;  %v867_v57 = vsub.f32 %v1603_v16, %v781_v55  ;;  %v1000_v3 = vsub.f32 %v781_v55, %v339_v53 }
 0x159   : > { %v644_v7 = vmul.f32 %v1720_v56, %v563_v49  ;;  %v263_v49 = vpop.xlane.xlu1 %262 }
 0x15a   : > { %v899_v40 = vmul.f32 %v867_v57, %v867_v57  ;;  %v269_v44 = vpop.xlane.xlu0 %268 }
 0x15c   : > { %1329 = vmatmul.msk.f32.gmra.mxu2 %vm649_vm7, %v641_v47  ;;  %v257_v47 = vpop.xlane.xlu2 %256 }
 0x15f   : > { %v784_v59 = vpop.f32.mrf.mxu1 }
 0x160   : > { %v566_v4 = vpop.f32.mrf.mxu3  ;;  %v868_v14 = vsub.f32 %v1613_v18, %v784_v59 }
 0x161   : > { %v645_v42 = vmul.f32 %v1720_v56, %v566_v4  ;;  %v1031_v4 = vmul.f32 %v999_v8, %v999_v8  ;;  %v272_v57 = vpop.xlane.xlu1 %271 }
 0x162   : > { %v900_v45 = vmul.f32 %v868_v14, %v868_v14 }
 0x163   : > { %v1066_v18 = vsel %vm230_vm0, %v1031_v4, 0.0 }
 0x164   : > { %1330 = vmatmul.msk.f32.gmra.mxu2 %vm649_vm7, %v642_v60  ;;  %v340_v60 = vmul.f32 %v1796_v58, %v251_v43  ;;  %v1032_v43 = vmul.f32 %v1000_v3, %v1000_v3  ;;  %v937_v3 = vsel %vm230_vm0, %v900_v45, 0.0  ;;  %v278_v45 = vpop.xlane.xlu0 %277 }
 0x166   : > { %v1001_v52 = vsub.f32 %v784_v59, %v340_v60  ;;  %v1067_v60 = vadd.f32 %v1066_v18, %v1832_v51 }
 0x167   : > { %v787_v62 = vpop.f32.mrf.mxu1 }
 0x168   : > { %v569_v10 = vpop.f32.mrf.mxu3  ;;  %v869_v16 = vsub.f32 %v1623_v20, %v787_v62  ;;  %v1002_v55 = vsub.f32 %v787_v62, %v341_v35  ;;  %v935_v20 = vsel %vm230_vm0, %v899_v40, 0.0  ;;  %v1033_v12 = vmul.f32 %v1001_v52, %v1001_v52 }
 0x169   : > { %v646_v5 = vmul.f32 %v1720_v56, %v569_v10 }
 0x16a   : > { %v901_v62 = vmul.f32 %v869_v16, %v869_v16  ;;  %v347_v16 = vmul.f32 %v1796_v58, %v272_v57 }
 0x16c   : > { %1331 = vmatmul.msk.f32.gmra.mxu2 %vm649_vm7, %v643_v1  ;;  %v898_v1 = vmul.f32 %v866_v63, %v866_v63  ;;  %v344_v63 = vmul.f32 %v1796_v58, %v263_v49  ;;  %v939_v51 = vsel %vm230_vm0, %v901_v62, 0.0 }
 0x16e   : > { %v933_v54 = vsel %vm230_vm0, %v898_v1, 0.0 }
 0x16f   : > { %v790_v2 = vpop.f32.mrf.mxu1  ;;  %v934_v53 = vadd.f32 %v933_v54, %v1830_v50  ;;  %v1070_v50 = vsel %vm230_vm0, %v1033_v12, 0.0 }
 0x170   : > { %v572_v46 = vpop.f32.mrf.mxu3  ;;  %v870_v48 = vsub.f32 %v1633_v22, %v790_v2  ;;  %v1068_v22 = vsel %vm230_vm0, %v1032_v43, 0.0 }
 0x171   : > { %v647_v37 = vmul.f32 %v1720_v56, %v572_v46  ;;  %v936_v1 = vadd.f32 %v935_v20, %v934_v53  ;;  %v1069_v14 = vadd.f32 %v1068_v22, %v1067_v60 }
 0x172   : > { %v902_v35 = vmul.f32 %v870_v48, %v870_v48 }
 0x173   : > { %v1071_v54 = vadd.f32 %v1070_v50, %v1069_v14 }
 0x174   : > { %1332 = vmatmul.msk.f32.gmra.mxu2 %vm649_vm7, %v644_v7  ;;  %v342_v7 = vmul.f32 %v1796_v58, %v257_v47 }
 0x176   : > { %v1003_v46 = vsub.f32 %v790_v2, %v342_v7  ;;  %v1034_v2 = vmul.f32 %v1002_v55, %v1002_v55 }
 0x177   : > { %v793_v41 = vpop.f32.mrf.mxu1 }
 0x178   : > { %v575_v10 = vpop.f32.mrf.mxu3  ;;  %v1035_v49 = vmul.f32 %v1003_v46, %v1003_v46  ;;  %v1072_v40 = vsel %vm230_vm0, %v1034_v2, 0.0 }
 0x179   : > { %v648_v59 = vmul.f32 %v1720_v56, %v575_v10 }
 0x17c   : > { %1333 = vmatmul.msk.f32.gmra.mxu2 %vm649_vm7, %v645_v42  ;;  %v343_v42 = vmul.f32 %v1796_v58, %v260_v33  ;;  %v871_v33 = vsub.f32 %v1643_v24, %v793_v41 }
 0x17e   : > { %v1004_v8 = vsub.f32 %v793_v41, %v343_v42  ;;  %v346_v41 = vmul.f32 %v1796_v58, %v269_v44  ;;  %v903_v7 = vmul.f32 %v871_v33, %v871_v33  ;;  %v938_v42 = vadd.f32 %v937_v3, %v936_v1 }
 0x17f   : > { %v796_v39 = vpop.f32.mrf.mxu1 }
 0x180   : > { %v872_v4 = vsub.f32 %v1653_v26, %v796_v39  ;;  %v1005_v24 = vsub.f32 %v796_v39, %v344_v63  ;;  %v941_v26 = vsel %vm230_vm0, %v902_v35, 0.0  ;;  %v1074_v39 = vsel %vm230_vm0, %v1035_v49, 0.0 }
 0x181   : > { %v940_v46 = vadd.f32 %v939_v51, %v938_v42 }
 0x182   : > { %v904_v43 = vmul.f32 %v872_v4, %v872_v4  ;;  %v1037_v55 = vmul.f32 %v1005_v24, %v1005_v24 }
 0x183   : > { %v942_v33 = vadd.f32 %v941_v26, %v940_v46 }
 0x184   : > { %1334 = vmatmul.msk.f32.gmra.mxu2 %vm649_vm7, %v646_v5  ;;  %v266_v5 = vpop.xlane.xlu2 %265  ;;  %v945_v57 = vsel %vm230_vm0, %v904_v43, 0.0  ;;  %v1078_v60 = vsel %vm230_vm0, %v1037_v55, 0.0 }
 0x185   : > { %v345_v56 = vmul.f32 %v1796_v58, %v266_v5 }
 0x187   : > { %v799_v61 = vpop.f32.mrf.mxu1 }
 0x188   : > { %v873_v52 = vsub.f32 %v1663_v28, %v799_v61  ;;  %v1006_v10 = vsub.f32 %v799_v61, %v345_v56  ;;  %v1073_v28 = vadd.f32 %v1072_v40, %v1071_v54  ;;  %v943_v61 = vsel %vm230_vm0, %v903_v7, 0.0 }
 0x189   : > { %v944_v56 = vadd.f32 %v943_v61, %v942_v33 }
 0x18a   : > { %v905_v12 = vmul.f32 %v873_v52, %v873_v52  ;;  %v1038_v63 = vmul.f32 %v1006_v10, %v1006_v10 }
 0x18b   : > { %v946_v24 = vadd.f32 %v945_v57, %v944_v56 }
 0x18c   : > { %1335 = vmatmul.msk.f32.gmra.mxu2 %vm649_vm7, %v647_v37  ;;  %v1036_v37 = vmul.f32 %v1004_v8, %v1004_v8  ;;  %v275_v48 = vpop.xlane.xlu2 %274  ;;  %v1075_v8 = vadd.f32 %v1074_v39, %v1073_v28  ;;  %v947_v49 = vsel %vm230_vm0, %v905_v12, 0.0 }
 0x18d   : > { %v348_v50 = vmul.f32 %v1796_v58, %v275_v48  ;;  %v948_v40 = vadd.f32 %v947_v49, %v946_v24 }
 0x18e   : > { %v1076_v5 = vsel %vm230_vm0, %v1036_v37, 0.0 }
 0x18f   : > { %v802_v47 = vpop.f32.mrf.mxu1  ;;  %v1077_v1 = vadd.f32 %v1076_v5, %v1075_v8 }
 0x190   : > { %v874_v44 = vsub.f32 %v1673_v30, %v802_v47  ;;  %v1007_v18 = vsub.f32 %v802_v47, %v346_v41  ;;  %v349_v30 = vmul.f32 %v1796_v58, %v278_v45  ;;  %v281_v47 = vpop.xlane.xlu1 %280 }
 0x191   : > { %v350_v4 = vmul.f32 %v1796_v58, %v281_v47  ;;  %v1079_v41 = vadd.f32 %v1078_v60, %v1077_v1 }
 0x192   : > { %v906_v22 = vmul.f32 %v874_v44, %v874_v44  ;;  %v1039_v2 = vmul.f32 %v1007_v18, %v1007_v18 }
 0x194   : > { %1336 = vmatmul.msk.f32.gmra.mxu2 %vm649_vm7, %v648_v59  ;;  %v949_v14 = vsel %vm230_vm0, %v906_v22, 0.0  ;;  %v1082_v51 = vsel %vm230_vm0, %v1039_v2, 0.0  ;;  %v284_v44 = vpop.xlane.xlu2 %283 }
 0x195   : > { %v950_v18 = vadd.f32 %v949_v14, %v948_v40 }
 0x197   : > { %v805_v59 = vpop.f32.mrf.mxu1  ;;  %v811_v20 = vpop.f32.mrf.mxu2 }
 0x198   : > { %v875_v53 = vsub.f32 %v1683_v32, %v805_v59  ;;  %v1008_v62 = vsub.f32 %v805_v59, %v347_v16  ;;  %v1080_v32 = vsel %vm230_vm0, %v1038_v63, 0.0  ;;  %v877_v7 = vsub.f32 %v1703_v36, %v811_v20 }
 0x199   : > { %v1010_v37 = vsub.f32 %v811_v20, %v349_v30  ;;  %v1081_v52 = vadd.f32 %v1080_v32, %v1079_v41  ;;  %v351_v59 = vmul.f32 %v1796_v58, %v284_v44 }
 0x19a   : > { %v907_v3 = vmul.f32 %v875_v53, %v875_v53  ;;  %v1040_v35 = vmul.f32 %v1008_v62, %v1008_v62  ;;  %v909_v48 = vmul.f32 %v877_v7, %v877_v7 }
 0x19b   : > { %v1083_v45 = vadd.f32 %v1082_v51, %v1081_v52  ;;  %v1042_v36 = vmul.f32 %v1010_v37, %v1010_v37  ;;  %v290_v37 = vpop.xlane.xlu1 %289 }
 0x19c   : > { %v951_v10 = vsel %vm230_vm0, %v907_v3, 0.0  ;;  %v1084_v16 = vsel %vm230_vm0, %v1040_v35, 0.0  ;;  %v955_v62 = vsel %vm230_vm0, %v909_v48, 0.0  ;;  %v287_v3 = vpop.xlane.xlu0 %286 }
 0x19d   : > { %v952_v61 = vadd.f32 %v951_v10, %v950_v18  ;;  %v1085_v5 = vadd.f32 %v1084_v16, %v1083_v45  ;;  %v1088_v33 = vsel %vm230_vm0, %v1042_v36, 0.0  ;;  %v353_v16 = vmul.f32 %v1796_v58, %v290_v37 }
 0x19f   : > { %v808_v42 = vpop.f32.mrf.mxu1  ;;  %v814_v54 = vpop.f32.mrf.mxu2 }
 0x1a0   : > { %v876_v26 = vsub.f32 %v1693_v34, %v808_v42  ;;  %v1009_v39 = vsub.f32 %v808_v42, %v348_v50  ;;  %v878_v43 = vsub.f32 %v1710_v38, %v814_v54  ;;  %v1011_v55 = vsub.f32 %v814_v54, %v350_v4 }
 0x1a1   : > { %v352_v4 = vmul.f32 %v1796_v58, %v287_v3 }
 0x1a2   : > { %v908_v46 = vmul.f32 %v876_v26, %v876_v26  ;;  %v1041_v28 = vmul.f32 %v1009_v39, %v1009_v39  ;;  %v910_v34 = vmul.f32 %v878_v43, %v878_v43  ;;  %v1043_v63 = vmul.f32 %v1011_v55, %v1011_v55  ;;  %v293_v55 = vpop.xlane.xlu2 %292 }
 0x1a3   : > { %v354_v48 = vmul.f32 %v1796_v58, %v293_v55 }
 0x1a4   : > { %v953_v20 = vsel %vm230_vm0, %v908_v46, 0.0  ;;  %v1086_v12 = vsel %vm230_vm0, %v1041_v28, 0.0  ;;  %v957_v57 = vsel %vm230_vm0, %v910_v34, 0.0  ;;  %v1090_v60 = vsel %vm230_vm0, %v1043_v63, 0.0 }
 0x1a5   : > { %v954_v53 = vadd.f32 %v953_v20, %v952_v61  ;;  %v1087_v38 = vadd.f32 %v1086_v12, %v1085_v5 }
 0x1a7   : > { %v956_v8 = vadd.f32 %v955_v62, %v954_v53  ;;  %v1089_v30 = vadd.f32 %v1088_v33, %v1087_v38  ;;  %v817_v47 = vpop.f32.mrf.mxu2 }
 0x1a8   : > { %v879_v22 = vsub.f32 %v1553_v6, %v817_v47  ;;  %v1012_v2 = vsub.f32 %v817_v47, %v351_v59  ;;  %v296_v47 = vpop.xlane.xlu0 %295 }
 0x1a9   : > { %v958_v56 = vadd.f32 %v957_v57, %v956_v8  ;;  %v1091_v1 = vadd.f32 %v1090_v60, %v1089_v30  ;;  %v299_v57 = vpop.xlane.xlu1 %298 }
 0x1aa   : > { %v911_v35 = vmul.f32 %v879_v22, %v879_v22  ;;  %v1044_v49 = vmul.f32 %v1012_v2, %v1012_v2  ;;  %v302_v60 = vpop.xlane.xlu2 %301 }
 0x1ac   : > { %v959_v32 = vsel %vm230_vm0, %v911_v35, 0.0  ;;  %v1092_v50 = vsel %vm230_vm0, %v1044_v49, 0.0 }
 0x1ad   : > { %v960_v24 = vadd.f32 %v959_v32, %v958_v56  ;;  %v1093_v41 = vadd.f32 %v1092_v50, %v1091_v1  ;;  %v356_v1 = vmul.f32 %v1796_v58, %v299_v57  ;;  %v357_v32 = vmul.f32 %v1796_v58, %v302_v60 }
 0x1af   : > { %v820_v14 = vpop.f32.mrf.mxu2 }
 0x1b0   : > { %v880_v51 = vsub.f32 %v1566_v9, %v820_v14  ;;  %v1013_v7 = vsub.f32 %v820_v14, %v352_v4  ;;  %v305_v2 = vpop.xlane.xlu0 %304 }
 0x1b1   : > { %v308_v35 = vpop.xlane.xlu1 %307  ;;  %v358_v14 = vmul.f32 %v1796_v58, %v305_v2 }
 0x1b2   : > { %v912_v6 = vmul.f32 %v880_v51, %v880_v51  ;;  %v1045_v40 = vmul.f32 %v1013_v7, %v1013_v7  ;;  %v359_v37 = vmul.f32 %v1796_v58, %v308_v35 }
 0x1b4   : > { %v961_v52 = vsel %vm230_vm0, %v912_v6, 0.0  ;;  %v1094_v10 = vsel %vm230_vm0, %v1045_v40, 0.0  ;;  %v311_v50 = vpop.xlane.xlu2 %310 }
 0x1b5   : > { %v962_v42 = vadd.f32 %v961_v52, %v960_v24  ;;  %v1095_v54 = vadd.f32 %v1094_v10, %v1093_v41 }
 0x1b7   : > { %v823_v26 = vpop.f32.mrf.mxu2 }
 0x1b8   : > { %v881_v39 = vsub.f32 %v1576_v11, %v823_v26  ;;  %v1014_v43 = vsub.f32 %v823_v26, %v353_v16 }
 0x1ba   : > { %v913_v44 = vmul.f32 %v881_v39, %v881_v39  ;;  %v1046_v18 = vmul.f32 %v1014_v43, %v1014_v43 }
 0x1bc   : > { %v963_v9 = vsel %vm230_vm0, %v913_v44, 0.0  ;;  %v1096_v45 = vsel %vm230_vm0, %v1046_v18, 0.0 }
 0x1bd   : > { %v964_v36 = vadd.f32 %v963_v9, %v962_v42  ;;  %v1097_v46 = vadd.f32 %v1096_v45, %v1095_v54 }
 0x1bf   : > { %v826_v28 = vpop.f32.mrf.mxu2 }
 0x1c0   : > { %v882_v61 = vsub.f32 %v1586_v13, %v826_v28  ;;  %v1015_v5 = vsub.f32 %v826_v28, %v354_v48  ;;  %v355_v13 = vmul.f32 %v1796_v58, %v296_v47 }
 0x1c2   : > { %v914_v59 = vmul.f32 %v882_v61, %v882_v61  ;;  %v1047_v20 = vmul.f32 %v1015_v5, %v1015_v5 }
 0x1c4   : > { %v965_v11 = vsel %vm230_vm0, %v914_v59, 0.0  ;;  %v1098_v12 = vsel %vm230_vm0, %v1047_v20, 0.0 }
 0x1c5   : > { %v966_v34 = vadd.f32 %v965_v11, %v964_v36  ;;  %v1099_v63 = vadd.f32 %v1098_v12, %v1097_v46  ;;  %v320_v36 = vpop.xlane.xlu2 %319 }
 0x1c7   : > { %v829_v53 = vpop.f32.mrf.mxu2 }
 0x1c8   : > { %v883_v56 = vsub.f32 %v1596_v15, %v829_v53  ;;  %v1016_v3 = vsub.f32 %v829_v53, %v355_v13  ;;  %v314_v15 = vpop.xlane.xlu0 %313 }
 0x1c9   : > { %v361_v18 = vmul.f32 %v1796_v58, %v314_v15 }
 0x1ca   : > { %v915_v24 = vmul.f32 %v883_v56, %v883_v56  ;;  %v1048_v51 = vmul.f32 %v1016_v3, %v1016_v3 }
 0x1cc   : > { %v967_v10 = vsel %vm230_vm0, %v915_v24, 0.0  ;;  %v1100_v54 = vsel %vm230_vm0, %v1048_v51, 0.0  ;;  %v1391_v51 = vld [vmem:[%s1541_s4 + $0xf0] sm:$0xff] }
 0x1cd   : > { %v968_v9 = vadd.f32 %v967_v10, %v966_v34  ;;  %v1101_v28 = vadd.f32 %v1100_v54, %v1099_v63 }
 0x1cf   : > { %v832_v38 = vpop.f32.mrf.mxu2 }
 0x1d0   : > { %v884_v49 = vsub.f32 %v1606_v17, %v832_v38  ;;  %v1017_v41 = vsub.f32 %v832_v38, %v356_v1  ;;  %v360_v17 = vmul.f32 %v1796_v58, %v311_v50  ;;  %v323_v53 = vpop.xlane.xlu0 %322 }
 0x1d1   : > { %v364_v13 = vmul.f32 %v1796_v58, %v323_v53 }
 0x1d2   : > { %v916_v6 = vmul.f32 %v884_v49, %v884_v49  ;;  %v1049_v16 = vmul.f32 %v1017_v41, %v1017_v41 }
 0x1d4   : > { %v969_v55 = vsel %vm230_vm0, %v916_v6, 0.0  ;;  %v1102_v61 = vsel %vm230_vm0, %v1049_v16, 0.0 }
 0x1d5   : > { %v970_v59 = vadd.f32 %v969_v55, %v968_v9 }
 0x1d7   : > { %v835_v62 = vpop.f32.mrf.mxu2 }
 0x1d8   : > { %v885_v7 = vsub.f32 %v1616_v19, %v835_v62  ;;  %v1018_v40 = vsub.f32 %v835_v62, %v357_v32  ;;  %v317_v19 = vpop.xlane.xlu1 %316  ;;  %v363_v62 = vmul.f32 %v1796_v58, %v320_v36 }
 0x1da   : > { %v917_v26 = vmul.f32 %v885_v7, %v885_v7  ;;  %v1050_v44 = vmul.f32 %v1018_v40, %v1018_v40 }
 0x1dc   : > { %v971_v20 = vsel %vm230_vm0, %v917_v26, 0.0  ;;  %v1104_v34 = vsel %vm230_vm0, %v1050_v44, 0.0 }
 0x1dd   : > { %v972_v2 = vadd.f32 %v971_v20, %v970_v59 }
 0x1df   : > { %v838_v33 = vpop.f32.mrf.mxu2 }
 0x1e0   : > { %v886_v52 = vsub.f32 %v1626_v21, %v838_v33  ;;  %v1019_v42 = vsub.f32 %v838_v33, %v358_v14  ;;  %v1103_v33 = vadd.f32 %v1102_v61, %v1101_v28  ;;  %v326_v15 = vpop.xlane.xlu1 %325 }
 0x1e1   : > { %v365_v54 = vmul.f32 %v1796_v58, %v326_v15  ;;  %v1153_v15 = vand.u32 127, %v224_v0 }
 0x1e2   : > { %v918_v21 = vmul.f32 %v886_v52, %v886_v52  ;;  %v1051_v5 = vmul.f32 %v1019_v42, %v1019_v42  ;;  %v1105_v56 = vadd.f32 %v1104_v34, %v1103_v33 }
 0x1e3   : > { %vm1154_vm13 = vcmp.eq.s32.totalorder %v1153_v15, 0  ;;  %vm1156_vm14 = vcmp.eq.s32.totalorder %v1153_v15, 1 }
 0x1e4   : > { %v973_v63 = vsel %vm230_vm0, %v918_v21, 0.0  ;;  %v1106_v47 = vsel %vm230_vm0, %v1051_v5, 0.0 }
 0x1e5   : > { %v974_v32 = vadd.f32 %v973_v63, %v972_v2  ;;  %v1107_v50 = vadd.f32 %v1106_v47, %v1105_v56 }
 0x1e7   : > { %v841_v8 = vpop.f32.mrf.mxu2 }
 0x1e8   : > { %v887_v39 = vsub.f32 %v1636_v23, %v841_v8  ;;  %v1020_v43 = vsub.f32 %v841_v8, %v359_v37  ;;  %v362_v23 = vmul.f32 %v1796_v58, %v317_v19  ;;  %v1392_v58 = vld [vmem:[%s1541_s4 + $0xf8] sm:$0xff] }
 0x1ea   : > { %v919_v11 = vmul.f32 %v887_v39, %v887_v39  ;;  %v1052_v12 = vmul.f32 %v1020_v43, %v1020_v43 }
 0x1ef   : > { %v844_v30 = vpop.f32.mrf.mxu2 }
 0x1f0   : > { %v888_v45 = vsub.f32 %v1646_v25, %v844_v30  ;;  %v1021_v48 = vsub.f32 %v844_v30, %v360_v17 }
 0x1f2   : > { %v920_v8 = vmul.f32 %v888_v45, %v888_v45  ;;  %v1053_v30 = vmul.f32 %v1021_v48, %v1021_v48 }
 0x1f4   : > { %v977_v24 = vsel %vm230_vm0, %v920_v8, 0.0 }
 0x1f7   : > { %v847_v22 = vpop.f32.mrf.mxu2 }
 0x1f8   : > { %v889_v38 = vsub.f32 %v1656_v27, %v847_v22  ;;  %v1022_v25 = vsub.f32 %v847_v22, %v361_v18  ;;  %v975_v27 = vsel %vm230_vm0, %v919_v11, 0.0  ;;  %v1108_v22 = vsel %vm230_vm0, %v1052_v12, 0.0 }
 0x1f9   : > { %v976_v6 = vadd.f32 %v975_v27, %v974_v32  ;;  %v1109_v40 = vadd.f32 %v1108_v22, %v1107_v50 }
 0x1fa   : > { %v921_v1 = vmul.f32 %v889_v38, %v889_v38  ;;  %v1054_v3 = vmul.f32 %v1022_v25, %v1022_v25 }
 0x1fb   : > { %v978_v16 = vadd.f32 %v977_v24, %v976_v6 }
 0x1fc   : > { %v979_v52 = vsel %vm230_vm0, %v921_v1, 0.0 }
 0x1fd   : > { %v980_v55 = vadd.f32 %v979_v52, %v978_v16 }
 0x1ff   : > { %v850_v4 = vpop.f32.mrf.mxu2 }
 0x200   : > { %v890_v57 = vsub.f32 %v1666_v29, %v850_v4  ;;  %v1023_v60 = vsub.f32 %v850_v4, %v362_v23  ;;  %v1110_v29 = vsel %vm230_vm0, %v1053_v30, 0.0 }
 0x201   : > { %v1111_v42 = vadd.f32 %v1110_v29, %v1109_v40 }
 0x202   : > { %v922_v41 = vmul.f32 %v890_v57, %v890_v57  ;;  %v1055_v14 = vmul.f32 %v1023_v60, %v1023_v60 }
 0x204   : > { %v981_v26 = vsel %vm230_vm0, %v922_v41, 0.0  ;;  %v1114_v39 = vsel %vm230_vm0, %v1055_v14, 0.0 }
 0x205   : > { %v982_v21 = vadd.f32 %v981_v26, %v980_v55 }
 0x207   : > { %v853_v46 = vpop.f32.mrf.mxu2 }
 0x208   : > { %v891_v35 = vsub.f32 %v1676_v31, %v853_v46  ;;  %v1024_v49 = vsub.f32 %v853_v46, %v363_v62  ;;  %v1112_v31 = vsel %vm230_vm0, %v1054_v3, 0.0 }
 0x209   : > { %v1113_v44 = vadd.f32 %v1112_v31, %v1111_v42 }
 0x20a   : > { %v923_v17 = vmul.f32 %v891_v35, %v891_v35  ;;  %v1056_v10 = vmul.f32 %v1024_v49, %v1024_v49 }
 0x20b   : > { %v1115_v45 = vadd.f32 %v1114_v39, %v1113_v44 }
 0x20c   : > { %v983_v18 = vsel %vm230_vm0, %v923_v17, 0.0  ;;  %v1116_v9 = vsel %vm230_vm0, %v1056_v10, 0.0 }
 0x20d   : > { %v984_v5 = vadd.f32 %v983_v18, %v982_v21  ;;  %v1117_v23 = vadd.f32 %v1116_v9, %v1115_v45 }
 0x20f   : > { %v856_v4 = vpop.f32.mrf.mxu2 }
 0x210   : > { %v892_v7 = vsub.f32 %v1391_v51, %v856_v4  ;;  %v1025_v37 = vsub.f32 %v856_v4, %v364_v13 }
 0x212   : > { %v924_v43 = vmul.f32 %v892_v7, %v892_v7  ;;  %v1057_v19 = vmul.f32 %v1025_v37, %v1025_v37 }
 0x214   : > { %v985_v36 = vsel %vm230_vm0, %v924_v43, 0.0  ;;  %v1118_v46 = vsel %vm230_vm0, %v1057_v19, 0.0 }
 0x215   : > { %v986_v11 = vadd.f32 %v985_v36, %v984_v5  ;;  %v1119_v12 = vadd.f32 %v1118_v46, %v1117_v23 }
 0x217   : > { %v859_v48 = vpop.f32.mrf.mxu2 }
 0x218   : > { %v893_v28 = vsub.f32 %v1392_v58, %v859_v48  ;;  %v1026_v61 = vsub.f32 %v859_v48, %v365_v54 }
 0x21a   : > { %v925_v59 = vmul.f32 %v893_v28, %v893_v28  ;;  %v1058_v20 = vmul.f32 %v1026_v61, %v1026_v61 }
 0x21c   : > { %v987_v53 = vsel %vm230_vm0, %v925_v59, 0.0  ;;  %v1120_v34 = vsel %vm230_vm0, %v1058_v20, 0.0 }
 0x21d   : > { %v988_v38 = vadd.f32 %v987_v53, %v986_v11  ;;  %v1121_v25 = vadd.f32 %v1120_v34, %v1119_v12 }
 0x21f   : > { %v989_v62 = vrot.slane %v988_v38, 4  ;;  %v1122_v33 = vrot.slane %v1121_v25, 4 }
 0x221   : > { %v990_v63 = vadd.f32 %v989_v62, %v988_v38  ;;  %v1123_v8 = vadd.f32 %v1122_v33, %v1121_v25 }
 0x223   : > { %v991_v30 = vrot.slane %v990_v63, 2  ;;  %v1124_v47 = vrot.slane %v1123_v8, 2 }
 0x225   : > { %v992_v57 = vadd.f32 %v991_v30, %v990_v63  ;;  %v1125_v60 = vadd.f32 %v1124_v47, %v1123_v8 }
 0x227   : > { %v993_v13 = vrot.slane %v992_v57, 1  ;;  %v1126_v2 = vrot.slane %v1125_v60, 1 }
 0x229   : > { %v994_v56 = vadd.f32 %v993_v13, %v992_v57  ;;  %v1127_v27 = vadd.f32 %v1126_v2, %v1125_v60 }
 0x22b   : > { %v1146_v22 = vsel %vm230_vm0, %v994_v56, 0.0  ;;  %v1128_v1 = vadd.f32 1e-08, %v994_v56  ;;  %v1149_v3 = vsel %vm230_vm0, %v1127_v27, 0.0 }
 0x22c   : > { %1147 = vadd.xlane.f32.xlu2 %v1146_v22  ;;  %1150 = vadd.xlane.f32.xlu0 %v1149_v3 }
 0x22d   : > { %1389 = vrcp.f32 %v1128_v1  ;;  %v1140_v50 = vand.u32 2147483648, %v1128_v1  ;;  %v1138_v29 = vand.u32 2147483647, %v1128_v1  ;;  %vm1134_vm10 = vweird.f32 %v1128_v1 }
 0x22f   : > { %v1141_v41 = vor.u32 1.1754944e-38, %v1140_v50  ;;  %vm1139_vm12 = vcmp.eq.f32.partialorder %v1138_v29, 8.507059e+37 }
 0x233   : > { %v1390_v35 = vpop.eup %1389 }
 0x234   : > { %v1130_v49 = vmul.f32 %v1390_v35, %v1128_v1  ;;  %vm1135_vm9 = vweird.f32 %v1390_v35 }
 0x235   : > { %vm1136_vm11 = vmor %vm1134_vm10, %vm1135_vm9 }
 0x236   : > { %v1131_v32 = vsub.f32 1.0, %v1130_v49 }
 0x238   : > { %v1132_v24 = vmul.f32 %v1390_v35, %v1131_v32 }
 0x23a   : > { %v1133_v4 = vadd.f32 %v1390_v35, %v1132_v24 }
 0x23c   : > { %v1137_v14 = vsel %vm1136_vm11, %v1390_v35, %v1133_v4 }
 0x23d   : > { %v1142_v51 = vsel %vm1139_vm12, %v1141_v41, %v1137_v14 }
 0x23e   : > { %v1143_v7 = vmul.f32 %v1142_v51, %v1127_v27 }
 0x240   : > { %v1144_v37 = vsel %vm230_vm0, %v1143_v7, 0.0 }
 0x241   : > { %1145 = vst [vmem:[%s190_s7] sm:$0x1] %v1144_v37 }
 0x29f   : > { %v1148_v6 = vpop.xlane.xlu2 %1147  ;;  %v1151_v40 = vpop.xlane.xlu0 %1150 }
 0x2a0   : > { %v1155_v52 = vsel %vm1154_vm13, %v1148_v6, 0.0  ;;  %v1157_v31 = vsel %vm1156_vm14, %v1151_v40, 0.0 }
 0x2a1   : > { %v1158_v17 = vadd.f32 %v1157_v31, %v1155_v52 }
 0x2a3   : > { %1159 = vst [vmem:[%s179_s17] sm:$0x1] %v1158_v17 }
 0x2a4   : > { %1420 = shalt.err (!%p1417_p3)
}
 0x2a5   : > { %1342 = dma.vmem_to_hbm [thread:$0]  (%p1518_p5), %s1178_s19, 16, %s1180_s20, %s1164_s24  }
 0x2a6 PF: > { %p1348_p4 = scmp.ge.s32.totalorder %s1455_s15, 2  ;;  %s1197_s4 = sand.u32 1, %s1443_s12  }
 0x2a7   : > { %s1198_s5 = scalar_lea.sflag [#allocation3], %s1197_s4 }
 0x2a8   : > { %p1345_p7 = pnand %p1348_p4, %p1522_p6 }
 0x2aa   : > { %p1346_p8 = pneg %p1345_p7 }
 0x2ac   : > { %1438 = dma.done.wait (%p1346_p8), %s1198_s5, 16  }
 0x2ad   : > { %1440 = vsyncadd (%p1346_p8), %s1198_s5, 4294967280  ;;  %p14_p9 = scmp.ge.s32.totalorder %s1505_s18, 4   ;;  %s2026_s12 = smov %s1447_s13 }
 0x2ae   : > { %s2027_s13 = smov %s1451_s14  ;;  %s2028_s14 = smov %s1516_s21 }
 0x2af   : > { %s2029_s15 = smov %s1505_s18  ;;  %16 = sbr.rel (!%p14_p9) target bundleno = 3 (0x3), region = 78 }
 0x2b4   :  { %1203 = vsyncpa [#allocation3], 1 }
 0x2b5   :  { %1205 = vsyncpa [#allocation3 + $0x1], 1 }

// kernel: meta_forward.7
= control target key start
LH: loop header
LB: loop body
LE: loop exit
PB: predicated region body
PF: predicated region fallthrough
CT: control target
= control target key end

     0   :  { %vm38_vm0 = vcmask 1043456   ;;  %vm34_vm1 = vcmask 195584   ;;  %s253_s1 = inlined_call_operand.vmem [shape: bf16[24,128], index: 1, kind: input, shape index: {}]   ;;  %s254_s2 = inlined_call_operand.vmem [shape: bf16[128,128], index: 2, kind: input, shape index: {}]   ;;  %s255_s0 = inlined_call_operand.vmem [shape: bf16[16,24], index: 0, kind: input, shape index: {}]   ;;  %s256_s3 = inlined_call_operand.vmem [shape: f32[16,128], index: 3, kind: output, shape index: {}]  }
   0x1   :  { %v19_v0 = vld [vmem:[%s253_s1 + $0x8] sm:$0xf]  ;;  %v193_v2 = vld [vmem:[%s254_s2 + $0x38] sm:$0xff]  ;;  %v192_v4 = vld [vmem:[%s254_s2 + $0x30] sm:$0xff] }
   0x2   :  { %v30_v1 = vunpack.c.l.b16 %v19_v0  ;;  %123 = vmatpush.bf16.msra.mxu1 %v193_v2  ;;  %v185_v6 = vld [vmem:[%s253_s1] sm:$0xff]  ;;  %v191_v7 = vld [vmem:[%s254_s2 + $0x28] sm:$0xff]  ;;  %v189_v10 = vld [vmem:[%s254_s2 + $0x18] sm:$0xff] }
   0x3   :  { %v184_v8 = vld [vmem:[%s255_s0] sm:$0xff]  ;;  %v188_v11 = vld [vmem:[%s254_s2 + $0x10] sm:$0xff]  ;;  %v187_v12 = vld [vmem:[%s254_s2 + $0x8] sm:$0xff] }
   0x4   :  { %v32_v3 = vpack.c.b16 %v30_v1, %v30_v1  ;;  %v190_v9 = vld [vmem:[%s254_s2 + $0x20] sm:$0xff] }
   0x5   :  { %v186_v13 = vld [vmem:[%s254_s2] sm:$0xff] }
   0x6   :  { %v40_v5 = vsel %vm38_vm0, %v32_v3, 0  ;;  %124 = vmatpush.bf16.msra.mxu1 %v192_v4 }
   0x7   :  { %48 = vmatpush.bf16.msra.mxu0 %v40_v5 }
   0xa   :  { %125 = vmatpush.bf16.msra.mxu1 %v191_v7 }
   0xb   :  { %49 = vmatpush.bf16.msra.mxu0 %v185_v6 }
   0xe   :  { %151 = vmatmul.msk.bf16.vlgmr.msra.gmra.mxu0 %vm34_vm1, %v184_v8  ;;  %126 = vmatpush.bf16.msra.mxu1 %v190_v9 }
  0x12   :  { %127 = vmatpush.bf16.msra.mxu1 %v189_v10 }
  0x16   :  { %128 = vmatpush.bf16.msra.mxu1 %v188_v11 }
  0x1a   :  { %129 = vmatpush.bf16.msra.mxu1 %v187_v12 }
  0x1e   :  { %130 = vmatpush.bf16.msra.mxu1 %v186_v13 }
  0x8b   :  { %v51_v14 = vpop.f32.mrf.mxu0 }
  0x8c   :  { %v56_v16 = vmax.f32 %v51_v14, 0.0 }
  0x93   :  { %v53_v15 = vpop.f32.mrf.mxu0 }
  0x94   :  { %v57_v17 = vmax.f32 %v53_v15, 0.0 }
  0x96   :  { %v58_v18 = vpack.c.bf16 %v57_v17, %v56_v16 }
  0x98   :  { %131 = vmatmul.bf16.vlgmr.msra.gmra.mxu1 %v58_v18 }
 0x115   :  { %v132_v19 = vpop.f32.mrf.mxu1 }
 0x116   :  { %137 = vst [vmem:[%s256_s3] sm:$0xff] %v132_v19 }
 0x11d   :  { %v134_v20 = vpop.f32.mrf.mxu1 }
 0x11e   :  { %138 = vst [vmem:[%s256_s3 + $0x8] sm:$0xff] %v134_v20 }

// kernel: meta_forward.5
= control target key start
LH: loop header
LB: loop body
LE: loop exit
PB: predicated region body
PF: predicated region fallthrough
CT: control target
= control target key end

     0   :  { %s1372_s12 = smov 0   ;;  %s1845_s0 = inlined_call_operand.vmem [shape: f32[2,256,96], index: 0, kind: input, shape index: {}]   ;;  %s1846_s1 = inlined_call_operand.vmem [shape: s32[2,1,96], index: 1, kind: input, shape index: {}]   ;;  %s1847_s2 = inlined_call_operand.vmem [shape: f32[2,1,128], index: 2, kind: output, shape index: {0}]   ;;  %s1848_s3 = inlined_call_operand.vmem [shape: f32[2,1,128], index: 3, kind: output, shape index: {1}]  }
   0x1 LB: > { %s1240_s13 = sadd.s32 4294967295, %s1347_s12   ;;  %p1244_p0 = scmp.ge.s32.totalorder %s1347_s12, 1  ;;  %s1347_s12 = sphi %s1372_s12, %s14_s12  }
   0x2   : > { %p148_p1 = scmp.lt.s32.totalorder %s1347_s12, 3 }
   0x4   : > { %p149_p2 = pnand %p1244_p0, %p148_p1 }
   0x5   : > { %p176_p3 = scmp.lt.s32.totalorder (!%p149_p2), %s1240_s13, 1 }
   0x6   : > { %152 = sbr.rel (%p149_p2) target bundleno = 668 (0x29c), region = 28 }
   0xb   : > { %v223_v0 = vlaneseq  ;;  %s1850_s13 = smov (!%p176_p3, %s1240_s13), 1  ;;  %vm229_vm0 = vcmask 785408   ;;  %v1349_v3 = vmov 0.0   ;;  %v1350_v7 = vmov 1.0  }
   0xc   : > { %s1318_s14 = sshll.u32 %s1850_s13, 8  ;;  %s183_s17 = scalar_lea.vmem %s1846_s1, %s1850_s13  ;;  %vm745_vm2 = vcmask 1042432   ;;  %vm648_vm7 = vcmask 23552  }
   0xd   : > { %v224_v1 = vshrl.u32 %v223_v0, 7  ;;  %v1332_v2 = vld [vmem:[%s183_s17] ss:$0 sm:$0xff]  ;;  %s1391_s20 = scalar_lea.vmem %s1845_s0, %s1318_s14  ;;  %s186_s23 = scalar_lea.vmem %s1847_s2, %s1850_s13 }
   0xe   : > { %v1400_v5 = vld [vmem:[%s1391_s20] sm:$0xff]  ;;  %v1403_v6 = vld [vmem:[%s1391_s20 + $0x88] sm:$0xff]  ;;  %v1416_v9 = vld [vmem:[%s1391_s20 + $0x90] sm:$0xff]  ;;  %s189_s26 = scalar_lea.vmem %s1848_s3, %s1850_s13 }
   0xf   : > { %vm226_vm1 = vcmp.eq.s32.totalorder %v224_v1, %v1332_v2  ;;  %v1413_v8 = vld [vmem:[%s1391_s20 + $0x8] sm:$0xff]  ;;  %v1423_v10 = vld [vmem:[%s1391_s20 + $0x10] sm:$0xff]  ;;  %v1426_v11 = vld [vmem:[%s1391_s20 + $0x98] sm:$0xff]  ;;  %v230_v40 = vsel %vm229_vm0, %v1400_v5, 0.0 }
  0x10   : > { %v1393_v4 = vsel %vm226_vm1, 1.0, %v1349_v3  ;;  %v1433_v12 = vld [vmem:[%s1391_s20 + $0x18] sm:$0xff]  ;;  %v1436_v13 = vld [vmem:[%s1391_s20 + $0xa0] sm:$0xff]  ;;  %v1446_v15 = vld [vmem:[%s1391_s20 + $0xa8] sm:$0xff]  ;;  %231 = vadd.xlane.f32.xlu0 %v230_v40  ;;  %v233_v44 = vsel %vm229_vm0, %v1413_v8, 0.0  ;;  %v236_v50 = vsel %vm229_vm0, %v1423_v10, 0.0 }
  0x11   : > { %1248 = vmatpush.xpose.msk.msra.mxu0 %vm229_vm0, %v1393_v4  ;;  %1319 = vmatpush.xpose.msk.msra.mxu3 %vm229_vm0, %v1393_v4  ;;  %v1443_v14 = vld [vmem:[%s1391_s20 + $0x20] sm:$0xff]  ;;  %v1453_v16 = vld [vmem:[%s1391_s20 + $0x28] sm:$0xff]  ;;  %v1456_v17 = vld [vmem:[%s1391_s20 + $0xb0] sm:$0xff]  ;;  %v239_v59 = vsel %vm229_vm0, %v1433_v12, 0.0 }
  0x12   : > { %1281 = vmatpush.xpose.msk.msra.mxu1 %vm229_vm0, %v1393_v4  ;;  %v1463_v18 = vld [vmem:[%s1391_s20 + $0x30] sm:$0xff]  ;;  %v1466_v19 = vld [vmem:[%s1391_s20 + $0xb8] sm:$0xff]  ;;  %v1476_v21 = vld [vmem:[%s1391_s20 + $0xc0] sm:$0xff]  ;;  %1320 = vmatpush.msk.msra.mxu2 %vm745_vm2, %v1393_v4  ;;  %v242_v61 = vsel %vm229_vm0, %v1443_v14, 0.0  ;;  %v245_v1 = vsel %vm229_vm0, %v1453_v16, 0.0 }
  0x13   : > { %v1473_v20 = vld [vmem:[%s1391_s20 + $0x38] sm:$0xff]  ;;  %v1483_v22 = vld [vmem:[%s1391_s20 + $0x40] sm:$0xff]  ;;  %v1486_v23 = vld [vmem:[%s1391_s20 + $0xc8] sm:$0xff]  ;;  %237 = vadd.xlane.f32.xlu1 %v236_v50  ;;  %243 = vadd.xlane.f32.xlu2 %v242_v61 }
  0x14   : > { %1249 = vmatmul.msk.f32.vlgmr.msra.gmra.mxu0 %vm229_vm0, %v1400_v5  ;;  %1266 = vmatmul.msk.f32.vlgmr.msra.gmra.mxu3 %vm229_vm0, %v1403_v6  ;;  %v1493_v24 = vld [vmem:[%s1391_s20 + $0x48] sm:$0xff]  ;;  %v1496_v25 = vld [vmem:[%s1391_s20 + $0xd0] sm:$0xff]  ;;  %v1506_v27 = vld [vmem:[%s1391_s20 + $0xd8] sm:$0xff] }
  0x15   : > { %1282 = vmatmul.msk.f32.vlgmr.msra.gmra.mxu1 %vm229_vm0, %v1350_v7  ;;  %v1503_v26 = vld [vmem:[%s1391_s20 + $0x50] sm:$0xff]  ;;  %v1513_v28 = vld [vmem:[%s1391_s20 + $0x58] sm:$0xff]  ;;  %v1516_v29 = vld [vmem:[%s1391_s20 + $0xe0] sm:$0xff]  ;;  %v248_v7 = vsel %vm229_vm0, %v1463_v18, 0.0 }
  0x16   : > { %v1523_v30 = vld [vmem:[%s1391_s20 + $0x60] sm:$0xff]  ;;  %v1526_v31 = vld [vmem:[%s1391_s20 + $0xe8] sm:$0xff]  ;;  %v1536_v33 = vld [vmem:[%s1391_s20 + $0xf0] sm:$0xff]  ;;  %1283 = vmatpush.msk.msrb.mxu1 %vm745_vm2, %v1393_v4 }
  0x17   : > { %v1533_v32 = vld [vmem:[%s1391_s20 + $0x68] sm:$0xff]  ;;  %v1543_v34 = vld [vmem:[%s1391_s20 + $0x70] sm:$0xff]  ;;  %v1546_v35 = vld [vmem:[%s1391_s20 + $0xf8] sm:$0xff] }
  0x18   : > { %v1553_v36 = vld [vmem:[%s1391_s20 + $0x78] sm:$0xff]  ;;  %v1560_v38 = vld [vmem:[%s1391_s20 + $0x80] sm:$0xff]  ;;  %234 = vadd.xlane.f32.xlu0 %v233_v44 }
  0x19   : > { %v275_v61 = vsel %vm229_vm0, %v1553_v36, 0.0 }
  0x1b   : > { %240 = vadd.xlane.f32.xlu1 %v239_v59  ;;  %246 = vadd.xlane.f32.xlu2 %v245_v1 }
  0x1c   : > { %1250 = vmatmul.msk.f32.gmra.mxu0 %vm229_vm0, %v1413_v8  ;;  %1267 = vmatmul.msk.f32.gmra.mxu3 %vm229_vm0, %v1416_v9 }
  0x20   : > { %249 = vadd.xlane.f32.xlu0 %v248_v7 }
  0x24   : > { %1251 = vmatmul.msk.f32.gmra.mxu0 %vm229_vm0, %v1423_v10  ;;  %1268 = vmatmul.msk.f32.gmra.mxu3 %vm229_vm0, %v1426_v11 }
  0x2c   : > { %1252 = vmatmul.msk.f32.gmra.mxu0 %vm229_vm0, %v1433_v12  ;;  %1269 = vmatmul.msk.f32.gmra.mxu3 %vm229_vm0, %v1436_v13 }
  0x34   : > { %1253 = vmatmul.msk.f32.gmra.mxu0 %vm229_vm0, %v1443_v14  ;;  %1270 = vmatmul.msk.f32.gmra.mxu3 %vm229_vm0, %v1446_v15 }
  0x3c   : > { %1254 = vmatmul.msk.f32.gmra.mxu0 %vm229_vm0, %v1453_v16  ;;  %1271 = vmatmul.msk.f32.gmra.mxu3 %vm229_vm0, %v1456_v17 }
  0x44   : > { %1255 = vmatmul.msk.f32.gmra.mxu0 %vm229_vm0, %v1463_v18  ;;  %1272 = vmatmul.msk.f32.gmra.mxu3 %vm229_vm0, %v1466_v19 }
  0x4c   : > { %1256 = vmatmul.msk.f32.gmra.mxu0 %vm229_vm0, %v1473_v20  ;;  %1273 = vmatmul.msk.f32.gmra.mxu3 %vm229_vm0, %v1476_v21 }
  0x54   : > { %1257 = vmatmul.msk.f32.gmra.mxu0 %vm229_vm0, %v1483_v22  ;;  %1274 = vmatmul.msk.f32.gmra.mxu3 %vm229_vm0, %v1486_v23 }
  0x5c   : > { %1258 = vmatmul.msk.f32.gmra.mxu0 %vm229_vm0, %v1493_v24  ;;  %1275 = vmatmul.msk.f32.gmra.mxu3 %vm229_vm0, %v1496_v25 }
  0x64   : > { %1259 = vmatmul.msk.f32.gmra.mxu0 %vm229_vm0, %v1503_v26  ;;  %1276 = vmatmul.msk.f32.gmra.mxu3 %vm229_vm0, %v1506_v27 }
  0x6c   : > { %1260 = vmatmul.msk.f32.gmra.mxu0 %vm229_vm0, %v1513_v28  ;;  %1277 = vmatmul.msk.f32.gmra.mxu3 %vm229_vm0, %v1516_v29 }
  0x74   : > { %1261 = vmatmul.msk.f32.gmra.mxu0 %vm229_vm0, %v1523_v30  ;;  %1278 = vmatmul.msk.f32.gmra.mxu3 %vm229_vm0, %v1526_v31 }
  0x7c   : > { %1262 = vmatmul.msk.f32.gmra.mxu0 %vm229_vm0, %v1533_v32  ;;  %1279 = vmatmul.msk.f32.gmra.mxu3 %vm229_vm0, %v1536_v33 }
  0x84   : > { %1263 = vmatmul.msk.f32.gmra.mxu0 %vm229_vm0, %v1543_v34  ;;  %1280 = vmatmul.msk.f32.gmra.mxu3 %vm229_vm0, %v1546_v35 }
  0x8c   : > { %1264 = vmatmul.msk.f32.gmra.mxu0 %vm229_vm0, %v1553_v36 }
  0x91   : > { %v481_v37 = vpop.f32.mrf.mxu0 }
  0x92   : > { %v597_v39 = vpop.f32.mrf.mxu1 }
  0x93   : > { %v600_v41 = vmax.f32 %v597_v39, 1.0  ;;  %v251_v39 = vsel %vm229_vm0, %v1473_v20, 0.0 }
  0x94   : > { %1265 = vmatmul.msk.f32.gmra.mxu0 %vm229_vm0, %v1560_v38  ;;  %252 = vadd.xlane.f32.xlu1 %v251_v39 }
  0x95   : > { %v601_v42 = vperm.slane %v600_v41, 0 }
  0x97   : > { %1333 = vrcp.f32 %v601_v42  ;;  %vm607_vm3 = vweird.f32 %v601_v42  ;;  %v613_v47 = vand.u32 2147483648, %v601_v42  ;;  %v611_v49 = vand.u32 2147483647, %v601_v42 }
  0x99   : > { %v484_v43 = vpop.f32.mrf.mxu0  ;;  %v614_v53 = vor.u32 1.1754944e-38, %v613_v47  ;;  %vm612_vm6 = vcmp.eq.f32.partialorder %v611_v49, 8.507059e+37 }
  0x9d   : > { %v1334_v45 = vpop.eup %1333 }
  0x9e   : > { %v603_v46 = vmul.f32 %v1334_v45, %v601_v42  ;;  %vm608_vm4 = vweird.f32 %v1334_v45  ;;  %v254_v42 = vsel %vm229_vm0, %v1483_v22, 0.0 }
  0x9f   : > { %vm609_vm5 = vmor %vm607_vm3, %vm608_vm4  ;;  %255 = vadd.xlane.f32.xlu2 %v254_v42 }
  0xa0   : > { %v604_v48 = vsub.f32 1.0, %v603_v46  ;;  %v257_v46 = vsel %vm229_vm0, %v1493_v24, 0.0 }
  0xa1   : > { %v487_v51 = vpop.f32.mrf.mxu0  ;;  %258 = vadd.xlane.f32.xlu0 %v257_v46  ;;  %v284_v46 = vsel %vm229_vm0, %v1416_v9, 0.0 }
  0xa2   : > { %v605_v52 = vmul.f32 %v1334_v45, %v604_v48  ;;  %v260_v48 = vsel %vm229_vm0, %v1503_v26, 0.0 }
  0xa3   : > { %261 = vadd.xlane.f32.xlu1 %v260_v48 }
  0xa4   : > { %v606_v54 = vadd.f32 %v1334_v45, %v605_v52 }
  0xa6   : > { %v610_v55 = vsel %vm609_vm5, %v1334_v45, %v606_v54 }
  0xa7   : > { %v1570_v56 = vsel %vm612_vm6, %v614_v53, %v610_v55  ;;  %v266_v55 = vsel %vm229_vm0, %v1523_v30, 0.0 }
  0xa8   : > { %v616_v57 = vmul.f32 %v1570_v56, %v481_v37  ;;  %v617_v60 = vmul.f32 %v1570_v56, %v484_v43  ;;  %v618_v63 = vmul.f32 %v1570_v56, %v487_v51  ;;  %v263_v51 = vsel %vm229_vm0, %v1513_v28, 0.0 }
  0xa9   : > { %v490_v58 = vpop.f32.mrf.mxu0  ;;  %264 = vadd.xlane.f32.xlu2 %v263_v51  ;;  %267 = vadd.xlane.f32.xlu0 %v266_v55  ;;  %v232_v55 = vpop.xlane.xlu0 %231 }
  0xaa   : > { %1284 = vmatmul.msk.f32.vlgmr.msrb.gmra.mxu1 %vm648_vm7, %v616_v57  ;;  %v619_v3 = vmul.f32 %v1570_v56, %v490_v58  ;;  %v269_v57 = vsel %vm229_vm0, %v1533_v32, 0.0  ;;  %v532_v58 = vpop.f32.mrf.mxu3 }
  0xab   : > { %270 = vadd.xlane.f32.xlu1 %v269_v57  ;;  %v633_v51 = vmul.f32 %v1570_v56, %v532_v58 }
  0xb1   : > { %v493_v62 = vpop.f32.mrf.mxu0  ;;  %276 = vadd.xlane.f32.xlu0 %v275_v61 }
  0xb2   : > { %1285 = vmatmul.msk.f32.gmra.mxu1 %vm648_vm7, %v617_v60  ;;  %v620_v37 = vmul.f32 %v1570_v56, %v493_v62  ;;  %v272_v62 = vsel %vm229_vm0, %v1543_v34, 0.0 }
  0xb3   : > { %273 = vadd.xlane.f32.xlu2 %v272_v62 }
  0xb9   : > { %v496_v2 = vpop.f32.mrf.mxu0  ;;  %285 = vadd.xlane.f32.xlu0 %v284_v46 }
  0xba   : > { %1286 = vmatmul.msk.f32.gmra.mxu1 %vm648_vm7, %v618_v63  ;;  %v621_v41 = vmul.f32 %v1570_v56, %v496_v2  ;;  %v278_v63 = vsel %vm229_vm0, %v1560_v38, 0.0  ;;  %v535_v2 = vpop.f32.mrf.mxu3 }
  0xbb   : > { %279 = vadd.xlane.f32.xlu1 %v278_v63 }
  0xc1   : > { %v499_v4 = vpop.f32.mrf.mxu0 }
  0xc2   : > { %1287 = vmatmul.msk.f32.gmra.mxu1 %vm648_vm7, %v619_v3  ;;  %v622_v44 = vmul.f32 %v1570_v56, %v499_v4  ;;  %v538_v39 = vpop.f32.mrf.mxu3 }
  0xc9   : > { %v502_v40 = vpop.f32.mrf.mxu0 }
  0xca   : > { %1288 = vmatmul.msk.f32.gmra.mxu1 %vm648_vm7, %v620_v37  ;;  %v623_v47 = vmul.f32 %v1570_v56, %v502_v40  ;;  %v281_v40 = vsel %vm229_vm0, %v1403_v6, 0.0 }
  0xcb   : > { %282 = vadd.xlane.f32.xlu2 %v281_v40 }
  0xd1   : > { %v505_v43 = vpop.f32.mrf.mxu0 }
  0xd2   : > { %1289 = vmatmul.msk.f32.gmra.mxu1 %vm648_vm7, %v621_v41  ;;  %v624_v50 = vmul.f32 %v1570_v56, %v505_v43  ;;  %v1351_v41 = vmov 96.0  }
  0xd3   : > { %1335 = vrcp.f32 %v1351_v41  ;;  %v238_v41 = vpop.xlane.xlu1 %237 }
  0xd9   : > { %v508_v45 = vpop.f32.mrf.mxu0 }
  0xda   : > { %1290 = vmatmul.msk.f32.gmra.mxu1 %vm648_vm7, %v622_v44  ;;  %v625_v53 = vmul.f32 %v1570_v56, %v508_v45  ;;  %v1336_v44 = vpop.eup %1335 }
  0xdb   : > { %v327_v48 = vmul.f32 96.0, %v1336_v44  ;;  %vm331_vm8 = vweird.f32 %v1336_v44 }
  0xe1   : > { %v511_v49 = vpop.f32.mrf.mxu0 }
  0xe2   : > { %1291 = vmatmul.msk.f32.gmra.mxu1 %vm648_vm7, %v623_v47  ;;  %v626_v59 = vmul.f32 %v1570_v56, %v511_v49  ;;  %v541_v47 = vpop.f32.mrf.mxu3 }
  0xe9   : > { %v514_v52 = vpop.f32.mrf.mxu0 }
  0xea   : > { %1292 = vmatmul.msk.f32.gmra.mxu1 %vm648_vm7, %v624_v50  ;;  %v627_v1 = vmul.f32 %v1570_v56, %v514_v52  ;;  %v328_v50 = vsub.f32 1.0, %v327_v48  ;;  %v287_v52 = vsel %vm229_vm0, %v1426_v11, 0.0 }
  0xeb   : > { %288 = vadd.xlane.f32.xlu1 %v287_v52 }
  0xf1   : > { %v517_v54 = vpop.f32.mrf.mxu0 }
  0xf2   : > { %1293 = vmatmul.msk.f32.gmra.mxu1 %vm648_vm7, %v625_v53  ;;  %v628_v4 = vmul.f32 %v1570_v56, %v517_v54  ;;  %v329_v53 = vmul.f32 %v1336_v44, %v328_v50  ;;  %v544_v54 = vpop.f32.mrf.mxu3  ;;  %v296_v50 = vsel %vm229_vm0, %v1456_v17, 0.0 }
  0xf3   : > { %297 = vadd.xlane.f32.xlu1 %v296_v50 }
  0xf4   : > { %v330_v57 = vadd.f32 %v1336_v44, %v329_v53 }
  0xf6   : > { %v1646_v58 = vsel %vm331_vm8, %v1336_v44, %v330_v57 }
  0xf7   : > { %v333_v62 = vmul.f32 %v1646_v58, %v232_v55 }
  0xf9   : > { %v520_v60 = vpop.f32.mrf.mxu0 }
  0xfa   : > { %1294 = vmatmul.msk.f32.gmra.mxu1 %vm648_vm7, %v626_v59  ;;  %v629_v42 = vmul.f32 %v1570_v56, %v520_v60  ;;  %v634_v59 = vmul.f32 %v1570_v56, %v535_v2  ;;  %v290_v60 = vsel %vm229_vm0, %v1436_v13, 0.0  ;;  %v547_v63 = vpop.f32.mrf.mxu3 }
  0xfb   : > { %291 = vadd.xlane.f32.xlu2 %v290_v60 }
 0x101   : > { %v523_v3 = vpop.f32.mrf.mxu0 }
 0x102   : > { %1295 = vmatmul.msk.f32.gmra.mxu1 %vm648_vm7, %v627_v1  ;;  %v630_v49 = vmul.f32 %v1570_v56, %v523_v3  ;;  %v235_v1 = vpop.xlane.xlu0 %234  ;;  %v635_v3 = vmul.f32 %v1570_v56, %v538_v39  ;;  %v636_v39 = vmul.f32 %v1570_v56, %v541_v47 }
 0x109   : > { %v526_v7 = vpop.f32.mrf.mxu0 }
 0x10a   : > { %v631_v37 = vmul.f32 %v1570_v56, %v526_v7  ;;  %1296 = vmatmul.msk.f32.gmra.mxu1 %vm648_vm7, %v628_v4  ;;  %v293_v4 = vsel %vm229_vm0, %v1446_v15, 0.0 }
 0x10b   : > { %294 = vadd.xlane.f32.xlu0 %v293_v4  ;;  %v299_v4 = vsel %vm229_vm0, %v1466_v19, 0.0 }
 0x10c   : > { %1299 = vmatmul.msk.f32.vlgmr.msra.gmra.mxu2 %vm648_vm7, %v631_v37  ;;  %v334_v37 = vmul.f32 %v1646_v58, %v235_v1  ;;  %300 = vadd.xlane.f32.xlu2 %v299_v4 }
 0x111   : > { %v529_v43 = vpop.f32.mrf.mxu0 }
 0x112   : > { %v632_v45 = vmul.f32 %v1570_v56, %v529_v43  ;;  %1297 = vmatmul.msk.f32.gmra.mxu1 %vm648_vm7, %v629_v42 }
 0x114   : > { %1300 = vmatmul.msk.f32.gmra.mxu2 %vm648_vm7, %v632_v45 }
 0x11a   : > { %1298 = vmatmul.msk.f32.gmra.mxu1 %vm648_vm7, %v630_v49  ;;  %v550_v49 = vpop.f32.mrf.mxu3 }
 0x11c   : > { %1301 = vmatmul.msk.f32.gmra.mxu2 %vm648_vm7, %v633_v51 }
 0x124   : > { %1302 = vmatmul.msk.f32.gmra.mxu2 %vm648_vm7, %v634_v59 }
 0x127   : > { %v765_v61 = vpop.f32.mrf.mxu1 }
 0x128   : > { %v861_v2 = vsub.f32 %v1400_v5, %v765_v61  ;;  %v994_v7 = vsub.f32 %v765_v61, %v333_v62  ;;  %v335_v5 = vmul.f32 %v1646_v58, %v238_v41  ;;  %v241_v61 = vpop.xlane.xlu1 %240  ;;  %v637_v62 = vmul.f32 %v1570_v56, %v544_v54 }
 0x12a   : > { %v893_v42 = vmul.f32 %v861_v2, %v861_v2  ;;  %v1026_v43 = vmul.f32 %v994_v7, %v994_v7 }
 0x12c   : > { %1303 = vmatmul.msk.f32.gmra.mxu2 %vm648_vm7, %v635_v3  ;;  %v925_v51 = vsel %vm229_vm0, %v893_v42, 0.0  ;;  %v1058_v52 = vsel %vm229_vm0, %v1026_v43, 0.0 }
 0x12f   : > { %v768_v40 = vpop.f32.mrf.mxu1 }
 0x130   : > { %v862_v44 = vsub.f32 %v1413_v8, %v768_v40  ;;  %v995_v45 = vsub.f32 %v768_v40, %v334_v37  ;;  %v336_v37 = vmul.f32 %v1646_v58, %v241_v61  ;;  %v553_v40 = vpop.f32.mrf.mxu3  ;;  %v311_v61 = vsel %vm229_vm0, %v1506_v27, 0.0 }
 0x132   : > { %v894_v46 = vmul.f32 %v862_v44, %v862_v44  ;;  %v1027_v48 = vmul.f32 %v995_v45, %v995_v45  ;;  %v638_v44 = vmul.f32 %v1570_v56, %v547_v63  ;;  %v639_v63 = vmul.f32 %v1570_v56, %v550_v49 }
 0x134   : > { %v926_v53 = vsel %vm229_vm0, %v894_v46, 0.0  ;;  %v1059_v55 = vsel %vm229_vm0, %v1027_v48, 0.0  ;;  %1304 = vmatmul.msk.f32.gmra.mxu2 %vm648_vm7, %v636_v39  ;;  %v302_v46 = vsel %vm229_vm0, %v1476_v21, 0.0 }
 0x135   : > { %v927_v8 = vadd.f32 %v926_v53, %v925_v51  ;;  %v1060_v47 = vadd.f32 %v1059_v55, %v1058_v52  ;;  %303 = vadd.xlane.f32.xlu0 %v302_v46  ;;  %v305_v53 = vsel %vm229_vm0, %v1486_v23, 0.0 }
 0x136   : > { %306 = vadd.xlane.f32.xlu1 %v305_v53 }
 0x137   : > { %v771_v57 = vpop.f32.mrf.mxu1 }
 0x138   : > { %v863_v59 = vsub.f32 %v1423_v10, %v771_v57  ;;  %v996_v60 = vsub.f32 %v771_v57, %v335_v5  ;;  %v308_v57 = vsel %vm229_vm0, %v1496_v25, 0.0 }
 0x139   : > { %309 = vadd.xlane.f32.xlu2 %v308_v57 }
 0x13a   : > { %v895_v1 = vmul.f32 %v863_v59, %v863_v59  ;;  %v1028_v3 = vmul.f32 %v996_v60, %v996_v60 }
 0x13c   : > { %v928_v2 = vsel %vm229_vm0, %v895_v1, 0.0  ;;  %v1061_v7 = vsel %vm229_vm0, %v1028_v3, 0.0  ;;  %1305 = vmatmul.msk.f32.gmra.mxu2 %vm648_vm7, %v637_v62  ;;  %v314_v3 = vsel %vm229_vm0, %v1516_v29, 0.0 }
 0x13d   : > { %v929_v10 = vadd.f32 %v928_v2, %v927_v8  ;;  %v1062_v41 = vadd.f32 %v1061_v7, %v1060_v47  ;;  %v640_v47 = vmul.f32 %v1570_v56, %v553_v40  ;;  %312 = vadd.xlane.f32.xlu0 %v311_v61  ;;  %v317_v40 = vsel %vm229_vm0, %v1526_v31, 0.0 }
 0x13e   : > { %315 = vadd.xlane.f32.xlu1 %v314_v3 }
 0x13f   : > { %v774_v42 = vpop.f32.mrf.mxu1 }
 0x140   : > { %v864_v54 = vsub.f32 %v1433_v12, %v774_v42  ;;  %v997_v43 = vsub.f32 %v774_v42, %v336_v37  ;;  %v556_v12 = vpop.f32.mrf.mxu3  ;;  %v244_v37 = vpop.xlane.xlu2 %243 }
 0x141   : > { %v641_v60 = vmul.f32 %v1570_v56, %v556_v12  ;;  %318 = vadd.xlane.f32.xlu2 %v317_v40  ;;  %v323_v12 = vsel %vm229_vm0, %v1546_v35, 0.0 }
 0x142   : > { %v896_v45 = vmul.f32 %v864_v54, %v864_v54  ;;  %v1029_v39 = vmul.f32 %v997_v43, %v997_v43  ;;  %v320_v54 = vsel %vm229_vm0, %v1536_v33, 0.0  ;;  %v250_v43 = vpop.xlane.xlu0 %249 }
 0x144   : > { %v930_v48 = vsel %vm229_vm0, %v896_v45, 0.0  ;;  %v1063_v5 = vsel %vm229_vm0, %v1029_v39, 0.0  ;;  %1306 = vmatmul.msk.f32.gmra.mxu2 %vm648_vm7, %v638_v44  ;;  %v253_v45 = vpop.xlane.xlu1 %252 }
 0x145   : > { %v1680_v50 = vadd.f32 %v930_v48, %v929_v10  ;;  %v1682_v51 = vadd.f32 %v1063_v5, %v1062_v41  ;;  %321 = vadd.xlane.f32.xlu0 %v320_v54  ;;  %v337_v48 = vmul.f32 %v1646_v58, %v244_v37  ;;  %v340_v35 = vmul.f32 %v1646_v58, %v253_v45 }
 0x146   : > { %324 = vadd.xlane.f32.xlu1 %v323_v12 }
 0x147   : > { %v777_v52 = vpop.f32.mrf.mxu1 }
 0x148   : > { %v559_v8 = vpop.f32.mrf.mxu3  ;;  %v247_v44 = vpop.xlane.xlu2 %246 }
 0x149   : > { %v642_v1 = vmul.f32 %v1570_v56, %v559_v8  ;;  %v338_v53 = vmul.f32 %v1646_v58, %v247_v44  ;;  %v998_v8 = vsub.f32 %v777_v52, %v337_v48 }
 0x14a   : > { %v259_v33 = vpop.xlane.xlu0 %258 }
 0x14c   : > { %1307 = vmatmul.msk.f32.gmra.mxu2 %vm648_vm7, %v639_v63  ;;  %v865_v63 = vsub.f32 %v1443_v14, %v777_v52 }
 0x14f   : > { %v780_v55 = vpop.f32.mrf.mxu1 }
 0x150   : > { %v562_v49 = vpop.f32.mrf.mxu3  ;;  %v866_v57 = vsub.f32 %v1453_v16, %v780_v55  ;;  %v999_v3 = vsub.f32 %v780_v55, %v338_v53 }
 0x151   : > { %v643_v7 = vmul.f32 %v1570_v56, %v562_v49  ;;  %v262_v49 = vpop.xlane.xlu1 %261 }
 0x152   : > { %v898_v40 = vmul.f32 %v866_v57, %v866_v57  ;;  %v268_v44 = vpop.xlane.xlu0 %267 }
 0x154   : > { %1308 = vmatmul.msk.f32.gmra.mxu2 %vm648_vm7, %v640_v47  ;;  %v256_v47 = vpop.xlane.xlu2 %255 }
 0x157   : > { %v783_v59 = vpop.f32.mrf.mxu1 }
 0x158   : > { %v565_v4 = vpop.f32.mrf.mxu3  ;;  %v867_v14 = vsub.f32 %v1463_v18, %v783_v59 }
 0x159   : > { %v644_v42 = vmul.f32 %v1570_v56, %v565_v4  ;;  %v1030_v4 = vmul.f32 %v998_v8, %v998_v8  ;;  %v271_v57 = vpop.xlane.xlu1 %270 }
 0x15a   : > { %v899_v45 = vmul.f32 %v867_v14, %v867_v14 }
 0x15b   : > { %v1065_v18 = vsel %vm229_vm0, %v1030_v4, 0.0 }
 0x15c   : > { %1309 = vmatmul.msk.f32.gmra.mxu2 %vm648_vm7, %v641_v60  ;;  %v339_v60 = vmul.f32 %v1646_v58, %v250_v43  ;;  %v1031_v43 = vmul.f32 %v999_v3, %v999_v3  ;;  %v936_v3 = vsel %vm229_vm0, %v899_v45, 0.0  ;;  %v277_v45 = vpop.xlane.xlu0 %276 }
 0x15e   : > { %v1000_v52 = vsub.f32 %v783_v59, %v339_v60  ;;  %v1066_v60 = vadd.f32 %v1065_v18, %v1682_v51 }
 0x15f   : > { %v786_v62 = vpop.f32.mrf.mxu1 }
 0x160   : > { %v568_v10 = vpop.f32.mrf.mxu3  ;;  %v868_v16 = vsub.f32 %v1473_v20, %v786_v62  ;;  %v1001_v55 = vsub.f32 %v786_v62, %v340_v35  ;;  %v934_v20 = vsel %vm229_vm0, %v898_v40, 0.0  ;;  %v1032_v12 = vmul.f32 %v1000_v52, %v1000_v52 }
 0x161   : > { %v645_v5 = vmul.f32 %v1570_v56, %v568_v10 }
 0x162   : > { %v900_v62 = vmul.f32 %v868_v16, %v868_v16  ;;  %v346_v16 = vmul.f32 %v1646_v58, %v271_v57 }
 0x164   : > { %1310 = vmatmul.msk.f32.gmra.mxu2 %vm648_vm7, %v642_v1  ;;  %v897_v1 = vmul.f32 %v865_v63, %v865_v63  ;;  %v343_v63 = vmul.f32 %v1646_v58, %v262_v49  ;;  %v938_v51 = vsel %vm229_vm0, %v900_v62, 0.0 }
 0x166   : > { %v932_v54 = vsel %vm229_vm0, %v897_v1, 0.0 }
 0x167   : > { %v789_v2 = vpop.f32.mrf.mxu1  ;;  %v933_v53 = vadd.f32 %v932_v54, %v1680_v50  ;;  %v1069_v50 = vsel %vm229_vm0, %v1032_v12, 0.0 }
 0x168   : > { %v571_v46 = vpop.f32.mrf.mxu3  ;;  %v869_v48 = vsub.f32 %v1483_v22, %v789_v2  ;;  %v1067_v22 = vsel %vm229_vm0, %v1031_v43, 0.0 }
 0x169   : > { %v646_v37 = vmul.f32 %v1570_v56, %v571_v46  ;;  %v935_v1 = vadd.f32 %v934_v20, %v933_v53  ;;  %v1068_v14 = vadd.f32 %v1067_v22, %v1066_v60 }
 0x16a   : > { %v901_v35 = vmul.f32 %v869_v48, %v869_v48 }
 0x16b   : > { %v1070_v54 = vadd.f32 %v1069_v50, %v1068_v14 }
 0x16c   : > { %1311 = vmatmul.msk.f32.gmra.mxu2 %vm648_vm7, %v643_v7  ;;  %v341_v7 = vmul.f32 %v1646_v58, %v256_v47 }
 0x16e   : > { %v1002_v46 = vsub.f32 %v789_v2, %v341_v7  ;;  %v1033_v2 = vmul.f32 %v1001_v55, %v1001_v55 }
 0x16f   : > { %v792_v41 = vpop.f32.mrf.mxu1 }
 0x170   : > { %v574_v10 = vpop.f32.mrf.mxu3  ;;  %v1034_v49 = vmul.f32 %v1002_v46, %v1002_v46  ;;  %v1071_v40 = vsel %vm229_vm0, %v1033_v2, 0.0 }
 0x171   : > { %v647_v59 = vmul.f32 %v1570_v56, %v574_v10 }
 0x174   : > { %1312 = vmatmul.msk.f32.gmra.mxu2 %vm648_vm7, %v644_v42  ;;  %v342_v42 = vmul.f32 %v1646_v58, %v259_v33  ;;  %v870_v33 = vsub.f32 %v1493_v24, %v792_v41 }
 0x176   : > { %v1003_v8 = vsub.f32 %v792_v41, %v342_v42  ;;  %v345_v41 = vmul.f32 %v1646_v58, %v268_v44  ;;  %v902_v7 = vmul.f32 %v870_v33, %v870_v33  ;;  %v937_v42 = vadd.f32 %v936_v3, %v935_v1 }
 0x177   : > { %v795_v39 = vpop.f32.mrf.mxu1 }
 0x178   : > { %v871_v4 = vsub.f32 %v1503_v26, %v795_v39  ;;  %v1004_v24 = vsub.f32 %v795_v39, %v343_v63  ;;  %v940_v26 = vsel %vm229_vm0, %v901_v35, 0.0  ;;  %v1073_v39 = vsel %vm229_vm0, %v1034_v49, 0.0 }
 0x179   : > { %v939_v46 = vadd.f32 %v938_v51, %v937_v42 }
 0x17a   : > { %v903_v43 = vmul.f32 %v871_v4, %v871_v4  ;;  %v1036_v55 = vmul.f32 %v1004_v24, %v1004_v24 }
 0x17b   : > { %v941_v33 = vadd.f32 %v940_v26, %v939_v46 }
 0x17c   : > { %1313 = vmatmul.msk.f32.gmra.mxu2 %vm648_vm7, %v645_v5  ;;  %v265_v5 = vpop.xlane.xlu2 %264  ;;  %v944_v57 = vsel %vm229_vm0, %v903_v43, 0.0  ;;  %v1077_v60 = vsel %vm229_vm0, %v1036_v55, 0.0 }
 0x17d   : > { %v344_v56 = vmul.f32 %v1646_v58, %v265_v5 }
 0x17f   : > { %v798_v61 = vpop.f32.mrf.mxu1 }
 0x180   : > { %v872_v52 = vsub.f32 %v1513_v28, %v798_v61  ;;  %v1005_v10 = vsub.f32 %v798_v61, %v344_v56  ;;  %v1072_v28 = vadd.f32 %v1071_v40, %v1070_v54  ;;  %v942_v61 = vsel %vm229_vm0, %v902_v7, 0.0 }
 0x181   : > { %v943_v56 = vadd.f32 %v942_v61, %v941_v33 }
 0x182   : > { %v904_v12 = vmul.f32 %v872_v52, %v872_v52  ;;  %v1037_v63 = vmul.f32 %v1005_v10, %v1005_v10 }
 0x183   : > { %v945_v24 = vadd.f32 %v944_v57, %v943_v56 }
 0x184   : > { %1314 = vmatmul.msk.f32.gmra.mxu2 %vm648_vm7, %v646_v37  ;;  %v1035_v37 = vmul.f32 %v1003_v8, %v1003_v8  ;;  %v274_v48 = vpop.xlane.xlu2 %273  ;;  %v1074_v8 = vadd.f32 %v1073_v39, %v1072_v28  ;;  %v946_v49 = vsel %vm229_vm0, %v904_v12, 0.0 }
 0x185   : > { %v347_v50 = vmul.f32 %v1646_v58, %v274_v48  ;;  %v947_v40 = vadd.f32 %v946_v49, %v945_v24 }
 0x186   : > { %v1075_v5 = vsel %vm229_vm0, %v1035_v37, 0.0 }
 0x187   : > { %v801_v47 = vpop.f32.mrf.mxu1  ;;  %v1076_v1 = vadd.f32 %v1075_v5, %v1074_v8 }
 0x188   : > { %v873_v44 = vsub.f32 %v1523_v30, %v801_v47  ;;  %v1006_v18 = vsub.f32 %v801_v47, %v345_v41  ;;  %v348_v30 = vmul.f32 %v1646_v58, %v277_v45  ;;  %v280_v47 = vpop.xlane.xlu1 %279 }
 0x189   : > { %v349_v4 = vmul.f32 %v1646_v58, %v280_v47  ;;  %v1078_v41 = vadd.f32 %v1077_v60, %v1076_v1 }
 0x18a   : > { %v905_v22 = vmul.f32 %v873_v44, %v873_v44  ;;  %v1038_v2 = vmul.f32 %v1006_v18, %v1006_v18 }
 0x18c   : > { %1315 = vmatmul.msk.f32.gmra.mxu2 %vm648_vm7, %v647_v59  ;;  %v948_v14 = vsel %vm229_vm0, %v905_v22, 0.0  ;;  %v1081_v51 = vsel %vm229_vm0, %v1038_v2, 0.0  ;;  %v283_v44 = vpop.xlane.xlu2 %282 }
 0x18d   : > { %v949_v18 = vadd.f32 %v948_v14, %v947_v40 }
 0x18f   : > { %v804_v59 = vpop.f32.mrf.mxu1  ;;  %v810_v20 = vpop.f32.mrf.mxu2 }
 0x190   : > { %v874_v53 = vsub.f32 %v1533_v32, %v804_v59  ;;  %v1007_v62 = vsub.f32 %v804_v59, %v346_v16  ;;  %v1079_v32 = vsel %vm229_vm0, %v1037_v63, 0.0  ;;  %v876_v7 = vsub.f32 %v1553_v36, %v810_v20 }
 0x191   : > { %v1009_v37 = vsub.f32 %v810_v20, %v348_v30  ;;  %v1080_v52 = vadd.f32 %v1079_v32, %v1078_v41  ;;  %v350_v59 = vmul.f32 %v1646_v58, %v283_v44 }
 0x192   : > { %v906_v3 = vmul.f32 %v874_v53, %v874_v53  ;;  %v1039_v35 = vmul.f32 %v1007_v62, %v1007_v62  ;;  %v908_v48 = vmul.f32 %v876_v7, %v876_v7 }
 0x193   : > { %v1082_v45 = vadd.f32 %v1081_v51, %v1080_v52  ;;  %v1041_v36 = vmul.f32 %v1009_v37, %v1009_v37  ;;  %v289_v37 = vpop.xlane.xlu1 %288 }
 0x194   : > { %v950_v10 = vsel %vm229_vm0, %v906_v3, 0.0  ;;  %v1083_v16 = vsel %vm229_vm0, %v1039_v35, 0.0  ;;  %v954_v62 = vsel %vm229_vm0, %v908_v48, 0.0  ;;  %v286_v3 = vpop.xlane.xlu0 %285 }
 0x195   : > { %v951_v61 = vadd.f32 %v950_v10, %v949_v18  ;;  %v1084_v5 = vadd.f32 %v1083_v16, %v1082_v45  ;;  %v1087_v33 = vsel %vm229_vm0, %v1041_v36, 0.0  ;;  %v352_v16 = vmul.f32 %v1646_v58, %v289_v37 }
 0x197   : > { %v807_v42 = vpop.f32.mrf.mxu1  ;;  %v813_v54 = vpop.f32.mrf.mxu2 }
 0x198   : > { %v875_v26 = vsub.f32 %v1543_v34, %v807_v42  ;;  %v1008_v39 = vsub.f32 %v807_v42, %v347_v50  ;;  %v877_v43 = vsub.f32 %v1560_v38, %v813_v54  ;;  %v1010_v55 = vsub.f32 %v813_v54, %v349_v4 }
 0x199   : > { %v351_v4 = vmul.f32 %v1646_v58, %v286_v3 }
 0x19a   : > { %v907_v46 = vmul.f32 %v875_v26, %v875_v26  ;;  %v1040_v28 = vmul.f32 %v1008_v39, %v1008_v39  ;;  %v909_v34 = vmul.f32 %v877_v43, %v877_v43  ;;  %v1042_v63 = vmul.f32 %v1010_v55, %v1010_v55  ;;  %v292_v55 = vpop.xlane.xlu2 %291 }
 0x19b   : > { %v353_v48 = vmul.f32 %v1646_v58, %v292_v55 }
 0x19c   : > { %v952_v20 = vsel %vm229_vm0, %v907_v46, 0.0  ;;  %v1085_v12 = vsel %vm229_vm0, %v1040_v28, 0.0  ;;  %v956_v57 = vsel %vm229_vm0, %v909_v34, 0.0  ;;  %v1089_v60 = vsel %vm229_vm0, %v1042_v63, 0.0 }
 0x19d   : > { %v953_v53 = vadd.f32 %v952_v20, %v951_v61  ;;  %v1086_v38 = vadd.f32 %v1085_v12, %v1084_v5 }
 0x19f   : > { %v955_v8 = vadd.f32 %v954_v62, %v953_v53  ;;  %v1088_v30 = vadd.f32 %v1087_v33, %v1086_v38  ;;  %v816_v47 = vpop.f32.mrf.mxu2 }
 0x1a0   : > { %v878_v22 = vsub.f32 %v1403_v6, %v816_v47  ;;  %v1011_v2 = vsub.f32 %v816_v47, %v350_v59  ;;  %v295_v47 = vpop.xlane.xlu0 %294 }
 0x1a1   : > { %v957_v56 = vadd.f32 %v956_v57, %v955_v8  ;;  %v1090_v1 = vadd.f32 %v1089_v60, %v1088_v30  ;;  %v298_v57 = vpop.xlane.xlu1 %297 }
 0x1a2   : > { %v910_v35 = vmul.f32 %v878_v22, %v878_v22  ;;  %v1043_v49 = vmul.f32 %v1011_v2, %v1011_v2  ;;  %v301_v60 = vpop.xlane.xlu2 %300 }
 0x1a4   : > { %v958_v32 = vsel %vm229_vm0, %v910_v35, 0.0  ;;  %v1091_v50 = vsel %vm229_vm0, %v1043_v49, 0.0 }
 0x1a5   : > { %v959_v24 = vadd.f32 %v958_v32, %v957_v56  ;;  %v1092_v41 = vadd.f32 %v1091_v50, %v1090_v1  ;;  %v355_v1 = vmul.f32 %v1646_v58, %v298_v57  ;;  %v356_v32 = vmul.f32 %v1646_v58, %v301_v60 }
 0x1a7   : > { %v819_v14 = vpop.f32.mrf.mxu2 }
 0x1a8   : > { %v879_v51 = vsub.f32 %v1416_v9, %v819_v14  ;;  %v1012_v7 = vsub.f32 %v819_v14, %v351_v4  ;;  %v304_v2 = vpop.xlane.xlu0 %303 }
 0x1a9   : > { %v307_v35 = vpop.xlane.xlu1 %306  ;;  %v357_v14 = vmul.f32 %v1646_v58, %v304_v2 }
 0x1aa   : > { %v911_v6 = vmul.f32 %v879_v51, %v879_v51  ;;  %v1044_v40 = vmul.f32 %v1012_v7, %v1012_v7  ;;  %v358_v37 = vmul.f32 %v1646_v58, %v307_v35 }
 0x1ac   : > { %v960_v52 = vsel %vm229_vm0, %v911_v6, 0.0  ;;  %v1093_v10 = vsel %vm229_vm0, %v1044_v40, 0.0  ;;  %v310_v50 = vpop.xlane.xlu2 %309 }
 0x1ad   : > { %v961_v42 = vadd.f32 %v960_v52, %v959_v24  ;;  %v1094_v54 = vadd.f32 %v1093_v10, %v1092_v41 }
 0x1af   : > { %v822_v26 = vpop.f32.mrf.mxu2 }
 0x1b0   : > { %v880_v39 = vsub.f32 %v1426_v11, %v822_v26  ;;  %v1013_v43 = vsub.f32 %v822_v26, %v352_v16 }
 0x1b2   : > { %v912_v44 = vmul.f32 %v880_v39, %v880_v39  ;;  %v1045_v18 = vmul.f32 %v1013_v43, %v1013_v43 }
 0x1b4   : > { %v962_v9 = vsel %vm229_vm0, %v912_v44, 0.0  ;;  %v1095_v45 = vsel %vm229_vm0, %v1045_v18, 0.0 }
 0x1b5   : > { %v963_v36 = vadd.f32 %v962_v9, %v961_v42  ;;  %v1096_v46 = vadd.f32 %v1095_v45, %v1094_v54 }
 0x1b7   : > { %v825_v28 = vpop.f32.mrf.mxu2 }
 0x1b8   : > { %v881_v61 = vsub.f32 %v1436_v13, %v825_v28  ;;  %v1014_v5 = vsub.f32 %v825_v28, %v353_v48  ;;  %v354_v13 = vmul.f32 %v1646_v58, %v295_v47 }
 0x1ba   : > { %v913_v59 = vmul.f32 %v881_v61, %v881_v61  ;;  %v1046_v20 = vmul.f32 %v1014_v5, %v1014_v5 }
 0x1bc   : > { %v964_v11 = vsel %vm229_vm0, %v913_v59, 0.0  ;;  %v1097_v12 = vsel %vm229_vm0, %v1046_v20, 0.0 }
 0x1bd   : > { %v965_v34 = vadd.f32 %v964_v11, %v963_v36  ;;  %v1098_v63 = vadd.f32 %v1097_v12, %v1096_v46  ;;  %v319_v36 = vpop.xlane.xlu2 %318 }
 0x1bf   : > { %v828_v53 = vpop.f32.mrf.mxu2 }
 0x1c0   : > { %v882_v56 = vsub.f32 %v1446_v15, %v828_v53  ;;  %v1015_v3 = vsub.f32 %v828_v53, %v354_v13  ;;  %v313_v15 = vpop.xlane.xlu0 %312 }
 0x1c1   : > { %v360_v18 = vmul.f32 %v1646_v58, %v313_v15 }
 0x1c2   : > { %v914_v24 = vmul.f32 %v882_v56, %v882_v56  ;;  %v1047_v51 = vmul.f32 %v1015_v3, %v1015_v3 }
 0x1c4   : > { %v966_v10 = vsel %vm229_vm0, %v914_v24, 0.0  ;;  %v1099_v54 = vsel %vm229_vm0, %v1047_v51, 0.0  ;;  %v1339_v51 = vld [vmem:[%s1391_s20 + $0xf0] sm:$0xff] }
 0x1c5   : > { %v967_v9 = vadd.f32 %v966_v10, %v965_v34  ;;  %v1100_v28 = vadd.f32 %v1099_v54, %v1098_v63 }
 0x1c7   : > { %v831_v38 = vpop.f32.mrf.mxu2 }
 0x1c8   : > { %v883_v49 = vsub.f32 %v1456_v17, %v831_v38  ;;  %v1016_v41 = vsub.f32 %v831_v38, %v355_v1  ;;  %v359_v17 = vmul.f32 %v1646_v58, %v310_v50  ;;  %v322_v53 = vpop.xlane.xlu0 %321 }
 0x1c9   : > { %v363_v13 = vmul.f32 %v1646_v58, %v322_v53 }
 0x1ca   : > { %v915_v6 = vmul.f32 %v883_v49, %v883_v49  ;;  %v1048_v16 = vmul.f32 %v1016_v41, %v1016_v41 }
 0x1cc   : > { %v968_v55 = vsel %vm229_vm0, %v915_v6, 0.0  ;;  %v1101_v61 = vsel %vm229_vm0, %v1048_v16, 0.0 }
 0x1cd   : > { %v969_v59 = vadd.f32 %v968_v55, %v967_v9 }
 0x1cf   : > { %v834_v62 = vpop.f32.mrf.mxu2 }
 0x1d0   : > { %v884_v7 = vsub.f32 %v1466_v19, %v834_v62  ;;  %v1017_v40 = vsub.f32 %v834_v62, %v356_v32  ;;  %v316_v19 = vpop.xlane.xlu1 %315  ;;  %v362_v62 = vmul.f32 %v1646_v58, %v319_v36 }
 0x1d2   : > { %v916_v26 = vmul.f32 %v884_v7, %v884_v7  ;;  %v1049_v44 = vmul.f32 %v1017_v40, %v1017_v40 }
 0x1d4   : > { %v970_v20 = vsel %vm229_vm0, %v916_v26, 0.0  ;;  %v1103_v34 = vsel %vm229_vm0, %v1049_v44, 0.0 }
 0x1d5   : > { %v971_v2 = vadd.f32 %v970_v20, %v969_v59 }
 0x1d7   : > { %v837_v33 = vpop.f32.mrf.mxu2 }
 0x1d8   : > { %v885_v52 = vsub.f32 %v1476_v21, %v837_v33  ;;  %v1018_v42 = vsub.f32 %v837_v33, %v357_v14  ;;  %v1102_v33 = vadd.f32 %v1101_v61, %v1100_v28  ;;  %v325_v15 = vpop.xlane.xlu1 %324 }
 0x1d9   : > { %v364_v54 = vmul.f32 %v1646_v58, %v325_v15  ;;  %v1152_v15 = vand.u32 127, %v223_v0 }
 0x1da   : > { %v917_v21 = vmul.f32 %v885_v52, %v885_v52  ;;  %v1050_v5 = vmul.f32 %v1018_v42, %v1018_v42  ;;  %v1104_v56 = vadd.f32 %v1103_v34, %v1102_v33 }
 0x1db   : > { %vm1153_vm13 = vcmp.eq.s32.totalorder %v1152_v15, 0  ;;  %vm1155_vm14 = vcmp.eq.s32.totalorder %v1152_v15, 1 }
 0x1dc   : > { %v972_v63 = vsel %vm229_vm0, %v917_v21, 0.0  ;;  %v1105_v47 = vsel %vm229_vm0, %v1050_v5, 0.0 }
 0x1dd   : > { %v973_v32 = vadd.f32 %v972_v63, %v971_v2  ;;  %v1106_v50 = vadd.f32 %v1105_v47, %v1104_v56 }
 0x1df   : > { %v840_v8 = vpop.f32.mrf.mxu2 }
 0x1e0   : > { %v886_v39 = vsub.f32 %v1486_v23, %v840_v8  ;;  %v1019_v43 = vsub.f32 %v840_v8, %v358_v37  ;;  %v361_v23 = vmul.f32 %v1646_v58, %v316_v19  ;;  %v1340_v58 = vld [vmem:[%s1391_s20 + $0xf8] sm:$0xff] }
 0x1e2   : > { %v918_v11 = vmul.f32 %v886_v39, %v886_v39  ;;  %v1051_v12 = vmul.f32 %v1019_v43, %v1019_v43 }
 0x1e7   : > { %v843_v30 = vpop.f32.mrf.mxu2 }
 0x1e8   : > { %v887_v45 = vsub.f32 %v1496_v25, %v843_v30  ;;  %v1020_v48 = vsub.f32 %v843_v30, %v359_v17 }
 0x1ea   : > { %v919_v8 = vmul.f32 %v887_v45, %v887_v45  ;;  %v1052_v30 = vmul.f32 %v1020_v48, %v1020_v48 }
 0x1ec   : > { %v976_v24 = vsel %vm229_vm0, %v919_v8, 0.0 }
 0x1ef   : > { %v846_v22 = vpop.f32.mrf.mxu2 }
 0x1f0   : > { %v888_v38 = vsub.f32 %v1506_v27, %v846_v22  ;;  %v1021_v25 = vsub.f32 %v846_v22, %v360_v18  ;;  %v974_v27 = vsel %vm229_vm0, %v918_v11, 0.0  ;;  %v1107_v22 = vsel %vm229_vm0, %v1051_v12, 0.0 }
 0x1f1   : > { %v975_v6 = vadd.f32 %v974_v27, %v973_v32  ;;  %v1108_v40 = vadd.f32 %v1107_v22, %v1106_v50 }
 0x1f2   : > { %v920_v1 = vmul.f32 %v888_v38, %v888_v38  ;;  %v1053_v3 = vmul.f32 %v1021_v25, %v1021_v25 }
 0x1f3   : > { %v977_v16 = vadd.f32 %v976_v24, %v975_v6 }
 0x1f4   : > { %v978_v52 = vsel %vm229_vm0, %v920_v1, 0.0 }
 0x1f5   : > { %v979_v55 = vadd.f32 %v978_v52, %v977_v16 }
 0x1f7   : > { %v849_v4 = vpop.f32.mrf.mxu2 }
 0x1f8   : > { %v889_v57 = vsub.f32 %v1516_v29, %v849_v4  ;;  %v1022_v60 = vsub.f32 %v849_v4, %v361_v23  ;;  %v1109_v29 = vsel %vm229_vm0, %v1052_v30, 0.0 }
 0x1f9   : > { %v1110_v42 = vadd.f32 %v1109_v29, %v1108_v40 }
 0x1fa   : > { %v921_v41 = vmul.f32 %v889_v57, %v889_v57  ;;  %v1054_v14 = vmul.f32 %v1022_v60, %v1022_v60 }
 0x1fc   : > { %v980_v26 = vsel %vm229_vm0, %v921_v41, 0.0  ;;  %v1113_v39 = vsel %vm229_vm0, %v1054_v14, 0.0 }
 0x1fd   : > { %v981_v21 = vadd.f32 %v980_v26, %v979_v55 }
 0x1ff   : > { %v852_v46 = vpop.f32.mrf.mxu2 }
 0x200   : > { %v890_v35 = vsub.f32 %v1526_v31, %v852_v46  ;;  %v1023_v49 = vsub.f32 %v852_v46, %v362_v62  ;;  %v1111_v31 = vsel %vm229_vm0, %v1053_v3, 0.0 }
 0x201   : > { %v1112_v44 = vadd.f32 %v1111_v31, %v1110_v42 }
 0x202   : > { %v922_v17 = vmul.f32 %v890_v35, %v890_v35  ;;  %v1055_v10 = vmul.f32 %v1023_v49, %v1023_v49 }
 0x203   : > { %v1114_v45 = vadd.f32 %v1113_v39, %v1112_v44 }
 0x204   : > { %v982_v18 = vsel %vm229_vm0, %v922_v17, 0.0  ;;  %v1115_v9 = vsel %vm229_vm0, %v1055_v10, 0.0 }
 0x205   : > { %v983_v5 = vadd.f32 %v982_v18, %v981_v21  ;;  %v1116_v23 = vadd.f32 %v1115_v9, %v1114_v45 }
 0x207   : > { %v855_v4 = vpop.f32.mrf.mxu2 }
 0x208   : > { %v891_v7 = vsub.f32 %v1339_v51, %v855_v4  ;;  %v1024_v37 = vsub.f32 %v855_v4, %v363_v13 }
 0x20a   : > { %v923_v43 = vmul.f32 %v891_v7, %v891_v7  ;;  %v1056_v19 = vmul.f32 %v1024_v37, %v1024_v37 }
 0x20c   : > { %v984_v36 = vsel %vm229_vm0, %v923_v43, 0.0  ;;  %v1117_v46 = vsel %vm229_vm0, %v1056_v19, 0.0 }
 0x20d   : > { %v985_v11 = vadd.f32 %v984_v36, %v983_v5  ;;  %v1118_v12 = vadd.f32 %v1117_v46, %v1116_v23 }
 0x20f   : > { %v858_v48 = vpop.f32.mrf.mxu2 }
 0x210   : > { %v892_v28 = vsub.f32 %v1340_v58, %v858_v48  ;;  %v1025_v61 = vsub.f32 %v858_v48, %v364_v54 }
 0x212   : > { %v924_v59 = vmul.f32 %v892_v28, %v892_v28  ;;  %v1057_v20 = vmul.f32 %v1025_v61, %v1025_v61 }
 0x214   : > { %v986_v53 = vsel %vm229_vm0, %v924_v59, 0.0  ;;  %v1119_v34 = vsel %vm229_vm0, %v1057_v20, 0.0 }
 0x215   : > { %v987_v38 = vadd.f32 %v986_v53, %v985_v11  ;;  %v1120_v25 = vadd.f32 %v1119_v34, %v1118_v12 }
 0x217   : > { %v988_v62 = vrot.slane %v987_v38, 4  ;;  %v1121_v33 = vrot.slane %v1120_v25, 4 }
 0x219   : > { %v989_v63 = vadd.f32 %v988_v62, %v987_v38  ;;  %v1122_v8 = vadd.f32 %v1121_v33, %v1120_v25 }
 0x21b   : > { %v990_v30 = vrot.slane %v989_v63, 2  ;;  %v1123_v47 = vrot.slane %v1122_v8, 2 }
 0x21d   : > { %v991_v57 = vadd.f32 %v990_v30, %v989_v63  ;;  %v1124_v60 = vadd.f32 %v1123_v47, %v1122_v8 }
 0x21f   : > { %v992_v13 = vrot.slane %v991_v57, 1  ;;  %v1125_v2 = vrot.slane %v1124_v60, 1 }
 0x221   : > { %v993_v56 = vadd.f32 %v992_v13, %v991_v57  ;;  %v1126_v27 = vadd.f32 %v1125_v2, %v1124_v60 }
 0x223   : > { %v1145_v22 = vsel %vm229_vm0, %v993_v56, 0.0  ;;  %v1127_v1 = vadd.f32 1e-08, %v993_v56  ;;  %v1148_v3 = vsel %vm229_vm0, %v1126_v27, 0.0 }
 0x224   : > { %1146 = vadd.xlane.f32.xlu2 %v1145_v22  ;;  %1149 = vadd.xlane.f32.xlu0 %v1148_v3 }
 0x225   : > { %1337 = vrcp.f32 %v1127_v1  ;;  %v1139_v50 = vand.u32 2147483648, %v1127_v1  ;;  %v1137_v29 = vand.u32 2147483647, %v1127_v1  ;;  %vm1133_vm10 = vweird.f32 %v1127_v1 }
 0x227   : > { %v1140_v41 = vor.u32 1.1754944e-38, %v1139_v50  ;;  %vm1138_vm12 = vcmp.eq.f32.partialorder %v1137_v29, 8.507059e+37 }
 0x22b   : > { %v1338_v35 = vpop.eup %1337 }
 0x22c   : > { %v1129_v49 = vmul.f32 %v1338_v35, %v1127_v1  ;;  %vm1134_vm9 = vweird.f32 %v1338_v35 }
 0x22d   : > { %vm1135_vm11 = vmor %vm1133_vm10, %vm1134_vm9 }
 0x22e   : > { %v1130_v32 = vsub.f32 1.0, %v1129_v49 }
 0x230   : > { %v1131_v24 = vmul.f32 %v1338_v35, %v1130_v32 }
 0x232   : > { %v1132_v4 = vadd.f32 %v1338_v35, %v1131_v24 }
 0x234   : > { %v1136_v14 = vsel %vm1135_vm11, %v1338_v35, %v1132_v4 }
 0x235   : > { %v1141_v51 = vsel %vm1138_vm12, %v1140_v41, %v1136_v14 }
 0x236   : > { %v1142_v7 = vmul.f32 %v1141_v51, %v1126_v27 }
 0x238   : > { %v1143_v37 = vsel %vm229_vm0, %v1142_v7, 0.0 }
 0x239   : > { %1144 = vst [vmem:[%s186_s23] sm:$0x1] %v1143_v37 }
 0x297   : > { %v1147_v6 = vpop.xlane.xlu2 %1146  ;;  %v1150_v40 = vpop.xlane.xlu0 %1149 }
 0x298   : > { %v1154_v52 = vsel %vm1153_vm13, %v1147_v6, 0.0  ;;  %v1156_v31 = vsel %vm1155_vm14, %v1150_v40, 0.0 }
 0x299   : > { %v1157_v17 = vadd.f32 %v1156_v31, %v1154_v52 }
 0x29b   : > { %1158 = vst [vmem:[%s189_s26] sm:$0x1] %v1157_v17 }
 0x29c PF: > { %s14_s12 = sadd.s32 1, %s1347_s12  }
 0x29d   : > { %p11_p4 = scmp.ge.s32.totalorder %s14_s12, 4  }
 0x29f   :  { %13 = sbr.rel (!%p11_p4) target bundleno = 1 (0x1), region = 73 }

</bundles_post_ra>
